<compile_context>
chip_gen: v7x
topology: tpu7x:2x2x1
jax: 0.10.0
libtpu: 0.0.40
codegen_flags: <defaults>
</compile_context>

<pallas_src>
import functools
import math

import jax
import jax.numpy as jnp
from jax.experimental import pallas as pl
from jax.experimental.pallas import tpu as pltpu

LRELU_SLOPE = 0.1
NEG_INF = -1e9

# Preferred tile sizes (fall back to the full dim when it does not divide).
_TM, _TN, _TK = 256, 256, 512


def _tile(dim, pref):
    return pref if dim % pref == 0 else dim


def _cp(semantics):
    return pltpu.CompilerParams(
        dimension_semantics=semantics,
        vmem_limit_bytes=48 * 1024 * 1024,
    )


# --------------------------------------------------------------------------
# Tiled matmul (optional activation epilogue)
# --------------------------------------------------------------------------
def _matmul_kernel(x_ref, w_ref, b_ref, o_ref, acc_ref, *, activation):
    @pl.when(pl.program_id(2) == 0)
    def _():
        acc_ref[...] = jnp.zeros_like(acc_ref)

    acc_ref[...] += jnp.dot(
        x_ref[...].astype(jnp.bfloat16), w_ref[...],
        preferred_element_type=jnp.float32)

    @pl.when(pl.program_id(2) == pl.num_programs(2) - 1)
    def _():
        y = acc_ref[...] + b_ref[...].astype(jnp.float32)
        if activation == "gelu":
            y = jax.nn.gelu(y)
        elif activation == "silu":
            y = y * jax.nn.sigmoid(y)
        o_ref[...] = y.astype(o_ref.dtype)


def tiled_linear(x2d, w, b, activation=None, out_dtype=jnp.float32):
    """y = x2d @ w + b.  x2d: (M, K), w: (K, N) bf16, b: (N,)."""
    M, K = x2d.shape
    K2, Nout = w.shape
    assert K == K2
    tm, tn, tk = _tile(M, _TM), _tile(Nout, _TN), _tile(K, _TK)
    b2 = b.reshape(1, Nout).astype(jnp.float32)
    return pl.pallas_call(
        functools.partial(_matmul_kernel, activation=activation),
        grid=(M // tm, Nout // tn, K // tk),
        in_specs=[
            pl.BlockSpec((tm, tk), lambda i, j, k: (i, k)),
            pl.BlockSpec((tk, tn), lambda i, j, k: (k, j)),
            pl.BlockSpec((1, tn), lambda i, j, k: (0, j)),
        ],
        out_specs=pl.BlockSpec((tm, tn), lambda i, j, k: (i, j)),
        out_shape=jax.ShapeDtypeStruct((M, Nout), out_dtype),
        scratch_shapes=[pltpu.VMEM((tm, tn), jnp.float32)],
        compiler_params=_cp(("parallel", "parallel", "arbitrary")),
    )(x2d, w, b2)


# --------------------------------------------------------------------------
# Fused (modulated LayerNorm -> matmul [-> gelu]) kernel
# --------------------------------------------------------------------------
def _ln_mod_linear_kernel(x_ref, sc_ref, sh_ref, w_ref, b_ref, o_ref, *,
                          eps, activation):
    x = x_ref[0].astype(jnp.float32)                              # (tm, D)
    mu = jnp.mean(x, axis=-1, keepdims=True)
    var = jnp.mean(jnp.square(x - mu), axis=-1, keepdims=True)
    xn = (x - mu) * jax.lax.rsqrt(var + eps)
    h = xn * (1.0 + sc_ref[0].astype(jnp.float32)) + sh_ref[0].astype(jnp.float32)
    y = jnp.dot(h.astype(jnp.bfloat16), w_ref[...],
                preferred_element_type=jnp.float32)
    y = y + b_ref[...].astype(jnp.float32)
    if activation == "gelu":
        y = jax.nn.gelu(y)
    o_ref[0] = y.astype(o_ref.dtype)


def ln_mod_linear(x3, scale, shift, w, b, activation=None,
                  out_dtype=jnp.bfloat16, eps=1e-6):
    """out = (LN(x)*(1+scale)+shift) @ w + b.  x3: (N,T,D); scale/shift: (N,D)."""
    N, T, D = x3.shape
    Nout = w.shape[1]
    tm, tn = _tile(T, _TM), _tile(Nout, _TN)
    sc3 = scale.reshape(N, 1, D)
    sh3 = shift.reshape(N, 1, D)
    b2 = b.reshape(1, Nout).astype(jnp.float32)
    return pl.pallas_call(
        functools.partial(_ln_mod_linear_kernel, eps=eps, activation=activation),
        grid=(N, T // tm, Nout // tn),
        in_specs=[
            pl.BlockSpec((1, tm, D), lambda n, i, j: (n, i, 0)),
            pl.BlockSpec((1, 1, D), lambda n, i, j: (n, 0, 0)),
            pl.BlockSpec((1, 1, D), lambda n, i, j: (n, 0, 0)),
            pl.BlockSpec((D, tn), lambda n, i, j: (0, j)),
            pl.BlockSpec((1, tn), lambda n, i, j: (0, j)),
        ],
        out_specs=pl.BlockSpec((1, tm, tn), lambda n, i, j: (n, i, j)),
        out_shape=jax.ShapeDtypeStruct((N, T, Nout), out_dtype),
        compiler_params=_cp(("parallel", "parallel", "parallel")),
    )(x3, sc3, sh3, w, b2)


# --------------------------------------------------------------------------
# Fused (matmul -> x_res + gate * out) kernel, K tiled with accumulator
# --------------------------------------------------------------------------
def _gated_res_kernel(h_ref, w_ref, b_ref, g_ref, xr_ref, o_ref, acc_ref):
    @pl.when(pl.program_id(3) == 0)
    def _():
        acc_ref[...] = jnp.zeros_like(acc_ref)

    acc_ref[...] += jnp.dot(
        h_ref[0].astype(jnp.bfloat16), w_ref[...],
        preferred_element_type=jnp.float32)

    @pl.when(pl.program_id(3) == pl.num_programs(3) - 1)
    def _():
        y = acc_ref[...] + b_ref[...].astype(jnp.float32)
        y = xr_ref[0].astype(jnp.float32) + g_ref[0].astype(jnp.float32) * y
        o_ref[0] = y.astype(o_ref.dtype)


def gated_residual_linear(h3, w, b, gate, x_res, out_dtype=jnp.float32):
    """out = x_res + gate[:,None,:] * (h3 @ w + b)."""
    N, T, K = h3.shape
    Nout = w.shape[1]
    tm, tn, tk = _tile(T, _TM), _tile(Nout, _TN), _tile(K, _TK)
    g3 = gate.reshape(N, 1, Nout)
    b2 = b.reshape(1, Nout).astype(jnp.float32)
    return pl.pallas_call(
        _gated_res_kernel,
        grid=(N, T // tm, Nout // tn, K // tk),
        in_specs=[
            pl.BlockSpec((1, tm, tk), lambda n, i, j, k: (n, i, k)),
            pl.BlockSpec((tk, tn), lambda n, i, j, k: (k, j)),
            pl.BlockSpec((1, tn), lambda n, i, j, k: (0, j)),
            pl.BlockSpec((1, 1, tn), lambda n, i, j, k: (n, 0, j)),
            pl.BlockSpec((1, tm, tn), lambda n, i, j, k: (n, i, j)),
        ],
        out_specs=pl.BlockSpec((1, tm, tn), lambda n, i, j, k: (n, i, j)),
        out_shape=jax.ShapeDtypeStruct((N, T, Nout), out_dtype),
        scratch_shapes=[pltpu.VMEM((tm, tn), jnp.float32)],
        compiler_params=_cp(("parallel", "parallel", "parallel", "arbitrary")),
    )(h3, w, b2, g3, x_res)


# --------------------------------------------------------------------------
# Flash attention (online softmax, in-kernel mask + RoPE)
# --------------------------------------------------------------------------
def _flash_attn_kernel(q_ref, k_ref, v_ref, mask_ref,
                       cosq_ref, sinq_ref, cosk_ref, sink_ref, rp_ref,
                       o_ref, m_sc, l_sc, acc_sc, *, scale):
    ki = pl.program_id(3)

    @pl.when(ki == 0)
    def _():
        m_sc[...] = jnp.full_like(m_sc, -1e30)
        l_sc[...] = jnp.zeros_like(l_sc)
        acc_sc[...] = jnp.zeros_like(acc_sc)

    rp = rp_ref[...]                                              # (Dh, Dh)
    q = q_ref[0, 0].astype(jnp.float32)                           # (tq, Dh)
    k = k_ref[0, 0].astype(jnp.float32)                           # (tkv, Dh)
    # rotate-half RoPE: x*cos + (x @ P)*sin, P = [[0, I], [-I, 0]]
    q = q * cosq_ref[...] + jnp.dot(q, rp, preferred_element_type=jnp.float32) * sinq_ref[...]
    k = k * cosk_ref[...] + jnp.dot(k, rp, preferred_element_type=jnp.float32) * sink_ref[...]

    s = jnp.dot(q.astype(jnp.bfloat16), k.astype(jnp.bfloat16).T,
                preferred_element_type=jnp.float32) * scale       # (tq, tkv)
    s = s + mask_ref[0]                                           # (1, tkv) bcast

    m_prev = m_sc[...]
    m_new = jnp.maximum(m_prev, jnp.max(s, axis=-1, keepdims=True))
    alpha = jnp.exp(m_prev - m_new)
    p = jnp.exp(s - m_new)
    l_sc[...] = alpha * l_sc[...] + jnp.sum(p, axis=-1, keepdims=True)
    acc_sc[...] = alpha * acc_sc[...] + jnp.dot(
        p.astype(jnp.bfloat16), v_ref[0, 0].astype(jnp.bfloat16),
        preferred_element_type=jnp.float32)
    m_sc[...] = m_new

    @pl.when(ki == pl.num_programs(3) - 1)
    def _():
        o_ref[0, 0] = (acc_sc[...] *
                       pl.reciprocal(l_sc[...], approx=True)).astype(o_ref.dtype)


def flash_mha(q, k, v, maskf, cos, sin, rope_p, scale, out_dtype=jnp.bfloat16):
    """q,k,v: (N,H,T,Dh); maskf: (N,1,T) additive; cos/sin: (T,Dh); rope_p: (Dh,Dh)."""
    N, H, T, Dh = q.shape
    tq, tkv = _tile(T, 256), _tile(T, 256)
    return pl.pallas_call(
        functools.partial(_flash_attn_kernel, scale=scale),
        grid=(N, H, T // tq, T // tkv),
        in_specs=[
            pl.BlockSpec((1, 1, tq, Dh), lambda n, h, qi, ki: (n, h, qi, 0)),
            pl.BlockSpec((1, 1, tkv, Dh), lambda n, h, qi, ki: (n, h, ki, 0)),
            pl.BlockSpec((1, 1, tkv, Dh), lambda n, h, qi, ki: (n, h, ki, 0)),
            pl.BlockSpec((1, 1, tkv), lambda n, h, qi, ki: (n, 0, ki)),
            pl.BlockSpec((tq, Dh), lambda n, h, qi, ki: (qi, 0)),
            pl.BlockSpec((tq, Dh), lambda n, h, qi, ki: (qi, 0)),
            pl.BlockSpec((tkv, Dh), lambda n, h, qi, ki: (ki, 0)),
            pl.BlockSpec((tkv, Dh), lambda n, h, qi, ki: (ki, 0)),
            pl.BlockSpec((Dh, Dh), lambda n, h, qi, ki: (0, 0)),
        ],
        out_specs=pl.BlockSpec((1, 1, tq, Dh), lambda n, h, qi, ki: (n, h, qi, 0)),
        out_shape=jax.ShapeDtypeStruct((N, H, T, Dh), out_dtype),
        scratch_shapes=[
            pltpu.VMEM((tq, 1), jnp.float32),
            pltpu.VMEM((tq, 1), jnp.float32),
            pltpu.VMEM((tq, Dh), jnp.float32),
        ],
        compiler_params=_cp(("parallel", "parallel", "parallel", "arbitrary")),
    )(q, k, v, maskf, cos, sin, cos, sin, rope_p)


# --------------------------------------------------------------------------
# 3x3 "same" conv as lane-dense row matmuls (NHWC -> rows of length W*C)
# --------------------------------------------------------------------------
def _conv_rows_kernel(x_ref, m_ref, b_ref, *rest, pre_lrelu, has_res, wc_in):
    if has_res:
        res_ref, o_ref = rest
    else:
        (o_ref,) = rest
    x = x_ref[0].astype(jnp.float32)                              # (H, W*Cin)
    if pre_lrelu:
        x = jnp.where(x >= 0, x, LRELU_SLOPE * x)
    xb = x.astype(jnp.bfloat16)
    H = x.shape[0]
    wco = o_ref.shape[-1]

    p0 = jnp.dot(xb, m_ref[0 * wc_in:1 * wc_in, :], preferred_element_type=jnp.float32)
    p1 = jnp.dot(xb, m_ref[1 * wc_in:2 * wc_in, :], preferred_element_type=jnp.float32)
    p2 = jnp.dot(xb, m_ref[2 * wc_in:3 * wc_in, :], preferred_element_type=jnp.float32)

    rows = jax.lax.broadcasted_iota(jnp.int32, (H, wco), 0)
    down = jnp.where(rows >= 1, pltpu.roll(p0, shift=1, axis=0), 0.0)     # ky = 0
    up = jnp.where(rows < H - 1, pltpu.roll(p2, shift=H - 1, axis=0), 0.0)  # ky = 2

    y = p1 + down + up + b_ref[...].astype(jnp.float32)
    if has_res:
        y = y + res_ref[0].astype(jnp.float32)
    o_ref[0] = y.astype(o_ref.dtype)


def conv3x3_rows(x_rows, rowmat, b_row, pre_lrelu=False, residual=None,
                 out_dtype=jnp.bfloat16):
    """x_rows: (N, H, W*Cin); rowmat: (3*W*Cin, W*Cout); b_row: (1, W*Cout)."""
    N, H, WCin = x_rows.shape
    WCout = rowmat.shape[1]
    in_specs = [
        pl.BlockSpec((1, H, WCin), lambda n: (n, 0, 0)),
        pl.BlockSpec((3 * WCin, WCout), lambda n: (0, 0)),
        pl.BlockSpec((1, WCout), lambda n: (0, 0)),
    ]
    args = [x_rows, rowmat, b_row]
    has_res = residual is not None
    if has_res:
        in_specs.append(pl.BlockSpec((1, H, WCout), lambda n: (n, 0, 0)))
        args.append(residual)
    return pl.pallas_call(
        functools.partial(_conv_rows_kernel, pre_lrelu=pre_lrelu,
                          has_res=has_res, wc_in=WCin),
        grid=(N,),
        in_specs=in_specs,
        out_specs=pl.BlockSpec((1, H, WCout), lambda n: (n, 0, 0)),
        out_shape=jax.ShapeDtypeStruct((N, H, WCout), out_dtype),
        compiler_params=_cp(("parallel",)),
    )(*args)


def conv_weight_to_rowmat(w, W):
    """w: (3, 3, Cin, Cout) -> stacked banded matrices (3*W*Cin, W*Cout), bf16."""
    mats = []
    for dy in range(3):
        m = None
        for dx in range(3):
            s = jnp.eye(W, k=1 - dx, dtype=jnp.float32)           # wi = wo + dx - 1
            blk = jnp.kron(s, w[dy, dx].astype(jnp.float32))
            m = blk if m is None else m + blk
        mats.append(m)
    return jnp.concatenate(mats, axis=0).astype(jnp.bfloat16)


def conv_bias_row(b, W):
    return jnp.tile(b, W).reshape(1, -1).astype(jnp.float32)


# --------------------------------------------------------------------------
# Host-side glue: RoPE tables, time embedding, params
# --------------------------------------------------------------------------
def rope_tables(T, Dh):
    half = Dh // 2
    inv_freq = 1.0 / (10000.0 ** (jnp.arange(half, dtype=jnp.float32) / half))
    ang = jnp.arange(T, dtype=jnp.float32)[:, None] * inv_freq[None, :]
    cos = jnp.concatenate([jnp.cos(ang), jnp.cos(ang)], axis=-1)   # (T, Dh)
    sin = jnp.concatenate([jnp.sin(ang), jnp.sin(ang)], axis=-1)
    idx = jnp.arange(half)
    perm = jnp.zeros((Dh, Dh), jnp.float32)
    perm = perm.at[idx, idx + half].set(1.0)
    perm = perm.at[idx + half, idx].set(-1.0)                      # x @ P = rotate_half(x)
    return cos, sin, perm


def timestep_embedding(t, dim):
    half = dim // 2
    freqs = jnp.exp(-jnp.log(10000.0) * jnp.arange(half, dtype=jnp.float32) / half)
    args = t[:, None] * freqs[None, :]
    return jnp.concatenate([jnp.cos(args), jnp.sin(args)], axis=-1)


def init_linear(key, din, dout):
    s = 1.0 / math.sqrt(din)
    kw, kb = jax.random.split(key)
    return {"w": jax.random.uniform(kw, (din, dout), jnp.float32, -s, s).astype(jnp.bfloat16),
            "b": jax.random.uniform(kb, (dout,), jnp.float32, -s, s)}


def init_conv(key, cin, cout, k=3):
    s = 1.0 / math.sqrt(cin * k * k)
    kw, kb = jax.random.split(key)
    return {"w": jax.random.uniform(kw, (k, k, cin, cout), jnp.float32, -s, s),
            "b": jax.random.uniform(kb, (cout,), jnp.float32, -s, s)}


def init_params(key, *, N_layer, N_head, D, D_cond, D_hidden, D_bridge,
                D_conv2d, D_mel):
    ks = iter(jax.random.split(key, 128))
    p = {"input_linear": init_linear(next(ks), D_mel + D_cond, D)}
    blocks, ada_w, ada_b = [], [], []
    for _ in range(N_layer):
        ada = init_linear(next(ks), D, 6 * D)
        ada_w.append(ada["w"])
        ada_b.append(ada["b"])
        blocks.append({
            "qkv": init_linear(next(ks), D, 3 * D),
            "proj": init_linear(next(ks), D, D),
            "mlp1": init_linear(next(ks), D, D_hidden),
            "mlp2": init_linear(next(ks), D_hidden, D),
        })
    p["dit"] = {
        "t_mlp1": init_linear(next(ks), D, D),
        "t_mlp2": init_linear(next(ks), D, D),
        # all layers' adaLN modulation weights stacked -> ONE matmul per step
        "ada_all": {"w": jnp.concatenate(ada_w, axis=1),
                    "b": jnp.concatenate(ada_b, axis=0)},
        "blocks": blocks,
    }
    if D_bridge > 0:
        p["bridge_linear"] = init_linear(next(ks), D, D_bridge * D_mel)
        p["cond_linear"] = init_linear(next(ks), D_cond, D_mel)
        p["bridge_conv2d"] = init_conv(next(ks), D_bridge + 2, D_conv2d)
        p["resblocks"] = [
            {"c1": init_conv(next(ks), D_conv2d, D_conv2d),
             "c2": init_conv(next(ks), D_conv2d, D_conv2d)}
            for _ in range(2)
        ]
        p["last_conv2d"] = init_conv(next(ks), D_conv2d, 1)
    else:
        p["output_linear"] = init_linear(next(ks), D, D_mel)
    return p


# --------------------------------------------------------------------------
# Model forward
# --------------------------------------------------------------------------
def dit_forward(params, x, t, maskf, cos, sin, rope_p, N_head):
    N, T, D = x.shape
    Dh = D // N_head
    scale = 1.0 / math.sqrt(Dh)

    temb = timestep_embedding(t, D)                                # (N, D) f32
    c = tiled_linear(temb, params["t_mlp1"]["w"], params["t_mlp1"]["b"],
                     activation="silu")
    c = tiled_linear(c, params["t_mlp2"]["w"], params["t_mlp2"]["b"])
    c_act = jax.nn.silu(c)                                         # tiny (N, D)

    # all layers' adaLN modulations in a single matmul
    mods_all = tiled_linear(c_act, params["ada_all"]["w"], params["ada_all"]["b"])

    for l, blk in enumerate(params["blocks"]):
        mods = mods_all[:, l * 6 * D:(l + 1) * 6 * D]
        sh_msa, sc_msa, g_msa, sh_mlp, sc_mlp, g_mlp = jnp.split(mods, 6, -1)

        # --- attention: fused (mod-LN -> qkv), flash MHA, fused (proj -> gated res)
        qkv = ln_mod_linear(x, sc_msa, sh_msa, blk["qkv"]["w"], blk["qkv"]["b"])
        qkv = qkv.reshape(N, T, 3, N_head, Dh).transpose(2, 0, 3, 1, 4)
        q, k, v = qkv[0], qkv[1], qkv[2]                           # (N, H, T, Dh)
        o = flash_mha(q, k, v, maskf, cos, sin, rope_p, scale)     # bf16
        o = o.transpose(0, 2, 1, 3).reshape(N, T, D)
        x = gated_residual_linear(o, blk["proj"]["w"], blk["proj"]["b"], g_msa, x)

        # --- MLP: fused (mod-LN -> mlp1 + gelu), fused (mlp2 -> gated res)
        h = ln_mod_linear(x, sc_mlp, sh_mlp, blk["mlp1"]["w"], blk["mlp1"]["b"],
                          activation="gelu")
        x = gated_residual_linear(h, blk["mlp2"]["w"], blk["mlp2"]["b"], g_mlp, x)
    return x


def dit_decoder_forward(params, x, w, t, mask, *, N_head, D_bridge):
    """x: (N, T, D_mel); w: (N, T, D_cond); t: (N,); mask: (N, T) bool."""
    N, T, D_mel = x.shape
    D_cond = w.shape[-1]
    D = params["input_linear"]["w"].shape[1]
    Dh = D // N_head

    cos, sin, rope_p = rope_tables(T, Dh)
    maskf = jnp.where(mask, 0.0, NEG_INF).astype(jnp.float32)[:, None, :]  # (N,1,T)

    x_res = x
    xw = jnp.concatenate([x, w], axis=-1)
    h = tiled_linear(xw.reshape(N * T, D_mel + D_cond),
                     params["input_linear"]["w"],
                     params["input_linear"]["b"]).reshape(N, T, D)

    h = dit_forward(params["dit"], h, t, maskf, cos, sin, rope_p, N_head)

    zeros = jnp.zeros((N, D), jnp.float32)
    if D_bridge <= 0:
        y = ln_mod_linear(h, zeros, zeros, params["output_linear"]["w"],
                          params["output_linear"]["b"], out_dtype=jnp.float32)
        return y

    # final LN fused with the bridge projection
    xb = ln_mod_linear(h, zeros, zeros, params["bridge_linear"]["w"],
                       params["bridge_linear"]["b"], out_dtype=jnp.float32)
    w_mel = tiled_linear(w.reshape(N * T, D_cond),
                         params["cond_linear"]["w"],
                         params["cond_linear"]["b"]).reshape(N, T, D_mel)

    # channels-last row layout: (N, H=T, W=D_mel, C) flattened to (N, T, D_mel*C)
    xb = xb.reshape(N, T, D_bridge, D_mel).transpose(0, 1, 3, 2)   # (N,T,D_mel,Db)
    feat = jnp.concatenate([x_res[..., None], w_mel[..., None], xb], axis=-1)
    feat = feat.reshape(N, T, D_mel * (D_bridge + 2))

    m_b = conv_weight_to_rowmat(params["bridge_conv2d"]["w"], D_mel)
    b_b = conv_bias_row(params["bridge_conv2d"]["b"], D_mel)
    h2 = conv3x3_rows(feat, m_b, b_b, pre_lrelu=False)             # (N,T,D_mel*Dc)

    for rb in params["resblocks"]:
        m1 = conv_weight_to_rowmat(rb["c1"]["w"], D_mel)
        b1 = conv_bias_row(rb["c1"]["b"], D_mel)
        m2 = conv_weight_to_rowmat(rb["c2"]["w"], D_mel)
        b2 = conv_bias_row(rb["c2"]["b"], D_mel)
        r = conv3x3_rows(h2, m1, b1, pre_lrelu=True)
        h2 = conv3x3_rows(r, m2, b2, pre_lrelu=True, residual=h2)  # fused x + conv(..)

    m_last = conv_weight_to_rowmat(params["last_conv2d"]["w"], D_mel)
    b_last = conv_bias_row(params["last_conv2d"]["b"], D_mel)
    y = conv3x3_rows(h2, m_last, b_last, pre_lrelu=True,
                     out_dtype=jnp.float32)                        # (N, T, D_mel)
    return y


# --------------------------------------------------------------------------
if __name__ == "__main__":
    N_layer, N_head = 2, 4
    D, D_cond, D_hidden = 32, 8, 64
    D_bridge, D_conv2d, D_mel = 4, 8, 8
    P_dropout = 0.1  # identity at inference
    N, T = 2, 8

    key = jax.random.PRNGKey(0)
    k_x, k_w, k_t, k_p = jax.random.split(key, 4)
    x = jax.random.normal(k_x, (N, T, D_mel), jnp.float32)
    w = jax.random.normal(k_w, (N, T, D_cond), jnp.float32)
    t = jax.random.uniform(k_t, (N,), jnp.float32)
    mask = jnp.ones((N, T), dtype=bool).at[1, 6:].set(False)

    params = init_params(k_p, N_layer=N_layer, N_head=N_head, D=D,
                         D_cond=D_cond, D_hidden=D_hidden, D_bridge=D_bridge,
                         D_conv2d=D_conv2d, D_mel=D_mel)

    fwd = jax.jit(functools.partial(dit_decoder_forward,
                                    N_head=N_head, D_bridge=D_bridge))
    y = fwd(params, x, w, t, mask)
    jax.block_until_ready(y)
    assert y.shape == (N, T, D_mel), y.shape
    assert bool(jnp.all(jnp.isfinite(y)))
    print("KERNEL_OK")
</pallas_src>

<mosaic_0001>
module attributes {stable_mosaic.version = 11 : i64} {
  func.func @_matmul_kernel(%arg0: i32, %arg1: i32, %arg2: i32, %arg3: memref<2x32xf32, #tpu.memory_space<vmem>>, %arg4: memref<32x32xbf16, #tpu.memory_space<vmem>>, %arg5: memref<1x32xf32, #tpu.memory_space<vmem>>, %arg6: memref<2x32xf32, #tpu.memory_space<vmem>>, %arg7: memref<2x32xf32, #tpu.memory_space<vmem>>) attributes {dimension_semantics = [#tpu.dimension_semantics<parallel>, #tpu.dimension_semantics<parallel>, #tpu.dimension_semantics<arbitrary>], iteration_bounds = array<i64: 1, 1, 1>, scalar_prefetch = 0 : i64, scratch_operands = 1 : i64, tpu.core_type = #tpu.core_type<tc>, window_params = [{transform_indices = @transform_0, window_bounds = array<i64: 2, 32>}, {transform_indices = @transform_1, window_bounds = array<i64: 32, 32>}, {transform_indices = @transform_2, window_bounds = array<i64: 1, 32>}, {transform_indices = @transform_3, window_bounds = array<i64: 2, 32>}]} {
    %c0_i32 = arith.constant 0 : i32
    %0 = arith.cmpi eq, %arg2, %c0_i32 : i32
    %1 = arith.extui %0 : i1 to i32
    %c0_i32_0 = arith.constant 0 : i32
    %2 = arith.cmpi ne, %1, %c0_i32_0 : i32
    scf.if %2 {
      %cst_10 = arith.constant 0.000000e+00 : f32
      %13 = vector.broadcast %cst_10 : f32 to vector<2x32xf32>
      %c0_11 = arith.constant 0 : index
      %c0_12 = arith.constant 0 : index
      %14 = vector.load %arg7[%c0_11, %c0_12] : memref<2x32xf32, #tpu.memory_space<vmem>>, vector<2x32xf32>
      tpu.vector_store %arg7[%c0_11, %c0_12], %13 {strides = array<i32>} : memref<2x32xf32, #tpu.memory_space<vmem>>, vector<2x32xf32>,
    } else {
    }
    %c0 = arith.constant 0 : index
    %c0_1 = arith.constant 0 : index
    %3 = vector.load %arg7[%c0, %c0_1] : memref<2x32xf32, #tpu.memory_space<vmem>>, vector<2x32xf32>
    %c0_2 = arith.constant 0 : index
    %c0_3 = arith.constant 0 : index
    %4 = vector.load %arg3[%c0_2, %c0_3] : memref<2x32xf32, #tpu.memory_space<vmem>>, vector<2x32xf32>
    %5 = arith.truncf %4 : vector<2x32xf32> to vector<2x32xbf16>
    %c0_4 = arith.constant 0 : index
    %c0_5 = arith.constant 0 : index
    %6 = vector.load %arg4[%c0_4, %c0_5] : memref<32x32xbf16, #tpu.memory_space<vmem>>, vector<32x32xbf16>
    %cst = arith.constant dense<0.000000e+00> : vector<2x32xf32>
    %7 = tpu.matmul %5, %6, %cst {dimension_numbers = #tpu.dot_dimension_numbers<[1], [0], [0], [1], [0, 0, 1, 1], [], []>} : vector<2x32xbf16>, vector<32x32xbf16>, vector<2x32xf32> -> vector<2x32xf32>
    %8 = arith.addf %3, %7 : vector<2x32xf32>
    %c0_6 = arith.constant 0 : index
    %c0_7 = arith.constant 0 : index
    %9 = vector.load %arg7[%c0_6, %c0_7] : memref<2x32xf32, #tpu.memory_space<vmem>>, vector<2x32xf32>
    tpu.vector_store %arg7[%c0_6, %c0_7], %8 {strides = array<i32>} : memref<2x32xf32, #tpu.memory_space<vmem>>, vector<2x32xf32>,
    %c0_i32_8 = arith.constant 0 : i32
    %10 = arith.cmpi eq, %arg2, %c0_i32_8 : i32
    %11 = arith.extui %10 : i1 to i32
    %c0_i32_9 = arith.constant 0 : i32
    %12 = arith.cmpi ne, %11, %c0_i32_9 : i32
    scf.if %12 {
      %c0_10 = arith.constant 0 : index
      %c0_11 = arith.constant 0 : index
      %13 = vector.load %arg7[%c0_10, %c0_11] : memref<2x32xf32, #tpu.memory_space<vmem>>, vector<2x32xf32>
      %c0_12 = arith.constant 0 : index
      %c0_13 = arith.constant 0 : index
      %14 = vector.load %arg5[%c0_12, %c0_13] : memref<1x32xf32, #tpu.memory_space<vmem>>, vector<1x32xf32>
      %15 = vector.broadcast %14 : vector<1x32xf32> to vector<2x32xf32>
      %16 = arith.addf %13, %15 : vector<2x32xf32>
      %17 = arith.negf %16 : vector<2x32xf32>
      %18 = math.exp %17 : vector<2x32xf32>
      %cst_14 = arith.constant 1.000000e+00 : f32
      %19 = vector.broadcast %cst_14 : f32 to vector<2x32xf32>
      %20 = arith.addf %19, %18 : vector<2x32xf32>
      %21 = arith.divf %19, %20 : vector<2x32xf32>
      %22 = arith.mulf %16, %21 : vector<2x32xf32>
      %c0_15 = arith.constant 0 : index
      %c0_16 = arith.constant 0 : index
      %23 = vector.load %arg6[%c0_15, %c0_16] : memref<2x32xf32, #tpu.memory_space<vmem>>, vector<2x32xf32>
      tpu.vector_store %arg6[%c0_15, %c0_16], %22 {strides = array<i32>} : memref<2x32xf32, #tpu.memory_space<vmem>>, vector<2x32xf32>,
    } else {
    }
    return
  }
  func.func @transform_0(%arg0: i32, %arg1: i32, %arg2: i32) -> (i32, i32) {
    %c0_i32 = arith.constant 0 : i32
    return %arg0, %arg2 : i32, i32
  }
  func.func @transform_1(%arg0: i32, %arg1: i32, %arg2: i32) -> (i32, i32) {
    %c0_i32 = arith.constant 0 : i32
    return %arg2, %arg1 : i32, i32
  }
  func.func @transform_2(%arg0: i32, %arg1: i32, %arg2: i32) -> (i32, i32) {
    %c0_i32 = arith.constant 0 : i32
    %c0_i32_0 = arith.constant 0 : i32
    return %c0_i32, %arg1 : i32, i32
  }
  func.func @transform_3(%arg0: i32, %arg1: i32, %arg2: i32) -> (i32, i32) {
    %c0_i32 = arith.constant 0 : i32
    return %arg0, %arg1 : i32, i32
  }
}

module attributes {stable_mosaic.version = 11 : i64} {
  func.func @_matmul_kernel(%arg0: i32, %arg1: i32, %arg2: i32, %arg3: memref<2x32xf32, #tpu.memory_space<vmem>>, %arg4: memref<32x32xbf16, #tpu.memory_space<vmem>>, %arg5: memref<1x32xf32, #tpu.memory_space<vmem>>, %arg6: memref<2x32xf32, #tpu.memory_space<vmem>>, %arg7: memref<2x32xf32, #tpu.memory_space<vmem>>) attributes {dimension_semantics = [#tpu.dimension_semantics<parallel>, #tpu.dimension_semantics<parallel>, #tpu.dimension_semantics<arbitrary>], iteration_bounds = array<i64: 1, 1, 1>, scalar_prefetch = 0 : i64, scratch_operands = 1 : i64, tpu.core_type = #tpu.core_type<tc>, window_params = [{transform_indices = @transform_0, window_bounds = array<i64: 2, 32>}, {transform_indices = @transform_1, window_bounds = array<i64: 32, 32>}, {transform_indices = @transform_2, window_bounds = array<i64: 1, 32>}, {transform_indices = @transform_3, window_bounds = array<i64: 2, 32>}]} {
    %c0_i32 = arith.constant 0 : i32
    %0 = arith.cmpi eq, %arg2, %c0_i32 : i32
    %1 = arith.extui %0 : i1 to i32
    %c0_i32_0 = arith.constant 0 : i32
    %2 = arith.cmpi ne, %1, %c0_i32_0 : i32
    scf.if %2 {
      %cst_10 = arith.constant 0.000000e+00 : f32
      %13 = vector.broadcast %cst_10 : f32 to vector<2x32xf32>
      %c0_11 = arith.constant 0 : index
      %c0_12 = arith.constant 0 : index
      %14 = vector.load %arg7[%c0_11, %c0_12] : memref<2x32xf32, #tpu.memory_space<vmem>>, vector<2x32xf32>
      tpu.vector_store %arg7[%c0_11, %c0_12], %13 {strides = array<i32>} : memref<2x32xf32, #tpu.memory_space<vmem>>, vector<2x32xf32>,
    } else {
    }
    %c0 = arith.constant 0 : index
    %c0_1 = arith.constant 0 : index
    %3 = vector.load %arg7[%c0, %c0_1] : memref<2x32xf32, #tpu.memory_space<vmem>>, vector<2x32xf32>
    %c0_2 = arith.constant 0 : index
    %c0_3 = arith.constant 0 : index
    %4 = vector.load %arg3[%c0_2, %c0_3] : memref<2x32xf32, #tpu.memory_space<vmem>>, vector<2x32xf32>
    %5 = arith.truncf %4 : vector<2x32xf32> to vector<2x32xbf16>
    %c0_4 = arith.constant 0 : index
    %c0_5 = arith.constant 0 : index
    %6 = vector.load %arg4[%c0_4, %c0_5] : memref<32x32xbf16, #tpu.memory_space<vmem>>, vector<32x32xbf16>
    %cst = arith.constant dense<0.000000e+00> : vector<2x32xf32>
    %7 = tpu.matmul %5, %6, %cst {dimension_numbers = #tpu.dot_dimension_numbers<[1], [0], [0], [1], [0, 0, 1, 1], [], []>} : vector<2x32xbf16>, vector<32x32xbf16>, vector<2x32xf32> -> vector<2x32xf32>
    %8 = arith.addf %3, %7 : vector<2x32xf32>
    %c0_6 = arith.constant 0 : index
    %c0_7 = arith.constant 0 : index
    %9 = vector.load %arg7[%c0_6, %c0_7] : memref<2x32xf32, #tpu.memory_space<vmem>>, vector<2x32xf32>
    tpu.vector_store %arg7[%c0_6, %c0_7], %8 {strides = array<i32>} : memref<2x32xf32, #tpu.memory_space<vmem>>, vector<2x32xf32>,
    %c0_i32_8 = arith.constant 0 : i32
    %10 = arith.cmpi eq, %arg2, %c0_i32_8 : i32
    %11 = arith.extui %10 : i1 to i32
    %c0_i32_9 = arith.constant 0 : i32
    %12 = arith.cmpi ne, %11, %c0_i32_9 : i32
    scf.if %12 {
      %c0_10 = arith.constant 0 : index
      %c0_11 = arith.constant 0 : index
      %13 = vector.load %arg7[%c0_10, %c0_11] : memref<2x32xf32, #tpu.memory_space<vmem>>, vector<2x32xf32>
      %c0_12 = arith.constant 0 : index
      %c0_13 = arith.constant 0 : index
      %14 = vector.load %arg5[%c0_12, %c0_13] : memref<1x32xf32, #tpu.memory_space<vmem>>, vector<1x32xf32>
      %15 = vector.broadcast %14 : vector<1x32xf32> to vector<2x32xf32>
      %16 = arith.addf %13, %15 : vector<2x32xf32>
      %c0_14 = arith.constant 0 : index
      %c0_15 = arith.constant 0 : index
      %17 = vector.load %arg6[%c0_14, %c0_15] : memref<2x32xf32, #tpu.memory_space<vmem>>, vector<2x32xf32>
      tpu.vector_store %arg6[%c0_14, %c0_15], %16 {strides = array<i32>} : memref<2x32xf32, #tpu.memory_space<vmem>>, vector<2x32xf32>,
    } else {
    }
    return
  }
  func.func @transform_0(%arg0: i32, %arg1: i32, %arg2: i32) -> (i32, i32) {
    %c0_i32 = arith.constant 0 : i32
    return %arg0, %arg2 : i32, i32
  }
  func.func @transform_1(%arg0: i32, %arg1: i32, %arg2: i32) -> (i32, i32) {
    %c0_i32 = arith.constant 0 : i32
    return %arg2, %arg1 : i32, i32
  }
  func.func @transform_2(%arg0: i32, %arg1: i32, %arg2: i32) -> (i32, i32) {
    %c0_i32 = arith.constant 0 : i32
    %c0_i32_0 = arith.constant 0 : i32
    return %c0_i32, %arg1 : i32, i32
  }
  func.func @transform_3(%arg0: i32, %arg1: i32, %arg2: i32) -> (i32, i32) {
    %c0_i32 = arith.constant 0 : i32
    return %arg0, %arg1 : i32, i32
  }
}

module attributes {stable_mosaic.version = 11 : i64} {
  func.func @_matmul_kernel(%arg0: i32, %arg1: i32, %arg2: i32, %arg3: memref<2x32xf32, #tpu.memory_space<vmem>>, %arg4: memref<32x384xbf16, #tpu.memory_space<vmem>>, %arg5: memref<1x384xf32, #tpu.memory_space<vmem>>, %arg6: memref<2x384xf32, #tpu.memory_space<vmem>>, %arg7: memref<2x384xf32, #tpu.memory_space<vmem>>) attributes {dimension_semantics = [#tpu.dimension_semantics<parallel>, #tpu.dimension_semantics<parallel>, #tpu.dimension_semantics<arbitrary>], iteration_bounds = array<i64: 1, 1, 1>, scalar_prefetch = 0 : i64, scratch_operands = 1 : i64, tpu.core_type = #tpu.core_type<tc>, window_params = [{transform_indices = @transform_0, window_bounds = array<i64: 2, 32>}, {transform_indices = @transform_1, window_bounds = array<i64: 32, 384>}, {transform_indices = @transform_2, window_bounds = array<i64: 1, 384>}, {transform_indices = @transform_3, window_bounds = array<i64: 2, 384>}]} {
    %c0_i32 = arith.constant 0 : i32
    %0 = arith.cmpi eq, %arg2, %c0_i32 : i32
    %1 = arith.extui %0 : i1 to i32
    %c0_i32_0 = arith.constant 0 : i32
    %2 = arith.cmpi ne, %1, %c0_i32_0 : i32
    scf.if %2 {
      %cst_10 = arith.constant 0.000000e+00 : f32
      %13 = vector.broadcast %cst_10 : f32 to vector<2x384xf32>
      %c0_11 = arith.constant 0 : index
      %c0_12 = arith.constant 0 : index
      %14 = vector.load %arg7[%c0_11, %c0_12] : memref<2x384xf32, #tpu.memory_space<vmem>>, vector<2x384xf32>
      tpu.vector_store %arg7[%c0_11, %c0_12], %13 {strides = array<i32>} : memref<2x384xf32, #tpu.memory_space<vmem>>, vector<2x384xf32>,
    } else {
    }
    %c0 = arith.constant 0 : index
    %c0_1 = arith.constant 0 : index
    %3 = vector.load %arg7[%c0, %c0_1] : memref<2x384xf32, #tpu.memory_space<vmem>>, vector<2x384xf32>
    %c0_2 = arith.constant 0 : index
    %c0_3 = arith.constant 0 : index
    %4 = vector.load %arg3[%c0_2, %c0_3] : memref<2x32xf32, #tpu.memory_space<vmem>>, vector<2x32xf32>
    %5 = arith.truncf %4 : vector<2x32xf32> to vector<2x32xbf16>
    %c0_4 = arith.constant 0 : index
    %c0_5 = arith.constant 0 : index
    %6 = vector.load %arg4[%c0_4, %c0_5] : memref<32x384xbf16, #tpu.memory_space<vmem>>, vector<32x384xbf16>
    %cst = arith.constant dense<0.000000e+00> : vector<2x384xf32>
    %7 = tpu.matmul %5, %6, %cst {dimension_numbers = #tpu.dot_dimension_numbers<[1], [0], [0], [1], [0, 0, 1, 1], [], []>} : vector<2x32xbf16>, vector<32x384xbf16>, vector<2x384xf32> -> vector<2x384xf32>
    %8 = arith.addf %3, %7 : vector<2x384xf32>
    %c0_6 = arith.constant 0 : index
    %c0_7 = arith.constant 0 : index
    %9 = vector.load %arg7[%c0_6, %c0_7] : memref<2x384xf32, #tpu.memory_space<vmem>>, vector<2x384xf32>
    tpu.vector_store %arg7[%c0_6, %c0_7], %8 {strides = array<i32>} : memref<2x384xf32, #tpu.memory_space<vmem>>, vector<2x384xf32>,
    %c0_i32_8 = arith.constant 0 : i32
    %10 = arith.cmpi eq, %arg2, %c0_i32_8 : i32
    %11 = arith.extui %10 : i1 to i32
    %c0_i32_9 = arith.constant 0 : i32
    %12 = arith.cmpi ne, %11, %c0_i32_9 : i32
    scf.if %12 {
      %c0_10 = arith.constant 0 : index
      %c0_11 = arith.constant 0 : index
      %13 = vector.load %arg7[%c0_10, %c0_11] : memref<2x384xf32, #tpu.memory_space<vmem>>, vector<2x384xf32>
      %c0_12 = arith.constant 0 : index
      %c0_13 = arith.constant 0 : index
      %14 = vector.load %arg5[%c0_12, %c0_13] : memref<1x384xf32, #tpu.memory_space<vmem>>, vector<1x384xf32>
      %15 = vector.broadcast %14 : vector<1x384xf32> to vector<2x384xf32>
      %16 = arith.addf %13, %15 : vector<2x384xf32>
      %c0_14 = arith.constant 0 : index
      %c0_15 = arith.constant 0 : index
      %17 = vector.load %arg6[%c0_14, %c0_15] : memref<2x384xf32, #tpu.memory_space<vmem>>, vector<2x384xf32>
      tpu.vector_store %arg6[%c0_14, %c0_15], %16 {strides = array<i32>} : memref<2x384xf32, #tpu.memory_space<vmem>>, vector<2x384xf32>,
    } else {
    }
    return
  }
  func.func @transform_0(%arg0: i32, %arg1: i32, %arg2: i32) -> (i32, i32) {
    %c0_i32 = arith.constant 0 : i32
    return %arg0, %arg2 : i32, i32
  }
  func.func @transform_1(%arg0: i32, %arg1: i32, %arg2: i32) -> (i32, i32) {
    %c0_i32 = arith.constant 0 : i32
    return %arg2, %arg1 : i32, i32
  }
  func.func @transform_2(%arg0: i32, %arg1: i32, %arg2: i32) -> (i32, i32) {
    %c0_i32 = arith.constant 0 : i32
    %c0_i32_0 = arith.constant 0 : i32
    return %c0_i32, %arg1 : i32, i32
  }
  func.func @transform_3(%arg0: i32, %arg1: i32, %arg2: i32) -> (i32, i32) {
    %c0_i32 = arith.constant 0 : i32
    return %arg0, %arg1 : i32, i32
  }
}

module attributes {stable_mosaic.version = 11 : i64} {
  func.func @_matmul_kernel(%arg0: i32, %arg1: i32, %arg2: i32, %arg3: memref<16x8xf32, #tpu.memory_space<vmem>>, %arg4: memref<8x8xbf16, #tpu.memory_space<vmem>>, %arg5: memref<1x8xf32, #tpu.memory_space<vmem>>, %arg6: memref<16x8xf32, #tpu.memory_space<vmem>>, %arg7: memref<16x8xf32, #tpu.memory_space<vmem>>) attributes {dimension_semantics = [#tpu.dimension_semantics<parallel>, #tpu.dimension_semantics<parallel>, #tpu.dimension_semantics<arbitrary>], iteration_bounds = array<i64: 1, 1, 1>, scalar_prefetch = 0 : i64, scratch_operands = 1 : i64, tpu.core_type = #tpu.core_type<tc>, window_params = [{transform_indices = @transform_0, window_bounds = array<i64: 16, 8>}, {transform_indices = @transform_1, window_bounds = array<i64: 8, 8>}, {transform_indices = @transform_2, window_bounds = array<i64: 1, 8>}, {transform_indices = @transform_3, window_bounds = array<i64: 16, 8>}]} {
    %c0_i32 = arith.constant 0 : i32
    %0 = arith.cmpi eq, %arg2, %c0_i32 : i32
    %1 = arith.extui %0 : i1 to i32
    %c0_i32_0 = arith.constant 0 : i32
    %2 = arith.cmpi ne, %1, %c0_i32_0 : i32
    scf.if %2 {
      %cst_10 = arith.constant 0.000000e+00 : f32
      %13 = vector.broadcast %cst_10 : f32 to vector<16x8xf32>
      %c0_11 = arith.constant 0 : index
      %c0_12 = arith.constant 0 : index
      %14 = vector.load %arg7[%c0_11, %c0_12] : memref<16x8xf32, #tpu.memory_space<vmem>>, vector<16x8xf32>
      tpu.vector_store %arg7[%c0_11, %c0_12], %13 {strides = array<i32>} : memref<16x8xf32, #tpu.memory_space<vmem>>, vector<16x8xf32>,
    } else {
    }
    %c0 = arith.constant 0 : index
    %c0_1 = arith.constant 0 : index
    %3 = vector.load %arg7[%c0, %c0_1] : memref<16x8xf32, #tpu.memory_space<vmem>>, vector<16x8xf32>
    %c0_2 = arith.constant 0 : index
    %c0_3 = arith.constant 0 : index
    %4 = vector.load %arg3[%c0_2, %c0_3] : memref<16x8xf32, #tpu.memory_space<vmem>>, vector<16x8xf32>
    %5 = arith.truncf %4 : vector<16x8xf32> to vector<16x8xbf16>
    %c0_4 = arith.constant 0 : index
    %c0_5 = arith.constant 0 : index
    %6 = vector.load %arg4[%c0_4, %c0_5] : memref<8x8xbf16, #tpu.memory_space<vmem>>, vector<8x8xbf16>
    %cst = arith.constant dense<0.000000e+00> : vector<16x8xf32>
    %7 = tpu.matmul %5, %6, %cst {dimension_numbers = #tpu.dot_dimension_numbers<[1], [0], [0], [1], [0, 0, 1, 1], [], []>} : vector<16x8xbf16>, vector<8x8xbf16>, vector<16x8xf32> -> vector<16x8xf32>
    %8 = arith.addf %3, %7 : vector<16x8xf32>
    %c0_6 = arith.constant 0 : index
    %c0_7 = arith.constant 0 : index
    %9 = vector.load %arg7[%c0_6, %c0_7] : memref<16x8xf32, #tpu.memory_space<vmem>>, vector<16x8xf32>
    tpu.vector_store %arg7[%c0_6, %c0_7], %8 {strides = array<i32>} : memref<16x8xf32, #tpu.memory_space<vmem>>, vector<16x8xf32>,
    %c0_i32_8 = arith.constant 0 : i32
    %10 = arith.cmpi eq, %arg2, %c0_i32_8 : i32
    %11 = arith.extui %10 : i1 to i32
    %c0_i32_9 = arith.constant 0 : i32
    %12 = arith.cmpi ne, %11, %c0_i32_9 : i32
    scf.if %12 {
      %c0_10 = arith.constant 0 : index
      %c0_11 = arith.constant 0 : index
      %13 = vector.load %arg7[%c0_10, %c0_11] : memref<16x8xf32, #tpu.memory_space<vmem>>, vector<16x8xf32>
      %c0_12 = arith.constant 0 : index
      %c0_13 = arith.constant 0 : index
      %14 = vector.load %arg5[%c0_12, %c0_13] : memref<1x8xf32, #tpu.memory_space<vmem>>, vector<1x8xf32>
      %15 = vector.broadcast %14 : vector<1x8xf32> to vector<16x8xf32>
      %16 = arith.addf %13, %15 : vector<16x8xf32>
      %c0_14 = arith.constant 0 : index
      %c0_15 = arith.constant 0 : index
      %17 = vector.load %arg6[%c0_14, %c0_15] : memref<16x8xf32, #tpu.memory_space<vmem>>, vector<16x8xf32>
      tpu.vector_store %arg6[%c0_14, %c0_15], %16 {strides = array<i32>} : memref<16x8xf32, #tpu.memory_space<vmem>>, vector<16x8xf32>,
    } else {
    }
    return
  }
  func.func @transform_0(%arg0: i32, %arg1: i32, %arg2: i32) -> (i32, i32) {
    %c0_i32 = arith.constant 0 : i32
    return %arg0, %arg2 : i32, i32
  }
  func.func @transform_1(%arg0: i32, %arg1: i32, %arg2: i32) -> (i32, i32) {
    %c0_i32 = arith.constant 0 : i32
    return %arg2, %arg1 : i32, i32
  }
  func.func @transform_2(%arg0: i32, %arg1: i32, %arg2: i32) -> (i32, i32) {
    %c0_i32 = arith.constant 0 : i32
    %c0_i32_0 = arith.constant 0 : i32
    return %c0_i32, %arg1 : i32, i32
  }
  func.func @transform_3(%arg0: i32, %arg1: i32, %arg2: i32) -> (i32, i32) {
    %c0_i32 = arith.constant 0 : i32
    return %arg0, %arg1 : i32, i32
  }
}

module attributes {stable_mosaic.version = 11 : i64} {
  func.func @_ln_mod_linear_kernel(%arg0: i32, %arg1: i32, %arg2: i32, %arg3: memref<1x8x32xf32, #tpu.memory_space<vmem>>, %arg4: memref<1x1x32xf32, #tpu.memory_space<vmem>>, %arg5: memref<1x1x32xf32, #tpu.memory_space<vmem>>, %arg6: memref<32x96xbf16, #tpu.memory_space<vmem>>, %arg7: memref<1x96xf32, #tpu.memory_space<vmem>>, %arg8: memref<1x8x96xbf16, #tpu.memory_space<vmem>>) attributes {dimension_semantics = [#tpu.dimension_semantics<parallel>, #tpu.dimension_semantics<parallel>, #tpu.dimension_semantics<parallel>], iteration_bounds = array<i64: 2, 1, 1>, scalar_prefetch = 0 : i64, scratch_operands = 0 : i64, tpu.core_type = #tpu.core_type<tc>, window_params = [{transform_indices = @transform_0, window_bounds = array<i64: 1, 8, 32>}, {transform_indices = @transform_1, window_bounds = array<i64: 1, 1, 32>}, {transform_indices = @transform_2, window_bounds = array<i64: 1, 1, 32>}, {transform_indices = @transform_3, window_bounds = array<i64: 32, 96>}, {transform_indices = @transform_4, window_bounds = array<i64: 1, 96>}, {transform_indices = @transform_5, window_bounds = array<i64: 1, 8, 96>}]} {
    %c0 = arith.constant 0 : index
    %c0_0 = arith.constant 0 : index
    %c0_1 = arith.constant 0 : index
    %0 = vector.load %arg3[%c0, %c0_0, %c0_1] : memref<1x8x32xf32, #tpu.memory_space<vmem>>, vector<1x8x32xf32>
    %1 = vector.shape_cast %0 : vector<1x8x32xf32> to vector<8x32xf32>
    %cst = arith.constant dense<0.000000e+00> : vector<8xf32>
    %2 = vector.multi_reduction <add>, %1, %cst [1] : vector<8x32xf32> to vector<8xf32>
    %3 = vector.shape_cast %2 : vector<8xf32> to vector<8x1xf32>
    %cst_2 = arith.constant 3.200000e+01 : f32
    %4 = vector.broadcast %cst_2 : f32 to vector<8x1xf32>
    %5 = arith.divf %3, %4 : vector<8x1xf32>
    %6 = vector.broadcast %5 : vector<8x1xf32> to vector<8x32xf32>
    %7 = arith.subf %1, %6 : vector<8x32xf32>
    %8 = arith.mulf %7, %7 : vector<8x32xf32>
    %cst_3 = arith.constant dense<0.000000e+00> : vector<8xf32>
    %9 = vector.multi_reduction <add>, %8, %cst_3 [1] : vector<8x32xf32> to vector<8xf32>
    %10 = vector.shape_cast %9 : vector<8xf32> to vector<8x1xf32>
    %cst_4 = arith.constant 3.200000e+01 : f32
    %11 = vector.broadcast %cst_4 : f32 to vector<8x1xf32>
    %12 = arith.divf %10, %11 : vector<8x1xf32>
    %13 = vector.broadcast %5 : vector<8x1xf32> to vector<8x32xf32>
    %14 = arith.subf %1, %13 : vector<8x32xf32>
    %cst_5 = arith.constant 9.99999997E-7 : f32
    %15 = vector.broadcast %cst_5 : f32 to vector<8x1xf32>
    %16 = arith.addf %12, %15 : vector<8x1xf32>
    %17 = math.rsqrt %16 : vector<8x1xf32>
    %18 = vector.broadcast %17 : vector<8x1xf32> to vector<8x32xf32>
    %19 = arith.mulf %14, %18 : vector<8x32xf32>
    %c0_6 = arith.constant 0 : index
    %c0_7 = arith.constant 0 : index
    %c0_8 = arith.constant 0 : index
    %20 = vector.load %arg4[%c0_6, %c0_7, %c0_8] : memref<1x1x32xf32, #tpu.memory_space<vmem>>, vector<1x1x32xf32>
    %21 = vector.shape_cast %20 : vector<1x1x32xf32> to vector<1x32xf32>
    %cst_9 = arith.constant 1.000000e+00 : f32
    %22 = vector.broadcast %cst_9 : f32 to vector<1x32xf32>
    %23 = arith.addf %22, %21 : vector<1x32xf32>
    %24 = vector.broadcast %23 : vector<1x32xf32> to vector<8x32xf32>
    %25 = arith.mulf %19, %24 : vector<8x32xf32>
    %c0_10 = arith.constant 0 : index
    %c0_11 = arith.constant 0 : index
    %c0_12 = arith.constant 0 : index
    %26 = vector.load %arg5[%c0_10, %c0_11, %c0_12] : memref<1x1x32xf32, #tpu.memory_space<vmem>>, vector<1x1x32xf32>
    %27 = vector.shape_cast %26 : vector<1x1x32xf32> to vector<1x32xf32>
    %28 = vector.broadcast %27 : vector<1x32xf32> to vector<8x32xf32>
    %29 = arith.addf %25, %28 : vector<8x32xf32>
    %30 = arith.truncf %29 : vector<8x32xf32> to vector<8x32xbf16>
    %c0_13 = arith.constant 0 : index
    %c0_14 = arith.constant 0 : index
    %31 = vector.load %arg6[%c0_13, %c0_14] : memref<32x96xbf16, #tpu.memory_space<vmem>>, vector<32x96xbf16>
    %cst_15 = arith.constant dense<0.000000e+00> : vector<8x96xf32>
    %32 = tpu.matmul %30, %31, %cst_15 {dimension_numbers = #tpu.dot_dimension_numbers<[1], [0], [0], [1], [0, 0, 1, 1], [], []>} : vector<8x32xbf16>, vector<32x96xbf16>, vector<8x96xf32> -> vector<8x96xf32>
    %c0_16 = arith.constant 0 : index
    %c0_17 = arith.constant 0 : index
    %33 = vector.load %arg7[%c0_16, %c0_17] : memref<1x96xf32, #tpu.memory_space<vmem>>, vector<1x96xf32>
    %34 = vector.broadcast %33 : vector<1x96xf32> to vector<8x96xf32>
    %35 = arith.addf %32, %34 : vector<8x96xf32>
    %36 = arith.truncf %35 : vector<8x96xf32> to vector<8x96xbf16>
    %c0_18 = arith.constant 0 : index
    %c0_19 = arith.constant 0 : index
    %c0_20 = arith.constant 0 : index
    %37 = vector.load %arg8[%c0_18, %c0_19, %c0_20] : memref<1x8x96xbf16, #tpu.memory_space<vmem>>, vector<1x8x96xbf16>
    %38 = vector.shape_cast %37 : vector<1x8x96xbf16> to vector<8x96xbf16>
    %39 = vector.shape_cast %36 : vector<8x96xbf16> to vector<1x8x96xbf16>
    tpu.vector_store %arg8[%c0_18, %c0_19, %c0_20], %39 {strides = array<i32>} : memref<1x8x96xbf16, #tpu.memory_space<vmem>>, vector<1x8x96xbf16>,
    return
  }
  func.func @transform_0(%arg0: i32, %arg1: i32, %arg2: i32) -> (i32, i32, i32) {
    %c0_i32 = arith.constant 0 : i32
    %c0_i32_0 = arith.constant 0 : i32
    return %arg0, %arg1, %c0_i32 : i32, i32, i32
  }
  func.func @transform_1(%arg0: i32, %arg1: i32, %arg2: i32) -> (i32, i32, i32) {
    %c0_i32 = arith.constant 0 : i32
    %c0_i32_0 = arith.constant 0 : i32
    %c0_i32_1 = arith.constant 0 : i32
    return %arg0, %c0_i32, %c0_i32_0 : i32, i32, i32
  }
  func.func @transform_2(%arg0: i32, %arg1: i32, %arg2: i32) -> (i32, i32, i32) {
    %c0_i32 = arith.constant 0 : i32
    %c0_i32_0 = arith.constant 0 : i32
    %c0_i32_1 = arith.constant 0 : i32
    return %arg0, %c0_i32, %c0_i32_0 : i32, i32, i32
  }
  func.func @transform_3(%arg0: i32, %arg1: i32, %arg2: i32) -> (i32, i32) {
    %c0_i32 = arith.constant 0 : i32
    %c0_i32_0 = arith.constant 0 : i32
    return %c0_i32, %arg2 : i32, i32
  }
  func.func @transform_4(%arg0: i32, %arg1: i32, %arg2: i32) -> (i32, i32) {
    %c0_i32 = arith.constant 0 : i32
    %c0_i32_0 = arith.constant 0 : i32
    return %c0_i32, %arg2 : i32, i32
  }
  func.func @transform_5(%arg0: i32, %arg1: i32, %arg2: i32) -> (i32, i32, i32) {
    %c0_i32 = arith.constant 0 : i32
    return %arg0, %arg1, %arg2 : i32, i32, i32
  }
}

module attributes {stable_mosaic.version = 11 : i64} {
  func.func @_matmul_kernel(%arg0: i32, %arg1: i32, %arg2: i32, %arg3: memref<16x16xf32, #tpu.memory_space<vmem>>, %arg4: memref<16x32xbf16, #tpu.memory_space<vmem>>, %arg5: memref<1x32xf32, #tpu.memory_space<vmem>>, %arg6: memref<16x32xf32, #tpu.memory_space<vmem>>, %arg7: memref<16x32xf32, #tpu.memory_space<vmem>>) attributes {dimension_semantics = [#tpu.dimension_semantics<parallel>, #tpu.dimension_semantics<parallel>, #tpu.dimension_semantics<arbitrary>], iteration_bounds = array<i64: 1, 1, 1>, scalar_prefetch = 0 : i64, scratch_operands = 1 : i64, tpu.core_type = #tpu.core_type<tc>, window_params = [{transform_indices = @transform_0, window_bounds = array<i64: 16, 16>}, {transform_indices = @transform_1, window_bounds = array<i64: 16, 32>}, {transform_indices = @transform_2, window_bounds = array<i64: 1, 32>}, {transform_indices = @transform_3, window_bounds = array<i64: 16, 32>}]} {
    %c0_i32 = arith.constant 0 : i32
    %0 = arith.cmpi eq, %arg2, %c0_i32 : i32
    %1 = arith.extui %0 : i1 to i32
    %c0_i32_0 = arith.constant 0 : i32
    %2 = arith.cmpi ne, %1, %c0_i32_0 : i32
    scf.if %2 {
      %cst_10 = arith.constant 0.000000e+00 : f32
      %13 = vector.broadcast %cst_10 : f32 to vector<16x32xf32>
      %c0_11 = arith.constant 0 : index
      %c0_12 = arith.constant 0 : index
      %14 = vector.load %arg7[%c0_11, %c0_12] : memref<16x32xf32, #tpu.memory_space<vmem>>, vector<16x32xf32>
      tpu.vector_store %arg7[%c0_11, %c0_12], %13 {strides = array<i32>} : memref<16x32xf32, #tpu.memory_space<vmem>>, vector<16x32xf32>,
    } else {
    }
    %c0 = arith.constant 0 : index
    %c0_1 = arith.constant 0 : index
    %3 = vector.load %arg7[%c0, %c0_1] : memref<16x32xf32, #tpu.memory_space<vmem>>, vector<16x32xf32>
    %c0_2 = arith.constant 0 : index
    %c0_3 = arith.constant 0 : index
    %4 = vector.load %arg3[%c0_2, %c0_3] : memref<16x16xf32, #tpu.memory_space<vmem>>, vector<16x16xf32>
    %5 = arith.truncf %4 : vector<16x16xf32> to vector<16x16xbf16>
    %c0_4 = arith.constant 0 : index
    %c0_5 = arith.constant 0 : index
    %6 = vector.load %arg4[%c0_4, %c0_5] : memref<16x32xbf16, #tpu.memory_space<vmem>>, vector<16x32xbf16>
    %cst = arith.constant dense<0.000000e+00> : vector<16x32xf32>
    %7 = tpu.matmul %5, %6, %cst {dimension_numbers = #tpu.dot_dimension_numbers<[1], [0], [0], [1], [0, 0, 1, 1], [], []>} : vector<16x16xbf16>, vector<16x32xbf16>, vector<16x32xf32> -> vector<16x32xf32>
    %8 = arith.addf %3, %7 : vector<16x32xf32>
    %c0_6 = arith.constant 0 : index
    %c0_7 = arith.constant 0 : index
    %9 = vector.load %arg7[%c0_6, %c0_7] : memref<16x32xf32, #tpu.memory_space<vmem>>, vector<16x32xf32>
    tpu.vector_store %arg7[%c0_6, %c0_7], %8 {strides = array<i32>} : memref<16x32xf32, #tpu.memory_space<vmem>>, vector<16x32xf32>,
    %c0_i32_8 = arith.constant 0 : i32
    %10 = arith.cmpi eq, %arg2, %c0_i32_8 : i32
    %11 = arith.extui %10 : i1 to i32
    %c0_i32_9 = arith.constant 0 : i32
    %12 = arith.cmpi ne, %11, %c0_i32_9 : i32
    scf.if %12 {
      %c0_10 = arith.constant 0 : index
      %c0_11 = arith.constant 0 : index
      %13 = vector.load %arg7[%c0_10, %c0_11] : memref<16x32xf32, #tpu.memory_space<vmem>>, vector<16x32xf32>
      %c0_12 = arith.constant 0 : index
      %c0_13 = arith.constant 0 : index
      %14 = vector.load %arg5[%c0_12, %c0_13] : memref<1x32xf32, #tpu.memory_space<vmem>>, vector<1x32xf32>
      %15 = vector.broadcast %14 : vector<1x32xf32> to vector<16x32xf32>
      %16 = arith.addf %13, %15 : vector<16x32xf32>
      %c0_14 = arith.constant 0 : index
      %c0_15 = arith.constant 0 : index
      %17 = vector.load %arg6[%c0_14, %c0_15] : memref<16x32xf32, #tpu.memory_space<vmem>>, vector<16x32xf32>
      tpu.vector_store %arg6[%c0_14, %c0_15], %16 {strides = array<i32>} : memref<16x32xf32, #tpu.memory_space<vmem>>, vector<16x32xf32>,
    } else {
    }
    return
  }
  func.func @transform_0(%arg0: i32, %arg1: i32, %arg2: i32) -> (i32, i32) {
    %c0_i32 = arith.constant 0 : i32
    return %arg0, %arg2 : i32, i32
  }
  func.func @transform_1(%arg0: i32, %arg1: i32, %arg2: i32) -> (i32, i32) {
    %c0_i32 = arith.constant 0 : i32
    return %arg2, %arg1 : i32, i32
  }
  func.func @transform_2(%arg0: i32, %arg1: i32, %arg2: i32) -> (i32, i32) {
    %c0_i32 = arith.constant 0 : i32
    %c0_i32_0 = arith.constant 0 : i32
    return %c0_i32, %arg1 : i32, i32
  }
  func.func @transform_3(%arg0: i32, %arg1: i32, %arg2: i32) -> (i32, i32) {
    %c0_i32 = arith.constant 0 : i32
    return %arg0, %arg1 : i32, i32
  }
}

module attributes {stable_mosaic.version = 11 : i64} {
  func.func @_flash_attn_kernel(%arg0: i32, %arg1: i32, %arg2: i32, %arg3: i32, %arg4: memref<1x1x8x8xbf16, #tpu.memory_space<vmem>>, %arg5: memref<1x1x8x8xbf16, #tpu.memory_space<vmem>>, %arg6: memref<1x1x8x8xbf16, #tpu.memory_space<vmem>>, %arg7: memref<1x1x8xf32, #tpu.memory_space<vmem>>, %arg8: memref<8x8xf32, #tpu.memory_space<vmem>>, %arg9: memref<8x8xf32, #tpu.memory_space<vmem>>, %arg10: memref<8x8xf32, #tpu.memory_space<vmem>>, %arg11: memref<8x8xf32, #tpu.memory_space<vmem>>, %arg12: memref<8x8xf32, #tpu.memory_space<vmem>>, %arg13: memref<1x1x8x8xbf16, #tpu.memory_space<vmem>>, %arg14: memref<8x1xf32, #tpu.memory_space<vmem>>, %arg15: memref<8x1xf32, #tpu.memory_space<vmem>>, %arg16: memref<8x8xf32, #tpu.memory_space<vmem>>) attributes {dimension_semantics = [#tpu.dimension_semantics<parallel>, #tpu.dimension_semantics<parallel>, #tpu.dimension_semantics<parallel>, #tpu.dimension_semantics<arbitrary>], iteration_bounds = array<i64: 2, 4, 1, 1>, scalar_prefetch = 0 : i64, scratch_operands = 3 : i64, tpu.core_type = #tpu.core_type<tc>, window_params = [{transform_indices = @transform_0, window_bounds = array<i64: 1, 1, 8, 8>}, {transform_indices = @transform_1, window_bounds = array<i64: 1, 1, 8, 8>}, {transform_indices = @transform_2, window_bounds = array<i64: 1, 1, 8, 8>}, {transform_indices = @transform_3, window_bounds = array<i64: 1, 1, 8>}, {transform_indices = @transform_4, window_bounds = array<i64: 8, 8>}, {transform_indices = @transform_5, window_bounds = array<i64: 8, 8>}, {transform_indices = @transform_6, window_bounds = array<i64: 8, 8>}, {transform_indices = @transform_7, window_bounds = array<i64: 8, 8>}, {pipeline_mode = #tpu.pipeline_mode<synchronous>, transform_indices = @transform_8, window_bounds = array<i64: 8, 8>}, {transform_indices = @transform_9, window_bounds = array<i64: 1, 1, 8, 8>}]} {
    %c0_i32 = arith.constant 0 : i32
    %0 = arith.cmpi eq, %arg3, %c0_i32 : i32
    %1 = arith.extui %0 : i1 to i32
    %c0_i32_0 = arith.constant 0 : i32
    %2 = arith.cmpi ne, %1, %c0_i32_0 : i32
    scf.if %2 {
      %cst_45 = arith.constant -1.000000e+30 : f32
      %60 = vector.broadcast %cst_45 : f32 to vector<8x1xf32>
      %c0_46 = arith.constant 0 : index
      %c0_47 = arith.constant 0 : index
      %61 = vector.load %arg14[%c0_46, %c0_47] : memref<8x1xf32, #tpu.memory_space<vmem>>, vector<8x1xf32>
      tpu.vector_store %arg14[%c0_46, %c0_47], %60 {strides = array<i32>} : memref<8x1xf32, #tpu.memory_space<vmem>>, vector<8x1xf32>,
      %cst_48 = arith.constant 0.000000e+00 : f32
      %62 = vector.broadcast %cst_48 : f32 to vector<8x1xf32>
      %c0_49 = arith.constant 0 : index
      %c0_50 = arith.constant 0 : index
      %63 = vector.load %arg15[%c0_49, %c0_50] : memref<8x1xf32, #tpu.memory_space<vmem>>, vector<8x1xf32>
      tpu.vector_store %arg15[%c0_49, %c0_50], %62 {strides = array<i32>} : memref<8x1xf32, #tpu.memory_space<vmem>>, vector<8x1xf32>,
      %cst_51 = arith.constant 0.000000e+00 : f32
      %64 = vector.broadcast %cst_51 : f32 to vector<8x8xf32>
      %c0_52 = arith.constant 0 : index
      %c0_53 = arith.constant 0 : index
      %65 = vector.load %arg16[%c0_52, %c0_53] : memref<8x8xf32, #tpu.memory_space<vmem>>, vector<8x8xf32>
      tpu.vector_store %arg16[%c0_52, %c0_53], %64 {strides = array<i32>} : memref<8x8xf32, #tpu.memory_space<vmem>>, vector<8x8xf32>,
    } else {
    }
    %c0 = arith.constant 0 : index
    %c0_1 = arith.constant 0 : index
    %3 = vector.load %arg12[%c0, %c0_1] : memref<8x8xf32, #tpu.memory_space<vmem>>, vector<8x8xf32>
    %c0_2 = arith.constant 0 : index
    %c0_3 = arith.constant 0 : index
    %c0_4 = arith.constant 0 : index
    %c0_5 = arith.constant 0 : index
    %4 = vector.load %arg4[%c0_2, %c0_3, %c0_4, %c0_5] : memref<1x1x8x8xbf16, #tpu.memory_space<vmem>>, vector<1x1x8x8xbf16>
    %5 = vector.shape_cast %4 : vector<1x1x8x8xbf16> to vector<8x8xbf16>
    %6 = arith.extf %5 : vector<8x8xbf16> to vector<8x8xf32>
    %c0_6 = arith.constant 0 : index
    %c0_7 = arith.constant 0 : index
    %c0_8 = arith.constant 0 : index
    %c0_9 = arith.constant 0 : index
    %7 = vector.load %arg5[%c0_6, %c0_7, %c0_8, %c0_9] : memref<1x1x8x8xbf16, #tpu.memory_space<vmem>>, vector<1x1x8x8xbf16>
    %8 = vector.shape_cast %7 : vector<1x1x8x8xbf16> to vector<8x8xbf16>
    %9 = arith.extf %8 : vector<8x8xbf16> to vector<8x8xf32>
    %c0_10 = arith.constant 0 : index
    %c0_11 = arith.constant 0 : index
    %10 = vector.load %arg8[%c0_10, %c0_11] : memref<8x8xf32, #tpu.memory_space<vmem>>, vector<8x8xf32>
    %11 = arith.mulf %6, %10 : vector<8x8xf32>
    %cst = arith.constant dense<0.000000e+00> : vector<8x8xf32>
    %12 = tpu.matmul %6, %3, %cst {dimension_numbers = #tpu.dot_dimension_numbers<[1], [0], [0], [1], [0, 0, 1, 1], [], []>} : vector<8x8xf32>, vector<8x8xf32>, vector<8x8xf32> -> vector<8x8xf32>
    %c0_12 = arith.constant 0 : index
    %c0_13 = arith.constant 0 : index
    %13 = vector.load %arg9[%c0_12, %c0_13] : memref<8x8xf32, #tpu.memory_space<vmem>>, vector<8x8xf32>
    %14 = arith.mulf %12, %13 : vector<8x8xf32>
    %15 = arith.addf %11, %14 : vector<8x8xf32>
    %c0_14 = arith.constant 0 : index
    %c0_15 = arith.constant 0 : index
    %16 = vector.load %arg10[%c0_14, %c0_15] : memref<8x8xf32, #tpu.memory_space<vmem>>, vector<8x8xf32>
    %17 = arith.mulf %9, %16 : vector<8x8xf32>
    %cst_16 = arith.constant dense<0.000000e+00> : vector<8x8xf32>
    %18 = tpu.matmul %9, %3, %cst_16 {dimension_numbers = #tpu.dot_dimension_numbers<[1], [0], [0], [1], [0, 0, 1, 1], [], []>} : vector<8x8xf32>, vector<8x8xf32>, vector<8x8xf32> -> vector<8x8xf32>
    %c0_17 = arith.constant 0 : index
    %c0_18 = arith.constant 0 : index
    %19 = vector.load %arg11[%c0_17, %c0_18] : memref<8x8xf32, #tpu.memory_space<vmem>>, vector<8x8xf32>
    %20 = arith.mulf %18, %19 : vector<8x8xf32>
    %21 = arith.addf %17, %20 : vector<8x8xf32>
    %22 = arith.truncf %15 : vector<8x8xf32> to vector<8x8xbf16>
    %23 = arith.truncf %21 : vector<8x8xf32> to vector<8x8xbf16>
    %24 = tpu.transpose %23, [1, 0] : vector<8x8xbf16> -> vector<8x8xbf16>
    %cst_19 = arith.constant dense<0.000000e+00> : vector<8x8xf32>
    %25 = tpu.matmul %22, %24, %cst_19 {dimension_numbers = #tpu.dot_dimension_numbers<[1], [0], [0], [1], [0, 0, 1, 1], [], []>} : vector<8x8xbf16>, vector<8x8xbf16>, vector<8x8xf32> -> vector<8x8xf32>
    %cst_20 = arith.constant 0.353553385 : f32
    %26 = vector.broadcast %cst_20 : f32 to vector<8x8xf32>
    %27 = arith.mulf %25, %26 : vector<8x8xf32>
    %c0_21 = arith.constant 0 : index
    %c0_22 = arith.constant 0 : index
    %c0_23 = arith.constant 0 : index
    %28 = vector.load %arg7[%c0_21, %c0_22, %c0_23] : memref<1x1x8xf32, #tpu.memory_space<vmem>>, vector<1x1x8xf32>
    %29 = vector.shape_cast %28 : vector<1x1x8xf32> to vector<1x8xf32>
    %30 = vector.broadcast %29 : vector<1x8xf32> to vector<8x8xf32>
    %31 = arith.addf %27, %30 : vector<8x8xf32>
    %c0_24 = arith.constant 0 : index
    %c0_25 = arith.constant 0 : index
    %32 = vector.load %arg14[%c0_24, %c0_25] : memref<8x1xf32, #tpu.memory_space<vmem>>, vector<8x1xf32>
    %cst_26 = arith.constant dense<0xFF800000> : vector<8xf32>
    %33 = vector.multi_reduction <maximumf>, %31, %cst_26 [1] : vector<8x8xf32> to vector<8xf32>
    %34 = vector.shape_cast %33 : vector<8xf32> to vector<8x1xf32>
    %35 = arith.maximumf %32, %34 : vector<8x1xf32>
    %36 = arith.subf %32, %35 : vector<8x1xf32>
    %37 = math.exp %36 : vector<8x1xf32>
    %38 = vector.broadcast %35 : vector<8x1xf32> to vector<8x8xf32>
    %39 = arith.subf %31, %38 : vector<8x8xf32>
    %40 = math.exp %39 : vector<8x8xf32>
    %c0_27 = arith.constant 0 : index
    %c0_28 = arith.constant 0 : index
    %41 = vector.load %arg15[%c0_27, %c0_28] : memref<8x1xf32, #tpu.memory_space<vmem>>, vector<8x1xf32>
    %42 = arith.mulf %37, %41 : vector<8x1xf32>
    %cst_29 = arith.constant dense<0.000000e+00> : vector<8xf32>
    %43 = vector.multi_reduction <add>, %40, %cst_29 [1] : vector<8x8xf32> to vector<8xf32>
    %44 = vector.shape_cast %43 : vector<8xf32> to vector<8x1xf32>
    %45 = arith.addf %42, %44 : vector<8x1xf32>
    %c0_30 = arith.constant 0 : index
    %c0_31 = arith.constant 0 : index
    %46 = vector.load %arg15[%c0_30, %c0_31] : memref<8x1xf32, #tpu.memory_space<vmem>>, vector<8x1xf32>
    tpu.vector_store %arg15[%c0_30, %c0_31], %45 {strides = array<i32>} : memref<8x1xf32, #tpu.memory_space<vmem>>, vector<8x1xf32>,
    %c0_32 = arith.constant 0 : index
    %c0_33 = arith.constant 0 : index
    %47 = vector.load %arg16[%c0_32, %c0_33] : memref<8x8xf32, #tpu.memory_space<vmem>>, vector<8x8xf32>
    %48 = vector.broadcast %37 : vector<8x1xf32> to vector<8x8xf32>
    %49 = arith.mulf %48, %47 : vector<8x8xf32>
    %50 = arith.truncf %40 : vector<8x8xf32> to vector<8x8xbf16>
    %c0_34 = arith.constant 0 : index
    %c0_35 = arith.constant 0 : index
    %c0_36 = arith.constant 0 : index
    %c0_37 = arith.constant 0 : index
    %51 = vector.load %arg6[%c0_34, %c0_35, %c0_36, %c0_37] : memref<1x1x8x8xbf16, #tpu.memory_space<vmem>>, vector<1x1x8x8xbf16>
    %52 = vector.shape_cast %51 : vector<1x1x8x8xbf16> to vector<8x8xbf16>
    %cst_38 = arith.constant dense<0.000000e+00> : vector<8x8xf32>
    %53 = tpu.matmul %50, %52, %cst_38 {dimension_numbers = #tpu.dot_dimension_numbers<[1], [0], [0], [1], [0, 0, 1, 1], [], []>} : vector<8x8xbf16>, vector<8x8xbf16>, vector<8x8xf32> -> vector<8x8xf32>
    %54 = arith.addf %49, %53 : vector<8x8xf32>
    %c0_39 = arith.constant 0 : index
    %c0_40 = arith.constant 0 : index
    %55 = vector.load %arg16[%c0_39, %c0_40] : memref<8x8xf32, #tpu.memory_space<vmem>>, vector<8x8xf32>
    tpu.vector_store %arg16[%c0_39, %c0_40], %54 {strides = array<i32>} : memref<8x8xf32, #tpu.memory_space<vmem>>, vector<8x8xf32>,
    %c0_41 = arith.constant 0 : index
    %c0_42 = arith.constant 0 : index
    %56 = vector.load %arg14[%c0_41, %c0_42] : memref<8x1xf32, #tpu.memory_space<vmem>>, vector<8x1xf32>
    tpu.vector_store %arg14[%c0_41, %c0_42], %35 {strides = array<i32>} : memref<8x1xf32, #tpu.memory_space<vmem>>, vector<8x1xf32>,
    %c0_i32_43 = arith.constant 0 : i32
    %57 = arith.cmpi eq, %arg3, %c0_i32_43 : i32
    %58 = arith.extui %57 : i1 to i32
    %c0_i32_44 = arith.constant 0 : i32
    %59 = arith.cmpi ne, %58, %c0_i32_44 : i32
    scf.if %59 {
      %c0_45 = arith.constant 0 : index
      %c0_46 = arith.constant 0 : index
      %60 = vector.load %arg16[%c0_45, %c0_46] : memref<8x8xf32, #tpu.memory_space<vmem>>, vector<8x8xf32>
      %c0_47 = arith.constant 0 : index
      %c0_48 = arith.constant 0 : index
      %61 = vector.load %arg15[%c0_47, %c0_48] : memref<8x1xf32, #tpu.memory_space<vmem>>, vector<8x1xf32>
      %62 = tpu.reciprocal %61 {approx = true} : vector<8x1xf32> -> vector<8x1xf32>
      %63 = vector.broadcast %62 : vector<8x1xf32> to vector<8x8xf32>
      %64 = arith.mulf %60, %63 : vector<8x8xf32>
      %65 = arith.truncf %64 : vector<8x8xf32> to vector<8x8xbf16>
      %c0_49 = arith.constant 0 : index
      %c0_50 = arith.constant 0 : index
      %c0_51 = arith.constant 0 : index
      %c0_52 = arith.constant 0 : index
      %66 = vector.load %arg13[%c0_49, %c0_50, %c0_51, %c0_52] : memref<1x1x8x8xbf16, #tpu.memory_space<vmem>>, vector<1x1x8x8xbf16>
      %67 = vector.shape_cast %66 : vector<1x1x8x8xbf16> to vector<8x8xbf16>
      %68 = vector.shape_cast %65 : vector<8x8xbf16> to vector<1x1x8x8xbf16>
      tpu.vector_store %arg13[%c0_49, %c0_50, %c0_51, %c0_52], %68 {strides = array<i32>} : memref<1x1x8x8xbf16, #tpu.memory_space<vmem>>, vector<1x1x8x8xbf16>,
    } else {
    }
    return
  }
  func.func @transform_0(%arg0: i32, %arg1: i32, %arg2: i32, %arg3: i32) -> (i32, i32, i32, i32) {
    %c0_i32 = arith.constant 0 : i32
    %c0_i32_0 = arith.constant 0 : i32
    return %arg0, %arg1, %arg2, %c0_i32 : i32, i32, i32, i32
  }
  func.func @transform_1(%arg0: i32, %arg1: i32, %arg2: i32, %arg3: i32) -> (i32, i32, i32, i32) {
    %c0_i32 = arith.constant 0 : i32
    %c0_i32_0 = arith.constant 0 : i32
    return %arg0, %arg1, %arg3, %c0_i32 : i32, i32, i32, i32
  }
  func.func @transform_2(%arg0: i32, %arg1: i32, %arg2: i32, %arg3: i32) -> (i32, i32, i32, i32) {
    %c0_i32 = arith.constant 0 : i32
    %c0_i32_0 = arith.constant 0 : i32
    return %arg0, %arg1, %arg3, %c0_i32 : i32, i32, i32, i32
  }
  func.func @transform_3(%arg0: i32, %arg1: i32, %arg2: i32, %arg3: i32) -> (i32, i32, i32) {
    %c0_i32 = arith.constant 0 : i32
    %c0_i32_0 = arith.constant 0 : i32
    return %arg0, %c0_i32, %arg3 : i32, i32, i32
  }
  func.func @transform_4(%arg0: i32, %arg1: i32, %arg2: i32, %arg3: i32) -> (i32, i32) {
    %c0_i32 = arith.constant 0 : i32
    %c0_i32_0 = arith.constant 0 : i32
    return %arg2, %c0_i32 : i32, i32
  }
  func.func @transform_5(%arg0: i32, %arg1: i32, %arg2: i32, %arg3: i32) -> (i32, i32) {
    %c0_i32 = arith.constant 0 : i32
    %c0_i32_0 = arith.constant 0 : i32
    return %arg2, %c0_i32 : i32, i32
  }
  func.func @transform_6(%arg0: i32, %arg1: i32, %arg2: i32, %arg3: i32) -> (i32, i32) {
    %c0_i32 = arith.constant 0 : i32
    %c0_i32_0 = arith.constant 0 : i32
    return %arg3, %c0_i32 : i32, i32
  }
  func.func @transform_7(%arg0: i32, %arg1: i32, %arg2: i32, %arg3: i32) -> (i32, i32) {
    %c0_i32 = arith.constant 0 : i32
    %c0_i32_0 = arith.constant 0 : i32
    return %arg3, %c0_i32 : i32, i32
  }
  func.func @transform_8(%arg0: i32, %arg1: i32, %arg2: i32, %arg3: i32) -> (i32, i32) {
    %c0_i32 = arith.constant 0 : i32
    %c0_i32_0 = arith.constant 0 : i32
    %c0_i32_1 = arith.constant 0 : i32
    return %c0_i32, %c0_i32_0 : i32, i32
  }
  func.func @transform_9(%arg0: i32, %arg1: i32, %arg2: i32, %arg3: i32) -> (i32, i32, i32, i32) {
    %c0_i32 = arith.constant 0 : i32
    %c0_i32_0 = arith.constant 0 : i32
    return %arg0, %arg1, %arg2, %c0_i32 : i32, i32, i32, i32
  }
}

module attributes {stable_mosaic.version = 11 : i64} {
  func.func @_ln_mod_linear_kernel(%arg0: i32, %arg1: i32, %arg2: i32, %arg3: memref<1x8x32xf32, #tpu.memory_space<vmem>>, %arg4: memref<1x1x32xf32, #tpu.memory_space<vmem>>, %arg5: memref<1x1x32xf32, #tpu.memory_space<vmem>>, %arg6: memref<32x64xbf16, #tpu.memory_space<vmem>>, %arg7: memref<1x64xf32, #tpu.memory_space<vmem>>, %arg8: memref<1x8x64xbf16, #tpu.memory_space<vmem>>) attributes {dimension_semantics = [#tpu.dimension_semantics<parallel>, #tpu.dimension_semantics<parallel>, #tpu.dimension_semantics<parallel>], iteration_bounds = array<i64: 2, 1, 1>, scalar_prefetch = 0 : i64, scratch_operands = 0 : i64, tpu.core_type = #tpu.core_type<tc>, window_params = [{transform_indices = @transform_0, window_bounds = array<i64: 1, 8, 32>}, {transform_indices = @transform_1, window_bounds = array<i64: 1, 1, 32>}, {transform_indices = @transform_2, window_bounds = array<i64: 1, 1, 32>}, {transform_indices = @transform_3, window_bounds = array<i64: 32, 64>}, {transform_indices = @transform_4, window_bounds = array<i64: 1, 64>}, {transform_indices = @transform_5, window_bounds = array<i64: 1, 8, 64>}]} {
    %c0 = arith.constant 0 : index
    %c0_0 = arith.constant 0 : index
    %c0_1 = arith.constant 0 : index
    %0 = vector.load %arg3[%c0, %c0_0, %c0_1] : memref<1x8x32xf32, #tpu.memory_space<vmem>>, vector<1x8x32xf32>
    %1 = vector.shape_cast %0 : vector<1x8x32xf32> to vector<8x32xf32>
    %cst = arith.constant dense<0.000000e+00> : vector<8xf32>
    %2 = vector.multi_reduction <add>, %1, %cst [1] : vector<8x32xf32> to vector<8xf32>
    %3 = vector.shape_cast %2 : vector<8xf32> to vector<8x1xf32>
    %cst_2 = arith.constant 3.200000e+01 : f32
    %4 = vector.broadcast %cst_2 : f32 to vector<8x1xf32>
    %5 = arith.divf %3, %4 : vector<8x1xf32>
    %6 = vector.broadcast %5 : vector<8x1xf32> to vector<8x32xf32>
    %7 = arith.subf %1, %6 : vector<8x32xf32>
    %8 = arith.mulf %7, %7 : vector<8x32xf32>
    %cst_3 = arith.constant dense<0.000000e+00> : vector<8xf32>
    %9 = vector.multi_reduction <add>, %8, %cst_3 [1] : vector<8x32xf32> to vector<8xf32>
    %10 = vector.shape_cast %9 : vector<8xf32> to vector<8x1xf32>
    %cst_4 = arith.constant 3.200000e+01 : f32
    %11 = vector.broadcast %cst_4 : f32 to vector<8x1xf32>
    %12 = arith.divf %10, %11 : vector<8x1xf32>
    %13 = vector.broadcast %5 : vector<8x1xf32> to vector<8x32xf32>
    %14 = arith.subf %1, %13 : vector<8x32xf32>
    %cst_5 = arith.constant 9.99999997E-7 : f32
    %15 = vector.broadcast %cst_5 : f32 to vector<8x1xf32>
    %16 = arith.addf %12, %15 : vector<8x1xf32>
    %17 = math.rsqrt %16 : vector<8x1xf32>
    %18 = vector.broadcast %17 : vector<8x1xf32> to vector<8x32xf32>
    %19 = arith.mulf %14, %18 : vector<8x32xf32>
    %c0_6 = arith.constant 0 : index
    %c0_7 = arith.constant 0 : index
    %c0_8 = arith.constant 0 : index
    %20 = vector.load %arg4[%c0_6, %c0_7, %c0_8] : memref<1x1x32xf32, #tpu.memory_space<vmem>>, vector<1x1x32xf32>
    %21 = vector.shape_cast %20 : vector<1x1x32xf32> to vector<1x32xf32>
    %cst_9 = arith.constant 1.000000e+00 : f32
    %22 = vector.broadcast %cst_9 : f32 to vector<1x32xf32>
    %23 = arith.addf %22, %21 : vector<1x32xf32>
    %24 = vector.broadcast %23 : vector<1x32xf32> to vector<8x32xf32>
    %25 = arith.mulf %19, %24 : vector<8x32xf32>
    %c0_10 = arith.constant 0 : index
    %c0_11 = arith.constant 0 : index
    %c0_12 = arith.constant 0 : index
    %26 = vector.load %arg5[%c0_10, %c0_11, %c0_12] : memref<1x1x32xf32, #tpu.memory_space<vmem>>, vector<1x1x32xf32>
    %27 = vector.shape_cast %26 : vector<1x1x32xf32> to vector<1x32xf32>
    %28 = vector.broadcast %27 : vector<1x32xf32> to vector<8x32xf32>
    %29 = arith.addf %25, %28 : vector<8x32xf32>
    %30 = arith.truncf %29 : vector<8x32xf32> to vector<8x32xbf16>
    %c0_13 = arith.constant 0 : index
    %c0_14 = arith.constant 0 : index
    %31 = vector.load %arg6[%c0_13, %c0_14] : memref<32x64xbf16, #tpu.memory_space<vmem>>, vector<32x64xbf16>
    %cst_15 = arith.constant dense<0.000000e+00> : vector<8x64xf32>
    %32 = tpu.matmul %30, %31, %cst_15 {dimension_numbers = #tpu.dot_dimension_numbers<[1], [0], [0], [1], [0, 0, 1, 1], [], []>} : vector<8x32xbf16>, vector<32x64xbf16>, vector<8x64xf32> -> vector<8x64xf32>
    %c0_16 = arith.constant 0 : index
    %c0_17 = arith.constant 0 : index
    %33 = vector.load %arg7[%c0_16, %c0_17] : memref<1x64xf32, #tpu.memory_space<vmem>>, vector<1x64xf32>
    %34 = vector.broadcast %33 : vector<1x64xf32> to vector<8x64xf32>
    %35 = arith.addf %32, %34 : vector<8x64xf32>
    %36 = arith.mulf %35, %35 : vector<8x64xf32>
    %37 = arith.mulf %35, %36 : vector<8x64xf32>
    %cst_18 = arith.constant 4.471500e-02 : f32
    %38 = vector.broadcast %cst_18 : f32 to vector<8x64xf32>
    %39 = arith.mulf %38, %37 : vector<8x64xf32>
    %40 = arith.addf %35, %39 : vector<8x64xf32>
    %cst_19 = arith.constant 0.797884583 : f32
    %41 = vector.broadcast %cst_19 : f32 to vector<8x64xf32>
    %42 = arith.mulf %41, %40 : vector<8x64xf32>
    %43 = math.tanh %42 : vector<8x64xf32>
    %cst_20 = arith.constant 1.000000e+00 : f32
    %44 = vector.broadcast %cst_20 : f32 to vector<8x64xf32>
    %45 = arith.addf %44, %43 : vector<8x64xf32>
    %cst_21 = arith.constant 5.000000e-01 : f32
    %46 = vector.broadcast %cst_21 : f32 to vector<8x64xf32>
    %47 = arith.mulf %46, %45 : vector<8x64xf32>
    %48 = arith.mulf %35, %47 : vector<8x64xf32>
    %49 = arith.truncf %48 : vector<8x64xf32> to vector<8x64xbf16>
    %c0_22 = arith.constant 0 : index
    %c0_23 = arith.constant 0 : index
    %c0_24 = arith.constant 0 : index
    %50 = vector.load %arg8[%c0_22, %c0_23, %c0_24] : memref<1x8x64xbf16, #tpu.memory_space<vmem>>, vector<1x8x64xbf16>
    %51 = vector.shape_cast %50 : vector<1x8x64xbf16> to vector<8x64xbf16>
    %52 = vector.shape_cast %49 : vector<8x64xbf16> to vector<1x8x64xbf16>
    tpu.vector_store %arg8[%c0_22, %c0_23, %c0_24], %52 {strides = array<i32>} : memref<1x8x64xbf16, #tpu.memory_space<vmem>>, vector<1x8x64xbf16>,
    return
  }
  func.func @transform_0(%arg0: i32, %arg1: i32, %arg2: i32) -> (i32, i32, i32) {
    %c0_i32 = arith.constant 0 : i32
    %c0_i32_0 = arith.constant 0 : i32
    return %arg0, %arg1, %c0_i32 : i32, i32, i32
  }
  func.func @transform_1(%arg0: i32, %arg1: i32, %arg2: i32) -> (i32, i32, i32) {
    %c0_i32 = arith.constant 0 : i32
    %c0_i32_0 = arith.constant 0 : i32
    %c0_i32_1 = arith.constant 0 : i32
    return %arg0, %c0_i32, %c0_i32_0 : i32, i32, i32
  }
  func.func @transform_2(%arg0: i32, %arg1: i32, %arg2: i32) -> (i32, i32, i32) {
    %c0_i32 = arith.constant 0 : i32
    %c0_i32_0 = arith.constant 0 : i32
    %c0_i32_1 = arith.constant 0 : i32
    return %arg0, %c0_i32, %c0_i32_0 : i32, i32, i32
  }
  func.func @transform_3(%arg0: i32, %arg1: i32, %arg2: i32) -> (i32, i32) {
    %c0_i32 = arith.constant 0 : i32
    %c0_i32_0 = arith.constant 0 : i32
    return %c0_i32, %arg2 : i32, i32
  }
  func.func @transform_4(%arg0: i32, %arg1: i32, %arg2: i32) -> (i32, i32) {
    %c0_i32 = arith.constant 0 : i32
    %c0_i32_0 = arith.constant 0 : i32
    return %c0_i32, %arg2 : i32, i32
  }
  func.func @transform_5(%arg0: i32, %arg1: i32, %arg2: i32) -> (i32, i32, i32) {
    %c0_i32 = arith.constant 0 : i32
    return %arg0, %arg1, %arg2 : i32, i32, i32
  }
}

module attributes {stable_mosaic.version = 11 : i64} {
  func.func @_gated_res_kernel(%arg0: i32, %arg1: i32, %arg2: i32, %arg3: i32, %arg4: memref<1x8x64xbf16, #tpu.memory_space<vmem>>, %arg5: memref<64x32xbf16, #tpu.memory_space<vmem>>, %arg6: memref<1x32xf32, #tpu.memory_space<vmem>>, %arg7: memref<1x1x32xf32, #tpu.memory_space<vmem>>, %arg8: memref<1x8x32xf32, #tpu.memory_space<vmem>>, %arg9: memref<1x8x32xf32, #tpu.memory_space<vmem>>, %arg10: memref<8x32xf32, #tpu.memory_space<vmem>>) attributes {dimension_semantics = [#tpu.dimension_semantics<parallel>, #tpu.dimension_semantics<parallel>, #tpu.dimension_semantics<parallel>, #tpu.dimension_semantics<arbitrary>], iteration_bounds = array<i64: 2, 1, 1, 1>, scalar_prefetch = 0 : i64, scratch_operands = 1 : i64, tpu.core_type = #tpu.core_type<tc>, window_params = [{transform_indices = @transform_0, window_bounds = array<i64: 1, 8, 64>}, {transform_indices = @transform_1, window_bounds = array<i64: 64, 32>}, {transform_indices = @transform_2, window_bounds = array<i64: 1, 32>}, {transform_indices = @transform_3, window_bounds = array<i64: 1, 1, 32>}, {transform_indices = @transform_4, window_bounds = array<i64: 1, 8, 32>}, {transform_indices = @transform_5, window_bounds = array<i64: 1, 8, 32>}]} {
    %c0_i32 = arith.constant 0 : i32
    %0 = arith.cmpi eq, %arg3, %c0_i32 : i32
    %1 = arith.extui %0 : i1 to i32
    %c0_i32_0 = arith.constant 0 : i32
    %2 = arith.cmpi ne, %1, %c0_i32_0 : i32
    scf.if %2 {
      %cst_11 = arith.constant 0.000000e+00 : f32
      %13 = vector.broadcast %cst_11 : f32 to vector<8x32xf32>
      %c0_12 = arith.constant 0 : index
      %c0_13 = arith.constant 0 : index
      %14 = vector.load %arg10[%c0_12, %c0_13] : memref<8x32xf32, #tpu.memory_space<vmem>>, vector<8x32xf32>
      tpu.vector_store %arg10[%c0_12, %c0_13], %13 {strides = array<i32>} : memref<8x32xf32, #tpu.memory_space<vmem>>, vector<8x32xf32>,
    } else {
    }
    %c0 = arith.constant 0 : index
    %c0_1 = arith.constant 0 : index
    %3 = vector.load %arg10[%c0, %c0_1] : memref<8x32xf32, #tpu.memory_space<vmem>>, vector<8x32xf32>
    %c0_2 = arith.constant 0 : index
    %c0_3 = arith.constant 0 : index
    %c0_4 = arith.constant 0 : index
    %4 = vector.load %arg4[%c0_2, %c0_3, %c0_4] : memref<1x8x64xbf16, #tpu.memory_space<vmem>>, vector<1x8x64xbf16>
    %5 = vector.shape_cast %4 : vector<1x8x64xbf16> to vector<8x64xbf16>
    %c0_5 = arith.constant 0 : index
    %c0_6 = arith.constant 0 : index
    %6 = vector.load %arg5[%c0_5, %c0_6] : memref<64x32xbf16, #tpu.memory_space<vmem>>, vector<64x32xbf16>
    %cst = arith.constant dense<0.000000e+00> : vector<8x32xf32>
    %7 = tpu.matmul %5, %6, %cst {dimension_numbers = #tpu.dot_dimension_numbers<[1], [0], [0], [1], [0, 0, 1, 1], [], []>} : vector<8x64xbf16>, vector<64x32xbf16>, vector<8x32xf32> -> vector<8x32xf32>
    %8 = arith.addf %3, %7 : vector<8x32xf32>
    %c0_7 = arith.constant 0 : index
    %c0_8 = arith.constant 0 : index
    %9 = vector.load %arg10[%c0_7, %c0_8] : memref<8x32xf32, #tpu.memory_space<vmem>>, vector<8x32xf32>
    tpu.vector_store %arg10[%c0_7, %c0_8], %8 {strides = array<i32>} : memref<8x32xf32, #tpu.memory_space<vmem>>, vector<8x32xf32>,
    %c0_i32_9 = arith.constant 0 : i32
    %10 = arith.cmpi eq, %arg3, %c0_i32_9 : i32
    %11 = arith.extui %10 : i1 to i32
    %c0_i32_10 = arith.constant 0 : i32
    %12 = arith.cmpi ne, %11, %c0_i32_10 : i32
    scf.if %12 {
      %c0_11 = arith.constant 0 : index
      %c0_12 = arith.constant 0 : index
      %13 = vector.load %arg10[%c0_11, %c0_12] : memref<8x32xf32, #tpu.memory_space<vmem>>, vector<8x32xf32>
      %c0_13 = arith.constant 0 : index
      %c0_14 = arith.constant 0 : index
      %14 = vector.load %arg6[%c0_13, %c0_14] : memref<1x32xf32, #tpu.memory_space<vmem>>, vector<1x32xf32>
      %15 = vector.broadcast %14 : vector<1x32xf32> to vector<8x32xf32>
      %16 = arith.addf %13, %15 : vector<8x32xf32>
      %c0_15 = arith.constant 0 : index
      %c0_16 = arith.constant 0 : index
      %c0_17 = arith.constant 0 : index
      %17 = vector.load %arg8[%c0_15, %c0_16, %c0_17] : memref<1x8x32xf32, #tpu.memory_space<vmem>>, vector<1x8x32xf32>
      %18 = vector.shape_cast %17 : vector<1x8x32xf32> to vector<8x32xf32>
      %c0_18 = arith.constant 0 : index
      %c0_19 = arith.constant 0 : index
      %c0_20 = arith.constant 0 : index
      %19 = vector.load %arg7[%c0_18, %c0_19, %c0_20] : memref<1x1x32xf32, #tpu.memory_space<vmem>>, vector<1x1x32xf32>
      %20 = vector.shape_cast %19 : vector<1x1x32xf32> to vector<1x32xf32>
      %21 = vector.broadcast %20 : vector<1x32xf32> to vector<8x32xf32>
      %22 = arith.mulf %21, %16 : vector<8x32xf32>
      %23 = arith.addf %18, %22 : vector<8x32xf32>
      %c0_21 = arith.constant 0 : index
      %c0_22 = arith.constant 0 : index
      %c0_23 = arith.constant 0 : index
      %24 = vector.load %arg9[%c0_21, %c0_22, %c0_23] : memref<1x8x32xf32, #tpu.memory_space<vmem>>, vector<1x8x32xf32>
      %25 = vector.shape_cast %24 : vector<1x8x32xf32> to vector<8x32xf32>
      %26 = vector.shape_cast %23 : vector<8x32xf32> to vector<1x8x32xf32>
      tpu.vector_store %arg9[%c0_21, %c0_22, %c0_23], %26 {strides = array<i32>} : memref<1x8x32xf32, #tpu.memory_space<vmem>>, vector<1x8x32xf32>,
    } else {
    }
    return
  }
  func.func @transform_0(%arg0: i32, %arg1: i32, %arg2: i32, %arg3: i32) -> (i32, i32, i32) {
    %c0_i32 = arith.constant 0 : i32
    return %arg0, %arg1, %arg3 : i32, i32, i32
  }
  func.func @transform_1(%arg0: i32, %arg1: i32, %arg2: i32, %arg3: i32) -> (i32, i32) {
    %c0_i32 = arith.constant 0 : i32
    return %arg3, %arg2 : i32, i32
  }
  func.func @transform_2(%arg0: i32, %arg1: i32, %arg2: i32, %arg3: i32) -> (i32, i32) {
    %c0_i32 = arith.constant 0 : i32
    %c0_i32_0 = arith.constant 0 : i32
    return %c0_i32, %arg2 : i32, i32
  }
  func.func @transform_3(%arg0: i32, %arg1: i32, %arg2: i32, %arg3: i32) -> (i32, i32, i32) {
    %c0_i32 = arith.constant 0 : i32
    %c0_i32_0 = arith.constant 0 : i32
    return %arg0, %c0_i32, %arg2 : i32, i32, i32
  }
  func.func @transform_4(%arg0: i32, %arg1: i32, %arg2: i32, %arg3: i32) -> (i32, i32, i32) {
    %c0_i32 = arith.constant 0 : i32
    return %arg0, %arg1, %arg2 : i32, i32, i32
  }
  func.func @transform_5(%arg0: i32, %arg1: i32, %arg2: i32, %arg3: i32) -> (i32, i32, i32) {
    %c0_i32 = arith.constant 0 : i32
    return %arg0, %arg1, %arg2 : i32, i32, i32
  }
}

module attributes {stable_mosaic.version = 11 : i64} {
  func.func @_gated_res_kernel(%arg0: i32, %arg1: i32, %arg2: i32, %arg3: i32, %arg4: memref<1x8x32xbf16, #tpu.memory_space<vmem>>, %arg5: memref<32x32xbf16, #tpu.memory_space<vmem>>, %arg6: memref<1x32xf32, #tpu.memory_space<vmem>>, %arg7: memref<1x1x32xf32, #tpu.memory_space<vmem>>, %arg8: memref<1x8x32xf32, #tpu.memory_space<vmem>>, %arg9: memref<1x8x32xf32, #tpu.memory_space<vmem>>, %arg10: memref<8x32xf32, #tpu.memory_space<vmem>>) attributes {dimension_semantics = [#tpu.dimension_semantics<parallel>, #tpu.dimension_semantics<parallel>, #tpu.dimension_semantics<parallel>, #tpu.dimension_semantics<arbitrary>], iteration_bounds = array<i64: 2, 1, 1, 1>, scalar_prefetch = 0 : i64, scratch_operands = 1 : i64, tpu.core_type = #tpu.core_type<tc>, window_params = [{transform_indices = @transform_0, window_bounds = array<i64: 1, 8, 32>}, {transform_indices = @transform_1, window_bounds = array<i64: 32, 32>}, {transform_indices = @transform_2, window_bounds = array<i64: 1, 32>}, {transform_indices = @transform_3, window_bounds = array<i64: 1, 1, 32>}, {transform_indices = @transform_4, window_bounds = array<i64: 1, 8, 32>}, {transform_indices = @transform_5, window_bounds = array<i64: 1, 8, 32>}]} {
    %c0_i32 = arith.constant 0 : i32
    %0 = arith.cmpi eq, %arg3, %c0_i32 : i32
    %1 = arith.extui %0 : i1 to i32
    %c0_i32_0 = arith.constant 0 : i32
    %2 = arith.cmpi ne, %1, %c0_i32_0 : i32
    scf.if %2 {
      %cst_11 = arith.constant 0.000000e+00 : f32
      %13 = vector.broadcast %cst_11 : f32 to vector<8x32xf32>
      %c0_12 = arith.constant 0 : index
      %c0_13 = arith.constant 0 : index
      %14 = vector.load %arg10[%c0_12, %c0_13] : memref<8x32xf32, #tpu.memory_space<vmem>>, vector<8x32xf32>
      tpu.vector_store %arg10[%c0_12, %c0_13], %13 {strides = array<i32>} : memref<8x32xf32, #tpu.memory_space<vmem>>, vector<8x32xf32>,
    } else {
    }
    %c0 = arith.constant 0 : index
    %c0_1 = arith.constant 0 : index
    %3 = vector.load %arg10[%c0, %c0_1] : memref<8x32xf32, #tpu.memory_space<vmem>>, vector<8x32xf32>
    %c0_2 = arith.constant 0 : index
    %c0_3 = arith.constant 0 : index
    %c0_4 = arith.constant 0 : index
    %4 = vector.load %arg4[%c0_2, %c0_3, %c0_4] : memref<1x8x32xbf16, #tpu.memory_space<vmem>>, vector<1x8x32xbf16>
    %5 = vector.shape_cast %4 : vector<1x8x32xbf16> to vector<8x32xbf16>
    %c0_5 = arith.constant 0 : index
    %c0_6 = arith.constant 0 : index
    %6 = vector.load %arg5[%c0_5, %c0_6] : memref<32x32xbf16, #tpu.memory_space<vmem>>, vector<32x32xbf16>
    %cst = arith.constant dense<0.000000e+00> : vector<8x32xf32>
    %7 = tpu.matmul %5, %6, %cst {dimension_numbers = #tpu.dot_dimension_numbers<[1], [0], [0], [1], [0, 0, 1, 1], [], []>} : vector<8x32xbf16>, vector<32x32xbf16>, vector<8x32xf32> -> vector<8x32xf32>
    %8 = arith.addf %3, %7 : vector<8x32xf32>
    %c0_7 = arith.constant 0 : index
    %c0_8 = arith.constant 0 : index
    %9 = vector.load %arg10[%c0_7, %c0_8] : memref<8x32xf32, #tpu.memory_space<vmem>>, vector<8x32xf32>
    tpu.vector_store %arg10[%c0_7, %c0_8], %8 {strides = array<i32>} : memref<8x32xf32, #tpu.memory_space<vmem>>, vector<8x32xf32>,
    %c0_i32_9 = arith.constant 0 : i32
    %10 = arith.cmpi eq, %arg3, %c0_i32_9 : i32
    %11 = arith.extui %10 : i1 to i32
    %c0_i32_10 = arith.constant 0 : i32
    %12 = arith.cmpi ne, %11, %c0_i32_10 : i32
    scf.if %12 {
      %c0_11 = arith.constant 0 : index
      %c0_12 = arith.constant 0 : index
      %13 = vector.load %arg10[%c0_11, %c0_12] : memref<8x32xf32, #tpu.memory_space<vmem>>, vector<8x32xf32>
      %c0_13 = arith.constant 0 : index
      %c0_14 = arith.constant 0 : index
      %14 = vector.load %arg6[%c0_13, %c0_14] : memref<1x32xf32, #tpu.memory_space<vmem>>, vector<1x32xf32>
      %15 = vector.broadcast %14 : vector<1x32xf32> to vector<8x32xf32>
      %16 = arith.addf %13, %15 : vector<8x32xf32>
      %c0_15 = arith.constant 0 : index
      %c0_16 = arith.constant 0 : index
      %c0_17 = arith.constant 0 : index
      %17 = vector.load %arg8[%c0_15, %c0_16, %c0_17] : memref<1x8x32xf32, #tpu.memory_space<vmem>>, vector<1x8x32xf32>
      %18 = vector.shape_cast %17 : vector<1x8x32xf32> to vector<8x32xf32>
      %c0_18 = arith.constant 0 : index
      %c0_19 = arith.constant 0 : index
      %c0_20 = arith.constant 0 : index
      %19 = vector.load %arg7[%c0_18, %c0_19, %c0_20] : memref<1x1x32xf32, #tpu.memory_space<vmem>>, vector<1x1x32xf32>
      %20 = vector.shape_cast %19 : vector<1x1x32xf32> to vector<1x32xf32>
      %21 = vector.broadcast %20 : vector<1x32xf32> to vector<8x32xf32>
      %22 = arith.mulf %21, %16 : vector<8x32xf32>
      %23 = arith.addf %18, %22 : vector<8x32xf32>
      %c0_21 = arith.constant 0 : index
      %c0_22 = arith.constant 0 : index
      %c0_23 = arith.constant 0 : index
      %24 = vector.load %arg9[%c0_21, %c0_22, %c0_23] : memref<1x8x32xf32, #tpu.memory_space<vmem>>, vector<1x8x32xf32>
      %25 = vector.shape_cast %24 : vector<1x8x32xf32> to vector<8x32xf32>
      %26 = vector.shape_cast %23 : vector<8x32xf32> to vector<1x8x32xf32>
      tpu.vector_store %arg9[%c0_21, %c0_22, %c0_23], %26 {strides = array<i32>} : memref<1x8x32xf32, #tpu.memory_space<vmem>>, vector<1x8x32xf32>,
    } else {
    }
    return
  }
  func.func @transform_0(%arg0: i32, %arg1: i32, %arg2: i32, %arg3: i32) -> (i32, i32, i32) {
    %c0_i32 = arith.constant 0 : i32
    return %arg0, %arg1, %arg3 : i32, i32, i32
  }
  func.func @transform_1(%arg0: i32, %arg1: i32, %arg2: i32, %arg3: i32) -> (i32, i32) {
    %c0_i32 = arith.constant 0 : i32
    return %arg3, %arg2 : i32, i32
  }
  func.func @transform_2(%arg0: i32, %arg1: i32, %arg2: i32, %arg3: i32) -> (i32, i32) {
    %c0_i32 = arith.constant 0 : i32
    %c0_i32_0 = arith.constant 0 : i32
    return %c0_i32, %arg2 : i32, i32
  }
  func.func @transform_3(%arg0: i32, %arg1: i32, %arg2: i32, %arg3: i32) -> (i32, i32, i32) {
    %c0_i32 = arith.constant 0 : i32
    %c0_i32_0 = arith.constant 0 : i32
    return %arg0, %c0_i32, %arg2 : i32, i32, i32
  }
  func.func @transform_4(%arg0: i32, %arg1: i32, %arg2: i32, %arg3: i32) -> (i32, i32, i32) {
    %c0_i32 = arith.constant 0 : i32
    return %arg0, %arg1, %arg2 : i32, i32, i32
  }
  func.func @transform_5(%arg0: i32, %arg1: i32, %arg2: i32, %arg3: i32) -> (i32, i32, i32) {
    %c0_i32 = arith.constant 0 : i32
    return %arg0, %arg1, %arg2 : i32, i32, i32
  }
}

module attributes {stable_mosaic.version = 11 : i64} {
  func.func @_ln_mod_linear_kernel(%arg0: i32, %arg1: i32, %arg2: i32, %arg3: memref<1x8x32xf32, #tpu.memory_space<vmem>>, %arg4: memref<1x1x32xf32, #tpu.memory_space<vmem>>, %arg5: memref<1x1x32xf32, #tpu.memory_space<vmem>>, %arg6: memref<32x32xbf16, #tpu.memory_space<vmem>>, %arg7: memref<1x32xf32, #tpu.memory_space<vmem>>, %arg8: memref<1x8x32xf32, #tpu.memory_space<vmem>>) attributes {dimension_semantics = [#tpu.dimension_semantics<parallel>, #tpu.dimension_semantics<parallel>, #tpu.dimension_semantics<parallel>], iteration_bounds = array<i64: 2, 1, 1>, scalar_prefetch = 0 : i64, scratch_operands = 0 : i64, tpu.core_type = #tpu.core_type<tc>, window_params = [{transform_indices = @transform_0, window_bounds = array<i64: 1, 8, 32>}, {transform_indices = @transform_1, window_bounds = array<i64: 1, 1, 32>}, {transform_indices = @transform_2, window_bounds = array<i64: 1, 1, 32>}, {transform_indices = @transform_3, window_bounds = array<i64: 32, 32>}, {transform_indices = @transform_4, window_bounds = array<i64: 1, 32>}, {transform_indices = @transform_5, window_bounds = array<i64: 1, 8, 32>}]} {
    %c0 = arith.constant 0 : index
    %c0_0 = arith.constant 0 : index
    %c0_1 = arith.constant 0 : index
    %0 = vector.load %arg3[%c0, %c0_0, %c0_1] : memref<1x8x32xf32, #tpu.memory_space<vmem>>, vector<1x8x32xf32>
    %1 = vector.shape_cast %0 : vector<1x8x32xf32> to vector<8x32xf32>
    %cst = arith.constant dense<0.000000e+00> : vector<8xf32>
    %2 = vector.multi_reduction <add>, %1, %cst [1] : vector<8x32xf32> to vector<8xf32>
    %3 = vector.shape_cast %2 : vector<8xf32> to vector<8x1xf32>
    %cst_2 = arith.constant 3.200000e+01 : f32
    %4 = vector.broadcast %cst_2 : f32 to vector<8x1xf32>
    %5 = arith.divf %3, %4 : vector<8x1xf32>
    %6 = vector.broadcast %5 : vector<8x1xf32> to vector<8x32xf32>
    %7 = arith.subf %1, %6 : vector<8x32xf32>
    %8 = arith.mulf %7, %7 : vector<8x32xf32>
    %cst_3 = arith.constant dense<0.000000e+00> : vector<8xf32>
    %9 = vector.multi_reduction <add>, %8, %cst_3 [1] : vector<8x32xf32> to vector<8xf32>
    %10 = vector.shape_cast %9 : vector<8xf32> to vector<8x1xf32>
    %cst_4 = arith.constant 3.200000e+01 : f32
    %11 = vector.broadcast %cst_4 : f32 to vector<8x1xf32>
    %12 = arith.divf %10, %11 : vector<8x1xf32>
    %13 = vector.broadcast %5 : vector<8x1xf32> to vector<8x32xf32>
    %14 = arith.subf %1, %13 : vector<8x32xf32>
    %cst_5 = arith.constant 9.99999997E-7 : f32
    %15 = vector.broadcast %cst_5 : f32 to vector<8x1xf32>
    %16 = arith.addf %12, %15 : vector<8x1xf32>
    %17 = math.rsqrt %16 : vector<8x1xf32>
    %18 = vector.broadcast %17 : vector<8x1xf32> to vector<8x32xf32>
    %19 = arith.mulf %14, %18 : vector<8x32xf32>
    %c0_6 = arith.constant 0 : index
    %c0_7 = arith.constant 0 : index
    %c0_8 = arith.constant 0 : index
    %20 = vector.load %arg4[%c0_6, %c0_7, %c0_8] : memref<1x1x32xf32, #tpu.memory_space<vmem>>, vector<1x1x32xf32>
    %21 = vector.shape_cast %20 : vector<1x1x32xf32> to vector<1x32xf32>
    %cst_9 = arith.constant 1.000000e+00 : f32
    %22 = vector.broadcast %cst_9 : f32 to vector<1x32xf32>
    %23 = arith.addf %22, %21 : vector<1x32xf32>
    %24 = vector.broadcast %23 : vector<1x32xf32> to vector<8x32xf32>
    %25 = arith.mulf %19, %24 : vector<8x32xf32>
    %c0_10 = arith.constant 0 : index
    %c0_11 = arith.constant 0 : index
    %c0_12 = arith.constant 0 : index
    %26 = vector.load %arg5[%c0_10, %c0_11, %c0_12] : memref<1x1x32xf32, #tpu.memory_space<vmem>>, vector<1x1x32xf32>
    %27 = vector.shape_cast %26 : vector<1x1x32xf32> to vector<1x32xf32>
    %28 = vector.broadcast %27 : vector<1x32xf32> to vector<8x32xf32>
    %29 = arith.addf %25, %28 : vector<8x32xf32>
    %30 = arith.truncf %29 : vector<8x32xf32> to vector<8x32xbf16>
    %c0_13 = arith.constant 0 : index
    %c0_14 = arith.constant 0 : index
    %31 = vector.load %arg6[%c0_13, %c0_14] : memref<32x32xbf16, #tpu.memory_space<vmem>>, vector<32x32xbf16>
    %cst_15 = arith.constant dense<0.000000e+00> : vector<8x32xf32>
    %32 = tpu.matmul %30, %31, %cst_15 {dimension_numbers = #tpu.dot_dimension_numbers<[1], [0], [0], [1], [0, 0, 1, 1], [], []>} : vector<8x32xbf16>, vector<32x32xbf16>, vector<8x32xf32> -> vector<8x32xf32>
    %c0_16 = arith.constant 0 : index
    %c0_17 = arith.constant 0 : index
    %33 = vector.load %arg7[%c0_16, %c0_17] : memref<1x32xf32, #tpu.memory_space<vmem>>, vector<1x32xf32>
    %34 = vector.broadcast %33 : vector<1x32xf32> to vector<8x32xf32>
    %35 = arith.addf %32, %34 : vector<8x32xf32>
    %c0_18 = arith.constant 0 : index
    %c0_19 = arith.constant 0 : index
    %c0_20 = arith.constant 0 : index
    %36 = vector.load %arg8[%c0_18, %c0_19, %c0_20] : memref<1x8x32xf32, #tpu.memory_space<vmem>>, vector<1x8x32xf32>
    %37 = vector.shape_cast %36 : vector<1x8x32xf32> to vector<8x32xf32>
    %38 = vector.shape_cast %35 : vector<8x32xf32> to vector<1x8x32xf32>
    tpu.vector_store %arg8[%c0_18, %c0_19, %c0_20], %38 {strides = array<i32>} : memref<1x8x32xf32, #tpu.memory_space<vmem>>, vector<1x8x32xf32>,
    return
  }
  func.func @transform_0(%arg0: i32, %arg1: i32, %arg2: i32) -> (i32, i32, i32) {
    %c0_i32 = arith.constant 0 : i32
    %c0_i32_0 = arith.constant 0 : i32
    return %arg0, %arg1, %c0_i32 : i32, i32, i32
  }
  func.func @transform_1(%arg0: i32, %arg1: i32, %arg2: i32) -> (i32, i32, i32) {
    %c0_i32 = arith.constant 0 : i32
    %c0_i32_0 = arith.constant 0 : i32
    %c0_i32_1 = arith.constant 0 : i32
    return %arg0, %c0_i32, %c0_i32_0 : i32, i32, i32
  }
  func.func @transform_2(%arg0: i32, %arg1: i32, %arg2: i32) -> (i32, i32, i32) {
    %c0_i32 = arith.constant 0 : i32
    %c0_i32_0 = arith.constant 0 : i32
    %c0_i32_1 = arith.constant 0 : i32
    return %arg0, %c0_i32, %c0_i32_0 : i32, i32, i32
  }
  func.func @transform_3(%arg0: i32, %arg1: i32, %arg2: i32) -> (i32, i32) {
    %c0_i32 = arith.constant 0 : i32
    %c0_i32_0 = arith.constant 0 : i32
    return %c0_i32, %arg2 : i32, i32
  }
  func.func @transform_4(%arg0: i32, %arg1: i32, %arg2: i32) -> (i32, i32) {
    %c0_i32 = arith.constant 0 : i32
    %c0_i32_0 = arith.constant 0 : i32
    return %c0_i32, %arg2 : i32, i32
  }
  func.func @transform_5(%arg0: i32, %arg1: i32, %arg2: i32) -> (i32, i32, i32) {
    %c0_i32 = arith.constant 0 : i32
    return %arg0, %arg1, %arg2 : i32, i32, i32
  }
}

module attributes {stable_mosaic.version = 11 : i64} {
  func.func @_conv_rows_kernel(%arg0: i32, %arg1: memref<1x8x48xf32, #tpu.memory_space<vmem>>, %arg2: memref<144x64xbf16, #tpu.memory_space<vmem>>, %arg3: memref<1x64xf32, #tpu.memory_space<vmem>>, %arg4: memref<1x8x64xbf16, #tpu.memory_space<vmem>>) attributes {dimension_semantics = [#tpu.dimension_semantics<parallel>], iteration_bounds = array<i64: 2>, scalar_prefetch = 0 : i64, scratch_operands = 0 : i64, tpu.core_type = #tpu.core_type<tc>, window_params = [{transform_indices = @transform_0, window_bounds = array<i64: 1, 8, 48>}, {pipeline_mode = #tpu.pipeline_mode<synchronous>, transform_indices = @transform_1, window_bounds = array<i64: 144, 64>}, {pipeline_mode = #tpu.pipeline_mode<synchronous>, transform_indices = @transform_2, window_bounds = array<i64: 1, 64>}, {transform_indices = @transform_3, window_bounds = array<i64: 1, 8, 64>}]} {
    %c0 = arith.constant 0 : index
    %c0_0 = arith.constant 0 : index
    %c0_1 = arith.constant 0 : index
    %0 = vector.load %arg1[%c0, %c0_0, %c0_1] : memref<1x8x48xf32, #tpu.memory_space<vmem>>, vector<1x8x48xf32>
    %1 = vector.shape_cast %0 : vector<1x8x48xf32> to vector<8x48xf32>
    %2 = arith.truncf %1 : vector<8x48xf32> to vector<8x48xbf16>
    %c0_2 = arith.constant 0 : index
    %c0_3 = arith.constant 0 : index
    %3 = vector.load %arg2[%c0_2, %c0_3] : memref<144x64xbf16, #tpu.memory_space<vmem>>, vector<48x64xbf16>
    %cst = arith.constant dense<0.000000e+00> : vector<8x64xf32>
    %4 = tpu.matmul %2, %3, %cst {dimension_numbers = #tpu.dot_dimension_numbers<[1], [0], [0], [1], [0, 0, 1, 1], [], []>} : vector<8x48xbf16>, vector<48x64xbf16>, vector<8x64xf32> -> vector<8x64xf32>
    %c48 = arith.constant 48 : index
    %c0_4 = arith.constant 0 : index
    %5 = vector.load %arg2[%c48, %c0_4] : memref<144x64xbf16, #tpu.memory_space<vmem>>, vector<48x64xbf16>
    %cst_5 = arith.constant dense<0.000000e+00> : vector<8x64xf32>
    %6 = tpu.matmul %2, %5, %cst_5 {dimension_numbers = #tpu.dot_dimension_numbers<[1], [0], [0], [1], [0, 0, 1, 1], [], []>} : vector<8x48xbf16>, vector<48x64xbf16>, vector<8x64xf32> -> vector<8x64xf32>
    %c96 = arith.constant 96 : index
    %c0_6 = arith.constant 0 : index
    %7 = vector.load %arg2[%c96, %c0_6] : memref<144x64xbf16, #tpu.memory_space<vmem>>, vector<48x64xbf16>
    %cst_7 = arith.constant dense<0.000000e+00> : vector<8x64xf32>
    %8 = tpu.matmul %2, %7, %cst_7 {dimension_numbers = #tpu.dot_dimension_numbers<[1], [0], [0], [1], [0, 0, 1, 1], [], []>} : vector<8x48xbf16>, vector<48x64xbf16>, vector<8x64xf32> -> vector<8x64xf32>
    %9 = tpu.iota {dimensions = array<i32: 0>} : vector<8x64xi32>
    %c1_i32 = arith.constant 1 : i32
    %10 = vector.broadcast %c1_i32 : i32 to vector<8x64xi32>
    %11 = arith.cmpi sge, %9, %10 : vector<8x64xi32>
    %c1_i32_8 = arith.constant 1 : i32
    %12 = tpu.dynamic_rotate %4 by %c1_i32_8 dim 0 : vector<8x64xf32>, i32 -> vector<8x64xf32>
    %cst_9 = arith.constant 0.000000e+00 : f32
    %13 = vector.broadcast %cst_9 : f32 to vector<8x64xf32>
    %14 = arith.select %11, %12, %13 : vector<8x64xi1>, vector<8x64xf32>
    %c7_i32 = arith.constant 7 : i32
    %15 = vector.broadcast %c7_i32 : i32 to vector<8x64xi32>
    %16 = arith.cmpi slt, %9, %15 : vector<8x64xi32>
    %c7_i32_10 = arith.constant 7 : i32
    %17 = tpu.dynamic_rotate %8 by %c7_i32_10 dim 0 : vector<8x64xf32>, i32 -> vector<8x64xf32>
    %cst_11 = arith.constant 0.000000e+00 : f32
    %18 = vector.broadcast %cst_11 : f32 to vector<8x64xf32>
    %19 = arith.select %16, %17, %18 : vector<8x64xi1>, vector<8x64xf32>
    %20 = arith.addf %6, %14 : vector<8x64xf32>
    %21 = arith.addf %20, %19 : vector<8x64xf32>
    %c0_12 = arith.constant 0 : index
    %c0_13 = arith.constant 0 : index
    %22 = vector.load %arg3[%c0_12, %c0_13] : memref<1x64xf32, #tpu.memory_space<vmem>>, vector<1x64xf32>
    %23 = vector.broadcast %22 : vector<1x64xf32> to vector<8x64xf32>
    %24 = arith.addf %21, %23 : vector<8x64xf32>
    %25 = arith.truncf %24 : vector<8x64xf32> to vector<8x64xbf16>
    %c0_14 = arith.constant 0 : index
    %c0_15 = arith.constant 0 : index
    %c0_16 = arith.constant 0 : index
    %26 = vector.load %arg4[%c0_14, %c0_15, %c0_16] : memref<1x8x64xbf16, #tpu.memory_space<vmem>>, vector<1x8x64xbf16>
    %27 = vector.shape_cast %26 : vector<1x8x64xbf16> to vector<8x64xbf16>
    %28 = vector.shape_cast %25 : vector<8x64xbf16> to vector<1x8x64xbf16>
    tpu.vector_store %arg4[%c0_14, %c0_15, %c0_16], %28 {strides = array<i32>} : memref<1x8x64xbf16, #tpu.memory_space<vmem>>, vector<1x8x64xbf16>,
    return
  }
  func.func @transform_0(%arg0: i32) -> (i32, i32, i32) {
    %c0_i32 = arith.constant 0 : i32
    %c0_i32_0 = arith.constant 0 : i32
    %c0_i32_1 = arith.constant 0 : i32
    return %arg0, %c0_i32, %c0_i32_0 : i32, i32, i32
  }
  func.func @transform_1(%arg0: i32) -> (i32, i32) {
    %c0_i32 = arith.constant 0 : i32
    %c0_i32_0 = arith.constant 0 : i32
    %c0_i32_1 = arith.constant 0 : i32
    return %c0_i32, %c0_i32_0 : i32, i32
  }
  func.func @transform_2(%arg0: i32) -> (i32, i32) {
    %c0_i32 = arith.constant 0 : i32
    %c0_i32_0 = arith.constant 0 : i32
    %c0_i32_1 = arith.constant 0 : i32
    return %c0_i32, %c0_i32_0 : i32, i32
  }
  func.func @transform_3(%arg0: i32) -> (i32, i32, i32) {
    %c0_i32 = arith.constant 0 : i32
    %c0_i32_0 = arith.constant 0 : i32
    %c0_i32_1 = arith.constant 0 : i32
    return %arg0, %c0_i32, %c0_i32_0 : i32, i32, i32
  }
}

module attributes {stable_mosaic.version = 11 : i64} {
  func.func @_conv_rows_kernel(%arg0: i32, %arg1: memref<1x8x64xbf16, #tpu.memory_space<vmem>>, %arg2: memref<192x64xbf16, #tpu.memory_space<vmem>>, %arg3: memref<1x64xf32, #tpu.memory_space<vmem>>, %arg4: memref<1x8x64xbf16, #tpu.memory_space<vmem>>) attributes {dimension_semantics = [#tpu.dimension_semantics<parallel>], iteration_bounds = array<i64: 2>, scalar_prefetch = 0 : i64, scratch_operands = 0 : i64, tpu.core_type = #tpu.core_type<tc>, window_params = [{transform_indices = @transform_0, window_bounds = array<i64: 1, 8, 64>}, {pipeline_mode = #tpu.pipeline_mode<synchronous>, transform_indices = @transform_1, window_bounds = array<i64: 192, 64>}, {pipeline_mode = #tpu.pipeline_mode<synchronous>, transform_indices = @transform_2, window_bounds = array<i64: 1, 64>}, {transform_indices = @transform_3, window_bounds = array<i64: 1, 8, 64>}]} {
    %c0 = arith.constant 0 : index
    %c0_0 = arith.constant 0 : index
    %c0_1 = arith.constant 0 : index
    %0 = vector.load %arg1[%c0, %c0_0, %c0_1] : memref<1x8x64xbf16, #tpu.memory_space<vmem>>, vector<1x8x64xbf16>
    %1 = vector.shape_cast %0 : vector<1x8x64xbf16> to vector<8x64xbf16>
    %2 = arith.extf %1 : vector<8x64xbf16> to vector<8x64xf32>
    %cst = arith.constant 0.000000e+00 : f32
    %3 = vector.broadcast %cst : f32 to vector<8x64xf32>
    %4 = arith.cmpf oge, %2, %3 : vector<8x64xf32>
    %cst_2 = arith.constant 1.000000e-01 : f32
    %5 = vector.broadcast %cst_2 : f32 to vector<8x64xf32>
    %6 = arith.mulf %5, %2 : vector<8x64xf32>
    %7 = arith.select %4, %2, %6 : vector<8x64xi1>, vector<8x64xf32>
    %8 = arith.truncf %7 : vector<8x64xf32> to vector<8x64xbf16>
    %c0_3 = arith.constant 0 : index
    %c0_4 = arith.constant 0 : index
    %9 = vector.load %arg2[%c0_3, %c0_4] : memref<192x64xbf16, #tpu.memory_space<vmem>>, vector<64x64xbf16>
    %cst_5 = arith.constant dense<0.000000e+00> : vector<8x64xf32>
    %10 = tpu.matmul %8, %9, %cst_5 {dimension_numbers = #tpu.dot_dimension_numbers<[1], [0], [0], [1], [0, 0, 1, 1], [], []>} : vector<8x64xbf16>, vector<64x64xbf16>, vector<8x64xf32> -> vector<8x64xf32>
    %c64 = arith.constant 64 : index
    %c0_6 = arith.constant 0 : index
    %11 = vector.load %arg2[%c64, %c0_6] : memref<192x64xbf16, #tpu.memory_space<vmem>>, vector<64x64xbf16>
    %cst_7 = arith.constant dense<0.000000e+00> : vector<8x64xf32>
    %12 = tpu.matmul %8, %11, %cst_7 {dimension_numbers = #tpu.dot_dimension_numbers<[1], [0], [0], [1], [0, 0, 1, 1], [], []>} : vector<8x64xbf16>, vector<64x64xbf16>, vector<8x64xf32> -> vector<8x64xf32>
    %c128 = arith.constant 128 : index
    %c0_8 = arith.constant 0 : index
    %13 = vector.load %arg2[%c128, %c0_8] : memref<192x64xbf16, #tpu.memory_space<vmem>>, vector<64x64xbf16>
    %cst_9 = arith.constant dense<0.000000e+00> : vector<8x64xf32>
    %14 = tpu.matmul %8, %13, %cst_9 {dimension_numbers = #tpu.dot_dimension_numbers<[1], [0], [0], [1], [0, 0, 1, 1], [], []>} : vector<8x64xbf16>, vector<64x64xbf16>, vector<8x64xf32> -> vector<8x64xf32>
    %15 = tpu.iota {dimensions = array<i32: 0>} : vector<8x64xi32>
    %c1_i32 = arith.constant 1 : i32
    %16 = vector.broadcast %c1_i32 : i32 to vector<8x64xi32>
    %17 = arith.cmpi sge, %15, %16 : vector<8x64xi32>
    %c1_i32_10 = arith.constant 1 : i32
    %18 = tpu.dynamic_rotate %10 by %c1_i32_10 dim 0 : vector<8x64xf32>, i32 -> vector<8x64xf32>
    %cst_11 = arith.constant 0.000000e+00 : f32
    %19 = vector.broadcast %cst_11 : f32 to vector<8x64xf32>
    %20 = arith.select %17, %18, %19 : vector<8x64xi1>, vector<8x64xf32>
    %c7_i32 = arith.constant 7 : i32
    %21 = vector.broadcast %c7_i32 : i32 to vector<8x64xi32>
    %22 = arith.cmpi slt, %15, %21 : vector<8x64xi32>
    %c7_i32_12 = arith.constant 7 : i32
    %23 = tpu.dynamic_rotate %14 by %c7_i32_12 dim 0 : vector<8x64xf32>, i32 -> vector<8x64xf32>
    %cst_13 = arith.constant 0.000000e+00 : f32
    %24 = vector.broadcast %cst_13 : f32 to vector<8x64xf32>
    %25 = arith.select %22, %23, %24 : vector<8x64xi1>, vector<8x64xf32>
    %26 = arith.addf %12, %20 : vector<8x64xf32>
    %27 = arith.addf %26, %25 : vector<8x64xf32>
    %c0_14 = arith.constant 0 : index
    %c0_15 = arith.constant 0 : index
    %28 = vector.load %arg3[%c0_14, %c0_15] : memref<1x64xf32, #tpu.memory_space<vmem>>, vector<1x64xf32>
    %29 = vector.broadcast %28 : vector<1x64xf32> to vector<8x64xf32>
    %30 = arith.addf %27, %29 : vector<8x64xf32>
    %31 = arith.truncf %30 : vector<8x64xf32> to vector<8x64xbf16>
    %c0_16 = arith.constant 0 : index
    %c0_17 = arith.constant 0 : index
    %c0_18 = arith.constant 0 : index
    %32 = vector.load %arg4[%c0_16, %c0_17, %c0_18] : memref<1x8x64xbf16, #tpu.memory_space<vmem>>, vector<1x8x64xbf16>
    %33 = vector.shape_cast %32 : vector<1x8x64xbf16> to vector<8x64xbf16>
    %34 = vector.shape_cast %31 : vector<8x64xbf16> to vector<1x8x64xbf16>
    tpu.vector_store %arg4[%c0_16, %c0_17, %c0_18], %34 {strides = array<i32>} : memref<1x8x64xbf16, #tpu.memory_space<vmem>>, vector<1x8x64xbf16>,
    return
  }
  func.func @transform_0(%arg0: i32) -> (i32, i32, i32) {
    %c0_i32 = arith.constant 0 : i32
    %c0_i32_0 = arith.constant 0 : i32
    %c0_i32_1 = arith.constant 0 : i32
    return %arg0, %c0_i32, %c0_i32_0 : i32, i32, i32
  }
  func.func @transform_1(%arg0: i32) -> (i32, i32) {
    %c0_i32 = arith.constant 0 : i32
    %c0_i32_0 = arith.constant 0 : i32
    %c0_i32_1 = arith.constant 0 : i32
    return %c0_i32, %c0_i32_0 : i32, i32
  }
  func.func @transform_2(%arg0: i32) -> (i32, i32) {
    %c0_i32 = arith.constant 0 : i32
    %c0_i32_0 = arith.constant 0 : i32
    %c0_i32_1 = arith.constant 0 : i32
    return %c0_i32, %c0_i32_0 : i32, i32
  }
  func.func @transform_3(%arg0: i32) -> (i32, i32, i32) {
    %c0_i32 = arith.constant 0 : i32
    %c0_i32_0 = arith.constant 0 : i32
    %c0_i32_1 = arith.constant 0 : i32
    return %arg0, %c0_i32, %c0_i32_0 : i32, i32, i32
  }
}

module attributes {stable_mosaic.version = 11 : i64} {
  func.func @_conv_rows_kernel(%arg0: i32, %arg1: memref<1x8x64xbf16, #tpu.memory_space<vmem>>, %arg2: memref<192x64xbf16, #tpu.memory_space<vmem>>, %arg3: memref<1x64xf32, #tpu.memory_space<vmem>>, %arg4: memref<1x8x64xbf16, #tpu.memory_space<vmem>>, %arg5: memref<1x8x64xbf16, #tpu.memory_space<vmem>>) attributes {dimension_semantics = [#tpu.dimension_semantics<parallel>], iteration_bounds = array<i64: 2>, scalar_prefetch = 0 : i64, scratch_operands = 0 : i64, tpu.core_type = #tpu.core_type<tc>, window_params = [{transform_indices = @transform_0, window_bounds = array<i64: 1, 8, 64>}, {pipeline_mode = #tpu.pipeline_mode<synchronous>, transform_indices = @transform_1, window_bounds = array<i64: 192, 64>}, {pipeline_mode = #tpu.pipeline_mode<synchronous>, transform_indices = @transform_2, window_bounds = array<i64: 1, 64>}, {transform_indices = @transform_3, window_bounds = array<i64: 1, 8, 64>}, {transform_indices = @transform_4, window_bounds = array<i64: 1, 8, 64>}]} {
    %c0 = arith.constant 0 : index
    %c0_0 = arith.constant 0 : index
    %c0_1 = arith.constant 0 : index
    %0 = vector.load %arg1[%c0, %c0_0, %c0_1] : memref<1x8x64xbf16, #tpu.memory_space<vmem>>, vector<1x8x64xbf16>
    %1 = vector.shape_cast %0 : vector<1x8x64xbf16> to vector<8x64xbf16>
    %2 = arith.extf %1 : vector<8x64xbf16> to vector<8x64xf32>
    %cst = arith.constant 0.000000e+00 : f32
    %3 = vector.broadcast %cst : f32 to vector<8x64xf32>
    %4 = arith.cmpf oge, %2, %3 : vector<8x64xf32>
    %cst_2 = arith.constant 1.000000e-01 : f32
    %5 = vector.broadcast %cst_2 : f32 to vector<8x64xf32>
    %6 = arith.mulf %5, %2 : vector<8x64xf32>
    %7 = arith.select %4, %2, %6 : vector<8x64xi1>, vector<8x64xf32>
    %8 = arith.truncf %7 : vector<8x64xf32> to vector<8x64xbf16>
    %c0_3 = arith.constant 0 : index
    %c0_4 = arith.constant 0 : index
    %9 = vector.load %arg2[%c0_3, %c0_4] : memref<192x64xbf16, #tpu.memory_space<vmem>>, vector<64x64xbf16>
    %cst_5 = arith.constant dense<0.000000e+00> : vector<8x64xf32>
    %10 = tpu.matmul %8, %9, %cst_5 {dimension_numbers = #tpu.dot_dimension_numbers<[1], [0], [0], [1], [0, 0, 1, 1], [], []>} : vector<8x64xbf16>, vector<64x64xbf16>, vector<8x64xf32> -> vector<8x64xf32>
    %c64 = arith.constant 64 : index
    %c0_6 = arith.constant 0 : index
    %11 = vector.load %arg2[%c64, %c0_6] : memref<192x64xbf16, #tpu.memory_space<vmem>>, vector<64x64xbf16>
    %cst_7 = arith.constant dense<0.000000e+00> : vector<8x64xf32>
    %12 = tpu.matmul %8, %11, %cst_7 {dimension_numbers = #tpu.dot_dimension_numbers<[1], [0], [0], [1], [0, 0, 1, 1], [], []>} : vector<8x64xbf16>, vector<64x64xbf16>, vector<8x64xf32> -> vector<8x64xf32>
    %c128 = arith.constant 128 : index
    %c0_8 = arith.constant 0 : index
    %13 = vector.load %arg2[%c128, %c0_8] : memref<192x64xbf16, #tpu.memory_space<vmem>>, vector<64x64xbf16>
    %cst_9 = arith.constant dense<0.000000e+00> : vector<8x64xf32>
    %14 = tpu.matmul %8, %13, %cst_9 {dimension_numbers = #tpu.dot_dimension_numbers<[1], [0], [0], [1], [0, 0, 1, 1], [], []>} : vector<8x64xbf16>, vector<64x64xbf16>, vector<8x64xf32> -> vector<8x64xf32>
    %15 = tpu.iota {dimensions = array<i32: 0>} : vector<8x64xi32>
    %c1_i32 = arith.constant 1 : i32
    %16 = vector.broadcast %c1_i32 : i32 to vector<8x64xi32>
    %17 = arith.cmpi sge, %15, %16 : vector<8x64xi32>
    %c1_i32_10 = arith.constant 1 : i32
    %18 = tpu.dynamic_rotate %10 by %c1_i32_10 dim 0 : vector<8x64xf32>, i32 -> vector<8x64xf32>
    %cst_11 = arith.constant 0.000000e+00 : f32
    %19 = vector.broadcast %cst_11 : f32 to vector<8x64xf32>
    %20 = arith.select %17, %18, %19 : vector<8x64xi1>, vector<8x64xf32>
    %c7_i32 = arith.constant 7 : i32
    %21 = vector.broadcast %c7_i32 : i32 to vector<8x64xi32>
    %22 = arith.cmpi slt, %15, %21 : vector<8x64xi32>
    %c7_i32_12 = arith.constant 7 : i32
    %23 = tpu.dynamic_rotate %14 by %c7_i32_12 dim 0 : vector<8x64xf32>, i32 -> vector<8x64xf32>
    %cst_13 = arith.constant 0.000000e+00 : f32
    %24 = vector.broadcast %cst_13 : f32 to vector<8x64xf32>
    %25 = arith.select %22, %23, %24 : vector<8x64xi1>, vector<8x64xf32>
    %26 = arith.addf %12, %20 : vector<8x64xf32>
    %27 = arith.addf %26, %25 : vector<8x64xf32>
    %c0_14 = arith.constant 0 : index
    %c0_15 = arith.constant 0 : index
    %28 = vector.load %arg3[%c0_14, %c0_15] : memref<1x64xf32, #tpu.memory_space<vmem>>, vector<1x64xf32>
    %29 = vector.broadcast %28 : vector<1x64xf32> to vector<8x64xf32>
    %30 = arith.addf %27, %29 : vector<8x64xf32>
    %c0_16 = arith.constant 0 : index
    %c0_17 = arith.constant 0 : index
    %c0_18 = arith.constant 0 : index
    %31 = vector.load %arg4[%c0_16, %c0_17, %c0_18] : memref<1x8x64xbf16, #tpu.memory_space<vmem>>, vector<1x8x64xbf16>
    %32 = vector.shape_cast %31 : vector<1x8x64xbf16> to vector<8x64xbf16>
    %33 = arith.extf %32 : vector<8x64xbf16> to vector<8x64xf32>
    %34 = arith.addf %30, %33 : vector<8x64xf32>
    %35 = arith.truncf %34 : vector<8x64xf32> to vector<8x64xbf16>
    %c0_19 = arith.constant 0 : index
    %c0_20 = arith.constant 0 : index
    %c0_21 = arith.constant 0 : index
    %36 = vector.load %arg5[%c0_19, %c0_20, %c0_21] : memref<1x8x64xbf16, #tpu.memory_space<vmem>>, vector<1x8x64xbf16>
    %37 = vector.shape_cast %36 : vector<1x8x64xbf16> to vector<8x64xbf16>
    %38 = vector.shape_cast %35 : vector<8x64xbf16> to vector<1x8x64xbf16>
    tpu.vector_store %arg5[%c0_19, %c0_20, %c0_21], %38 {strides = array<i32>} : memref<1x8x64xbf16, #tpu.memory_space<vmem>>, vector<1x8x64xbf16>,
    return
  }
  func.func @transform_0(%arg0: i32) -> (i32, i32, i32) {
    %c0_i32 = arith.constant 0 : i32
    %c0_i32_0 = arith.constant 0 : i32
    %c0_i32_1 = arith.constant 0 : i32
    return %arg0, %c0_i32, %c0_i32_0 : i32, i32, i32
  }
  func.func @transform_1(%arg0: i32) -> (i32, i32) {
    %c0_i32 = arith.constant 0 : i32
    %c0_i32_0 = arith.constant 0 : i32
    %c0_i32_1 = arith.constant 0 : i32
    return %c0_i32, %c0_i32_0 : i32, i32
  }
  func.func @transform_2(%arg0: i32) -> (i32, i32) {
    %c0_i32 = arith.constant 0 : i32
    %c0_i32_0 = arith.constant 0 : i32
    %c0_i32_1 = arith.constant 0 : i32
    return %c0_i32, %c0_i32_0 : i32, i32
  }
  func.func @transform_3(%arg0: i32) -> (i32, i32, i32) {
    %c0_i32 = arith.constant 0 : i32
    %c0_i32_0 = arith.constant 0 : i32
    %c0_i32_1 = arith.constant 0 : i32
    return %arg0, %c0_i32, %c0_i32_0 : i32, i32, i32
  }
  func.func @transform_4(%arg0: i32) -> (i32, i32, i32) {
    %c0_i32 = arith.constant 0 : i32
    %c0_i32_0 = arith.constant 0 : i32
    %c0_i32_1 = arith.constant 0 : i32
    return %arg0, %c0_i32, %c0_i32_0 : i32, i32, i32
  }
}

module attributes {stable_mosaic.version = 11 : i64} {
  func.func @_conv_rows_kernel(%arg0: i32, %arg1: memref<1x8x64xbf16, #tpu.memory_space<vmem>>, %arg2: memref<192x8xbf16, #tpu.memory_space<vmem>>, %arg3: memref<1x8xf32, #tpu.memory_space<vmem>>, %arg4: memref<1x8x8xf32, #tpu.memory_space<vmem>>) attributes {dimension_semantics = [#tpu.dimension_semantics<parallel>], iteration_bounds = array<i64: 2>, scalar_prefetch = 0 : i64, scratch_operands = 0 : i64, tpu.core_type = #tpu.core_type<tc>, window_params = [{transform_indices = @transform_0, window_bounds = array<i64: 1, 8, 64>}, {pipeline_mode = #tpu.pipeline_mode<synchronous>, transform_indices = @transform_1, window_bounds = array<i64: 192, 8>}, {pipeline_mode = #tpu.pipeline_mode<synchronous>, transform_indices = @transform_2, window_bounds = array<i64: 1, 8>}, {transform_indices = @transform_3, window_bounds = array<i64: 1, 8, 8>}]} {
    %c0 = arith.constant 0 : index
    %c0_0 = arith.constant 0 : index
    %c0_1 = arith.constant 0 : index
    %0 = vector.load %arg1[%c0, %c0_0, %c0_1] : memref<1x8x64xbf16, #tpu.memory_space<vmem>>, vector<1x8x64xbf16>
    %1 = vector.shape_cast %0 : vector<1x8x64xbf16> to vector<8x64xbf16>
    %2 = arith.extf %1 : vector<8x64xbf16> to vector<8x64xf32>
    %cst = arith.constant 0.000000e+00 : f32
    %3 = vector.broadcast %cst : f32 to vector<8x64xf32>
    %4 = arith.cmpf oge, %2, %3 : vector<8x64xf32>
    %cst_2 = arith.constant 1.000000e-01 : f32
    %5 = vector.broadcast %cst_2 : f32 to vector<8x64xf32>
    %6 = arith.mulf %5, %2 : vector<8x64xf32>
    %7 = arith.select %4, %2, %6 : vector<8x64xi1>, vector<8x64xf32>
    %8 = arith.truncf %7 : vector<8x64xf32> to vector<8x64xbf16>
    %c0_3 = arith.constant 0 : index
    %c0_4 = arith.constant 0 : index
    %9 = vector.load %arg2[%c0_3, %c0_4] : memref<192x8xbf16, #tpu.memory_space<vmem>>, vector<64x8xbf16>
    %cst_5 = arith.constant dense<0.000000e+00> : vector<8x8xf32>
    %10 = tpu.matmul %8, %9, %cst_5 {dimension_numbers = #tpu.dot_dimension_numbers<[1], [0], [0], [1], [0, 0, 1, 1], [], []>} : vector<8x64xbf16>, vector<64x8xbf16>, vector<8x8xf32> -> vector<8x8xf32>
    %c64 = arith.constant 64 : index
    %c0_6 = arith.constant 0 : index
    %11 = vector.load %arg2[%c64, %c0_6] : memref<192x8xbf16, #tpu.memory_space<vmem>>, vector<64x8xbf16>
    %cst_7 = arith.constant dense<0.000000e+00> : vector<8x8xf32>
    %12 = tpu.matmul %8, %11, %cst_7 {dimension_numbers = #tpu.dot_dimension_numbers<[1], [0], [0], [1], [0, 0, 1, 1], [], []>} : vector<8x64xbf16>, vector<64x8xbf16>, vector<8x8xf32> -> vector<8x8xf32>
    %c128 = arith.constant 128 : index
    %c0_8 = arith.constant 0 : index
    %13 = vector.load %arg2[%c128, %c0_8] : memref<192x8xbf16, #tpu.memory_space<vmem>>, vector<64x8xbf16>
    %cst_9 = arith.constant dense<0.000000e+00> : vector<8x8xf32>
    %14 = tpu.matmul %8, %13, %cst_9 {dimension_numbers = #tpu.dot_dimension_numbers<[1], [0], [0], [1], [0, 0, 1, 1], [], []>} : vector<8x64xbf16>, vector<64x8xbf16>, vector<8x8xf32> -> vector<8x8xf32>
    %15 = tpu.iota {dimensions = array<i32: 0>} : vector<8x8xi32>
    %c1_i32 = arith.constant 1 : i32
    %16 = vector.broadcast %c1_i32 : i32 to vector<8x8xi32>
    %17 = arith.cmpi sge, %15, %16 : vector<8x8xi32>
    %c1_i32_10 = arith.constant 1 : i32
    %18 = tpu.dynamic_rotate %10 by %c1_i32_10 dim 0 : vector<8x8xf32>, i32 -> vector<8x8xf32>
    %cst_11 = arith.constant 0.000000e+00 : f32
    %19 = vector.broadcast %cst_11 : f32 to vector<8x8xf32>
    %20 = arith.select %17, %18, %19 : vector<8x8xi1>, vector<8x8xf32>
    %c7_i32 = arith.constant 7 : i32
    %21 = vector.broadcast %c7_i32 : i32 to vector<8x8xi32>
    %22 = arith.cmpi slt, %15, %21 : vector<8x8xi32>
    %c7_i32_12 = arith.constant 7 : i32
    %23 = tpu.dynamic_rotate %14 by %c7_i32_12 dim 0 : vector<8x8xf32>, i32 -> vector<8x8xf32>
    %cst_13 = arith.constant 0.000000e+00 : f32
    %24 = vector.broadcast %cst_13 : f32 to vector<8x8xf32>
    %25 = arith.select %22, %23, %24 : vector<8x8xi1>, vector<8x8xf32>
    %26 = arith.addf %12, %20 : vector<8x8xf32>
    %27 = arith.addf %26, %25 : vector<8x8xf32>
    %c0_14 = arith.constant 0 : index
    %c0_15 = arith.constant 0 : index
    %28 = vector.load %arg3[%c0_14, %c0_15] : memref<1x8xf32, #tpu.memory_space<vmem>>, vector<1x8xf32>
    %29 = vector.broadcast %28 : vector<1x8xf32> to vector<8x8xf32>
    %30 = arith.addf %27, %29 : vector<8x8xf32>
    %c0_16 = arith.constant 0 : index
    %c0_17 = arith.constant 0 : index
    %c0_18 = arith.constant 0 : index
    %31 = vector.load %arg4[%c0_16, %c0_17, %c0_18] : memref<1x8x8xf32, #tpu.memory_space<vmem>>, vector<1x8x8xf32>
    %32 = vector.shape_cast %31 : vector<1x8x8xf32> to vector<8x8xf32>
    %33 = vector.shape_cast %30 : vector<8x8xf32> to vector<1x8x8xf32>
    tpu.vector_store %arg4[%c0_16, %c0_17, %c0_18], %33 {strides = array<i32>} : memref<1x8x8xf32, #tpu.memory_space<vmem>>, vector<1x8x8xf32>,
    return
  }
  func.func @transform_0(%arg0: i32) -> (i32, i32, i32) {
    %c0_i32 = arith.constant 0 : i32
    %c0_i32_0 = arith.constant 0 : i32
    %c0_i32_1 = arith.constant 0 : i32
    return %arg0, %c0_i32, %c0_i32_0 : i32, i32, i32
  }
  func.func @transform_1(%arg0: i32) -> (i32, i32) {
    %c0_i32 = arith.constant 0 : i32
    %c0_i32_0 = arith.constant 0 : i32
    %c0_i32_1 = arith.constant 0 : i32
    return %c0_i32, %c0_i32_0 : i32, i32
  }
  func.func @transform_2(%arg0: i32) -> (i32, i32) {
    %c0_i32 = arith.constant 0 : i32
    %c0_i32_0 = arith.constant 0 : i32
    %c0_i32_1 = arith.constant 0 : i32
    return %c0_i32, %c0_i32_0 : i32, i32
  }
  func.func @transform_3(%arg0: i32) -> (i32, i32, i32) {
    %c0_i32 = arith.constant 0 : i32
    %c0_i32_0 = arith.constant 0 : i32
    %c0_i32_1 = arith.constant 0 : i32
    return %arg0, %c0_i32, %c0_i32_0 : i32, i32, i32
  }
}

</mosaic_0001>

<bundles_post_ra>
// kernel: tile.33
= control target key start
LH: loop header
LB: loop body
LE: loop exit
PB: predicated region body
PF: predicated region fallthrough
CT: control target
= control target key end

     0   :  { %s22_s0 = inlined_call_operand.vmem [shape: f32[8], index: 0, kind: input, shape index: {}]   ;;  %s23_s1 = inlined_call_operand.vmem [shape: f32[8,8], index: 1, kind: output, shape index: {}]  }
   0x1   :  { %v4_v0 = vld [vmem:[%s22_s0] ss:$0 sm:$0xff] }
   0x2   :  { %5 = vst [vmem:[%s23_s1] sm:$0xff] %v4_v0 }

// kernel: tile.34
= control target key start
LH: loop header
LB: loop body
LE: loop exit
PB: predicated region body
PF: predicated region fallthrough
CT: control target
= control target key end

     0   :  { %s67_s10 = smov 56   ;;  %s68_s11 = smov 40   ;;  %vm3_vm0 = vcmask 64512   ;;  %vm9_vm1 = vcmask 523712   ;;  %vm15_vm2 = vcmask 458112   ;;  %vm21_vm3 = vcmask 392512   ;;  %s111_s0 = inlined_call_operand.vmem [shape: f32[8,8], index: 0, kind: input, shape index: {}]   ;;  %s112_s1 = inlined_call_operand.vmem [shape: f32[1,64], index: 1, kind: output, shape index: {}]  }
   0x1   :  { %v53_v0 = vld [vmem:[%s111_s0 + $0x7] sm:$0x1]   ;;  %v55_v1 = vld [vmem:[%s111_s0 + $0x5] sm:$0x1]   ;;  %v54_v2 = vld [vmem:[%s111_s0 + $0x6] sm:$0x1]  }
   0x2   :  { %7 = vrot.lane.b32.xlu0 %v53_v0, %s67_s10  ;;  %19 = vrot.lane.b32.xlu1 %v55_v1, %s68_s11  ;;  %v56_v3 = vld [vmem:[%s111_s0 + $0x4] sm:$0x1]   ;;  %v2_v4 = vld [vmem:[%s111_s0] sm:$0x1]   ;;  %s69_s18 = smov 48   ;;  %s70_s19 = smov 32  }
   0x3   :  { %4 = vst.msk [vmem:[#allocation0] sm:$0x1] %vm3_vm0, %v2_v4   ;;  %v57_v5 = vld [vmem:[%s111_s0 + $0x3] sm:$0x1]   ;;  %v58_v6 = vld [vmem:[%s111_s0 + $0x2] sm:$0x1]  }
   0x4   :  { %s71_s24 = smov 24   ;;  %s72_s25 = smov 16   ;;  %v59_v7 = vld [vmem:[%s111_s0 + $0x1] sm:$0x1]   ;;  %vm27_vm4 = vcmask 326912   ;;  %vm33_vm5 = vcmask 261312  }
   0x5   :  { %s73_s0 = smov 8   ;;  %vm39_vm6 = vcmask 195712   ;;  %vm45_vm7 = vcmask 130112  }
   0x6   :  { %13 = vrot.lane.b32.xlu0 %v54_v2, %s69_s18  ;;  %25 = vrot.lane.b32.xlu1 %v56_v3, %s70_s19 }
   0xa   :  { %31 = vrot.lane.b32.xlu0 %v57_v5, %s71_s24  ;;  %37 = vrot.lane.b32.xlu1 %v58_v6, %s72_s25 }
   0xe   :  { %43 = vrot.lane.b32.xlu0 %v59_v7, %s73_s0 }
  0x74   :  { %v8_v8 = vpop.permute.xlu0 %7   ;;  %v20_v9 = vpop.permute.xlu1 %19  }
  0x75   :  { %10 = vst.msk [vmem:[#allocation0] sm:$0x1] %vm9_vm1, %v8_v8  }
  0x78   :  { %v14_v10 = vpop.permute.xlu0 %13   ;;  %v26_v11 = vpop.permute.xlu1 %25  }
  0x79   :  { %16 = vst.msk [vmem:[#allocation0] sm:$0x1] %vm15_vm2, %v14_v10  }
  0x7a   :  { %22 = vst.msk [vmem:[#allocation0] sm:$0x1] %vm21_vm3, %v20_v9  }
  0x7b   :  { %28 = vst.msk [vmem:[#allocation0] sm:$0x1] %vm27_vm4, %v26_v11  }
  0x7c   :  { %v32_v12 = vpop.permute.xlu0 %31   ;;  %v38_v13 = vpop.permute.xlu1 %37  }
  0x7d   :  { %34 = vst.msk [vmem:[#allocation0] sm:$0x1] %vm33_vm5, %v32_v12  }
  0x7e   :  { %40 = vst.msk [vmem:[#allocation0] sm:$0x1] %vm39_vm6, %v38_v13  }
  0x80   :  { %v44_v14 = vpop.permute.xlu0 %43  }
  0x81   :  { %46 = vst.msk [vmem:[#allocation0] sm:$0x1] %vm45_vm7, %v44_v14  }
  0x88   :  { %v50_v15 = vld [vmem:[#allocation0] sm:$0x1] }
  0x89   :  { %52 = vst [vmem:[%s112_s1] sm:$0x1] %v50_v15 }

// kernel: dit_decoder_forward.24
= control target key start
LH: loop header
LB: loop body
LE: loop exit
PB: predicated region body
PF: predicated region fallthrough
CT: control target
= control target key end

     0   :  { %vm19_vm0 = vcmask 254976   ;;  %v123_v0 = vmov 0.0   ;;  %vm124_vm1 = vmmov 0   ;;  %vm40_vm2 = vcmask 261120   ;;  %s163_s1 = inlined_call_operand.vmem [shape: bf16[32,32], index: 1, kind: input, shape index: {}]   ;;  %s164_s0 = inlined_call_operand.vmem [shape: f32[2,32], index: 0, kind: input, shape index: {}]   ;;  %s165_s2 = inlined_call_operand.vmem [shape: f32[1,32], index: 2, kind: input, shape index: {}]   ;;  %s166_s3 = inlined_call_operand.vmem [shape: f32[2,32], index: 3, kind: output, shape index: {}]  }
   0x1   :  { %20 = vst.msk [vmem:[#allocation2] sm:$0x3] %vm19_vm0, %v123_v0  ;;  %111 = vmatprep.subr.bf16.mxu0 %v123_v0  ;;  %v121_v1 = vld [vmem:[%s163_s1] sm:$0xff]   ;;  %115 = vmatprep.mubr.msk.bf16.mxu0 %vm124_vm1, %v123_v0  ;;  %v122_v2 = vld [vmem:[%s163_s1 + $0x8] sm:$0xff]  }
   0x2   :  { %112 = vmatpush3.bf16.msra.mxu0 %v121_v1  ;;  %v22_v3 = vld [vmem:[%s164_s0] sm:$0x3] }
   0x3   :  { %113 = vmatprep.subr.bf16.mxu0 %v123_v0  ;;  %v23_v4 = vpack.c.bf16 %v22_v3, %v22_v3  ;;  %v107_v11 = vld [vmem:[%s165_s2] ss:$0 sm:$0xff] }
   0x6   :  { %114 = vmatpush3.bf16.msra.mxu0 %v122_v2 }
   0x8   :  { %v21_v5 = vld [vmem:[#allocation2] sm:$0x3] }
   0x9   :  { %116 = vmatmul.mubr.msk.bf16.vlgmr.msra.gmra.mrb[0].mxu0 %vm40_vm2, %v23_v4 }
  0xdc   :  { %v78_v6 = vpop.f32.mrb[0].mxu0 }
  0xdd   :  { %v84_v7 = vadd.f32 %v78_v6, %v21_v5  ;;  %v117_v8 = vpop.f32.mrb[1].mxu0 }
  0xde   :  { %v81_v9 = vpop.f32.mrb[2].mxu0 }
  0xdf   :  { %86 = vst.msk [vmem:[#allocation2] sm:$0x3] %vm19_vm0, %v84_v7  ;;  %v118_v10 = vpop.f32.mrb[3].mxu0 }
  0xe6   :  { %v90_v12 = vld [vmem:[#allocation2] sm:$0x3] }
  0xe7   :  { %v98_v13 = vadd.f32 %v107_v11, %v90_v12 }
  0xe9   :  { %99 = vst.msk [vmem:[%s166_s3] sm:$0x3] %vm19_vm0, %v98_v13 }

// kernel: dit_decoder_forward.23
= control target key start
LH: loop header
LB: loop body
LE: loop exit
PB: predicated region body
PF: predicated region fallthrough
CT: control target
= control target key end

     0   :  { %vm19_vm0 = vcmask 254976   ;;  %v135_v0 = vmov 0.0   ;;  %vm136_vm1 = vmmov 0   ;;  %vm40_vm2 = vcmask 261120   ;;  %s175_s1 = inlined_call_operand.vmem [shape: bf16[32,32], index: 1, kind: input, shape index: {}]   ;;  %s176_s0 = inlined_call_operand.vmem [shape: f32[2,32], index: 0, kind: input, shape index: {}]   ;;  %s177_s2 = inlined_call_operand.vmem [shape: f32[1,32], index: 2, kind: input, shape index: {}]   ;;  %s178_s3 = inlined_call_operand.vmem [shape: f32[2,32], index: 3, kind: output, shape index: {}]  }
   0x1   :  { %20 = vst.msk [vmem:[#allocation2] sm:$0x3] %vm19_vm0, %v135_v0  ;;  %119 = vmatprep.subr.bf16.mxu0 %v135_v0  ;;  %v129_v1 = vld [vmem:[%s175_s1] sm:$0xff]   ;;  %123 = vmatprep.mubr.msk.bf16.mxu0 %vm136_vm1, %v135_v0  ;;  %v130_v2 = vld [vmem:[%s175_s1 + $0x8] sm:$0xff]  }
   0x2   :  { %120 = vmatpush3.bf16.msra.mxu0 %v129_v1  ;;  %v22_v3 = vld [vmem:[%s176_s0] sm:$0x3] }
   0x3   :  { %121 = vmatprep.subr.bf16.mxu0 %v135_v0  ;;  %v23_v4 = vpack.c.bf16 %v22_v3, %v22_v3  ;;  %v114_v11 = vld [vmem:[%s177_s2] ss:$0 sm:$0xff] }
   0x6   :  { %122 = vmatpush3.bf16.msra.mxu0 %v130_v2 }
   0x8   :  { %v21_v5 = vld [vmem:[#allocation2] sm:$0x3] }
   0x9   :  { %124 = vmatmul.mubr.msk.bf16.vlgmr.msra.gmra.mrb[0].mxu0 %vm40_vm2, %v23_v4 }
  0xdc   :  { %v78_v6 = vpop.f32.mrb[0].mxu0 }
  0xdd   :  { %v84_v7 = vadd.f32 %v78_v6, %v21_v5  ;;  %v125_v8 = vpop.f32.mrb[1].mxu0 }
  0xde   :  { %v81_v9 = vpop.f32.mrb[2].mxu0 }
  0xdf   :  { %86 = vst.msk [vmem:[#allocation2] sm:$0x3] %vm19_vm0, %v84_v7  ;;  %v126_v10 = vpop.f32.mrb[3].mxu0 }
  0xe6   :  { %v90_v12 = vld [vmem:[#allocation2] sm:$0x3] }
  0xe7   :  { %v98_v13 = vadd.f32 %v114_v11, %v90_v12 }
  0xe9   :  { %v115_v14 = vmul.f32 -1.442695, %v98_v13 }
  0xeb   :  { %131 = vpow2.f32 %v115_v14 }
  0xf5   :  { %v132_v15 = vpop.eup %131 }
  0xf6   :  { %v102_v16 = vadd.f32 1.0, %v132_v15 }
  0xf8   :  { %133 = vrcp.f32 %v102_v16 }
 0x102   :  { %v134_v17 = vpop.eup %133 }
 0x103   :  { %v105_v18 = vmul.f32 %v134_v17, %v98_v13 }
 0x105   :  { %106 = vst.msk [vmem:[%s178_s3] sm:$0x3] %vm19_vm0, %v105_v18 }

// kernel: dit_decoder_forward.25
= control target key start
LH: loop header
LB: loop body
LE: loop exit
PB: predicated region body
PF: predicated region fallthrough
CT: control target
= control target key end

     0   :  { %v242_v1 = vmov 0.0   ;;  %v243_v2 = vmov 0   ;;  %vm244_vm0 = vmmov 0   ;;  %vm63_vm1 = vcmask 261120   ;;  %s293_s1 = inlined_call_operand.vmem [shape: bf16[32,384], index: 1, kind: input, shape index: {}]   ;;  %s294_s0 = inlined_call_operand.vmem [shape: f32[2,32], index: 0, kind: input, shape index: {}]   ;;  %s295_s2 = inlined_call_operand.vmem [shape: f32[1,384], index: 2, kind: input, shape index: {}]   ;;  %s296_s3 = inlined_call_operand.vmem [shape: f32[2,384], index: 3, kind: output, shape index: {}]  }
   0x1   :  { %v234_v0 = vld [vmem:[%s293_s1 + $0x4] ss:$12 sps:$4 sm:$0xff]   ;;  %19 = vst [vmem:[#allocation2] sm:$0x3f] %v242_v1  ;;  %222 = vmatprep.subr.bf16.mxu1 %v242_v1  ;;  %99 = vmatprep.mubr.bf16.mxu0 %v243_v2  ;;  %v236_v3 = vld [vmem:[%s293_s1] ss:$12 sps:$4 sm:$0xff]   ;;  %v155_v12 = vlaneseq }
   0x2   :  { %226 = vmatprep.mubr.msk.bf16.mxu1 %vm244_vm0, %v242_v1  ;;  %67 = vmatprep.subr.bf16.mxu0 %v234_v0  ;;  %v237_v4 = vld [vmem:[%s293_s1 + $0x8] ss:$12 sps:$4 sm:$0xff]   ;;  %v240_v6 = vld [vmem:[%s293_s1 + $0x18] ss:$12 sps:$4 sm:$0xff]   ;;  %v241_v7 = vld [vmem:[%s293_s1 + $0x20] ss:$12 sps:$4 sm:$0xff]  }
   0x3   :  { %68 = vmatpush1.bf16.msra.mxu0 %v236_v3  ;;  %v238_v5 = vld [vmem:[%s293_s1 + $0x1c] ss:$12 sps:$4 sm:$0xff]   ;;  %223 = vmatpush3.bf16.msra.mxu1 %v237_v4  ;;  %v21_v8 = vld [vmem:[%s294_s0] sm:$0x3]  ;;  %v245_v10 = vmov 1983009808  }
   0x4   :  { %69 = vmatprep.subr.bf16.mxu0 %v238_v5  ;;  %224 = vmatprep.subr.bf16.mxu1 %v242_v1  ;;  %v22_v9 = vpack.c.bf16 %v21_v8, %v21_v8  ;;  %v153_v11 = vunpack.c.l.s4 %v245_v10  ;;  %v156_v14 = vshrl.u32 %v155_v12, 7  ;;  %v174_v18 = vld [vmem:[%s295_s2] sm:$0x7] }
   0x6   :  { %v154_v13 = vunpack.c.0.s8 %v153_v11  ;;  %v178_v16 = vsub.s32 0, %v156_v14  ;;  %v182_v17 = vsub.s32 1, %v156_v14  ;;  %v186_v21 = vsub.s32 2, %v156_v14 }
   0x7   :  { %70 = vmatpush1.bf16.msra.mxu0 %v240_v6  ;;  %225 = vmatpush3.bf16.msra.mxu1 %v241_v7 }
   0x8   :  { %v157_v15 = vsub.s32 %v154_v13, %v156_v14  ;;  %v179_v24 = vrot.slane %v174_v18, %v178_v16  ;;  %v183_v25 = vrot.slane %v174_v18, %v182_v17  ;;  %v20_v33 = vld [vmem:[#allocation2] sm:$0x3f]  ;;  %v187_v34 = vrot.slane %v174_v18, %v186_v21 }
   0xa   :  { %217 = vmatmul.mubr.msk.bf16.vlgmr.msra.gmra.mrb[0].mxu0 %vm63_vm1, %v22_v9  ;;  %227 = vmatmul.mubr.msk.bf16.vlgmr.msra.gmra.mrb[0].mxu1 %vm63_vm1, %v22_v9  ;;  %v188_v35 = vcombine.low %v179_v24, %v183_v25  ;;  %v202_v39 = vrot.slane %v187_v34, %v157_v15 }
   0xc   :  { %v195_v38 = vrot.slane %v188_v35, %v157_v15 }
   0xe   :  { %v203_v40 = vcombine.low %v195_v38, %v202_v39 }
  0xdd   :  { %v101_v19 = vpop.f32.mrb[0].mxu0  ;;  %v142_v20 = vpop.f32.mrb[0].mxu1 }
  0xde   :  { %v103_v22 = vpop.f32.mrb[1].mxu0  ;;  %v165_v23 = vrot.slane %v142_v20, %v157_v15  ;;  %v228_v27 = vpop.f32.mrb[1].mxu1 }
  0xdf   :  { %v151_v26 = vcombine.low %v101_v19, %v103_v22  ;;  %v105_v28 = vpop.f32.mrb[2].mxu0  ;;  %v145_v29 = vpop.f32.mrb[2].mxu1 }
  0xe0   :  { %v106_v30 = vpop.f32.mrb[3].mxu0  ;;  %v229_v32 = vpop.f32.mrb[3].mxu1 }
  0xe1   :  { %v158_v31 = vrot.slane %v151_v26, %v157_v15 }
  0xe3   :  { %v166_v36 = vcombine.low %v158_v31, %v165_v23 }
  0xe5   :  { %v168_v37 = vadd.f32 %v166_v36, %v20_v33 }
  0xe7   :  { %169 = vst [vmem:[#allocation2] sm:$0x3f] %v168_v37 }
  0xee   :  { %v173_v41 = vld [vmem:[#allocation2] sm:$0x3f] }
  0xef   :  { %v205_v42 = vadd.f32 %v203_v40, %v173_v41 }
  0xf1   :  { %206 = vst [vmem:[%s296_s3] sm:$0x3f] %v205_v42 }

// kernel: dit_decoder_forward.37
= control target key start
LH: loop header
LB: loop body
LE: loop exit
PB: predicated region body
PF: predicated region fallthrough
CT: control target
= control target key end

     0   :  { %vm19_vm0 = vcmask 64512   ;;  %vm32_vm1 = vcmask 1043456   ;;  %v113_v0 = vmov 0.0   ;;  %vm114_vm2 = vmmov 0   ;;  %s160_s1 = inlined_call_operand.vmem [shape: bf16[8,8], index: 1, kind: input, shape index: {}]   ;;  %s161_s0 = inlined_call_operand.vmem [shape: f32[16,8], index: 0, kind: input, shape index: {}]   ;;  %s162_s2 = inlined_call_operand.vmem [shape: f32[1,8], index: 2, kind: input, shape index: {}]   ;;  %s163_s3 = inlined_call_operand.vmem [shape: f32[16,8], index: 3, kind: output, shape index: {}]  }
   0x1   :  { %20 = vst.msk [vmem:[#allocation2] sm:$0xff] %vm19_vm0, %v113_v0  ;;  %21 = vst.msk [vmem:[#allocation2 + $0x8] sm:$0xff] %vm19_vm0, %v113_v0  ;;  %105 = vmatprep.subr.bf16.mxu0 %v113_v0  ;;  %v27_v1 = vld [vmem:[%s160_s1] sm:$0xf]  ;;  %107 = vmatprep.mubr.msk.bf16.mxu0 %vm114_vm2, %v113_v0  ;;  %v25_v3 = vld [vmem:[%s161_s0 + $0x8] sm:$0xff] }
   0x2   :  { %v24_v2 = vld [vmem:[%s161_s0] sm:$0xff]  ;;  %v34_v4 = vsel %vm32_vm1, %v27_v1, 0 }
   0x3   :  { %v26_v5 = vpack.c.bf16 %v25_v3, %v24_v2  ;;  %106 = vmatpush3.bf16.msra.mxu0 %v34_v4  ;;  %v102_v14 = vld [vmem:[%s162_s2] ss:$0 sm:$0xff] }
   0x6   :  { %108 = vmatmul.mubr.msk.bf16.vlgmr.msra.gmra.mrb[0].mxu0 %vm19_vm0, %v26_v5 }
   0x8   :  { %v22_v6 = vld [vmem:[#allocation2] sm:$0xff]  ;;  %v23_v8 = vld [vmem:[#allocation2 + $0x8] sm:$0xff] }
  0xd9   :  { %v70_v7 = vpop.f32.mrb[0].mxu0 }
  0xda   :  { %v77_v9 = vadd.f32 %v70_v7, %v22_v6  ;;  %v109_v10 = vpop.f32.mrb[1].mxu0 }
  0xdb   :  { %v73_v11 = vpop.f32.mrb[2].mxu0 }
  0xdc   :  { %79 = vst.msk [vmem:[#allocation2] sm:$0xff] %vm19_vm0, %v77_v9  ;;  %v78_v12 = vadd.f32 %v73_v11, %v23_v8  ;;  %v110_v13 = vpop.f32.mrb[3].mxu0 }
  0xde   :  { %80 = vst.msk [vmem:[#allocation2 + $0x8] sm:$0xff] %vm19_vm0, %v78_v12 }
  0xe3   :  { %v84_v15 = vld [vmem:[#allocation2] sm:$0xff] }
  0xe4   :  { %v93_v16 = vadd.f32 %v102_v14, %v84_v15 }
  0xe5   :  { %v85_v17 = vld [vmem:[#allocation2 + $0x8] sm:$0xff] }
  0xe6   :  { %95 = vst.msk [vmem:[%s163_s3] sm:$0xff] %vm19_vm0, %v93_v16  ;;  %v94_v18 = vadd.f32 %v102_v14, %v85_v17 }
  0xe8   :  { %96 = vst.msk [vmem:[%s163_s3 + $0x8] sm:$0xff] %vm19_vm0, %v94_v18 }

// kernel: dit_decoder_forward.26
= control target key start
LH: loop header
LB: loop body
LE: loop exit
PB: predicated region body
PF: predicated region fallthrough
CT: control target
= control target key end

     0   :  { %s675_s18 = smov 0   ;;  %s677_s19 = smov 0   ;;  %s732_s0 = inlined_call_operand.vmem [shape: f32[2,8,32], index: 0, kind: input, shape index: {}]   ;;  %s733_s1 = inlined_call_operand.vmem [shape: f32[2,1,32], index: 1, kind: input, shape index: {}]   ;;  %s734_s2 = inlined_call_operand.vmem [shape: f32[2,1,32], index: 2, kind: input, shape index: {}]   ;;  %s735_s3 = inlined_call_operand.vmem [shape: bf16[32,96], index: 3, kind: input, shape index: {}]   ;;  %s736_s4 = inlined_call_operand.vmem [shape: f32[1,96], index: 4, kind: input, shape index: {}]   ;;  %s737_s5 = inlined_call_operand.vmem [shape: bf16[2,8,96], index: 5, kind: output, shape index: {}]  }
   0x1   :  { %s679_s20 = smov 0  }
   0x2 LB: > { %s34_s21 = sadd.s32 1, %s637_s19  ;;  %p568_p0 = scmp.ge.s32.totalorder %s641_s20, 1  ;;  %s641_s20 = sphi %s679_s20, %s15_s20   ;;  %s637_s19 = sphi %s677_s19, %s739_s19   ;;  %s633_s18 = sphi %s675_s18, %s738_s18  }
   0x3   : > { %p36_p1 = scmp.ge.s32.totalorder %s34_s21, 2  ;;  %p247_p2 = scmp.lt.s32.totalorder %s641_s20, 3 }
   0x5   : > { %s741_s21 = smov (%p36_p1, %s34_s21), 0  ;;  %p248_p3 = pnand %p568_p0, %p247_p2 }
   0x6   : > { %p295_p4 = scmp.lt.s32.totalorder (!%p248_p3), %s633_s18, 1  ;;  %vm327_vm0 = vcmask (!%p248_p3), 261120   ;;  %v615_v7 = vld [vmem:[%s735_s3] sm:$0xff] (!%p248_p3)   ;;  %v643_v8 = vmov (!%p248_p3), 0.0   ;;  %v616_v9 = vld [vmem:[%s735_s3 + $0x8] sm:$0xff] (!%p248_p3)   ;;  %vm644_vm1 = vmmov (!%p248_p3), 0   ;;  %v345_v12 = vlaneseq (!%p248_p3) }
   0x7   : > { %251 = sbr.rel (%p248_p3) target bundleno = 550 (0x226), region = 40  ;;  %581 = vmatprep.subr.bf16.mxu0 (!%p248_p3), %v643_v8  ;;  %585 = vmatprep.mubr.msk.bf16.mxu0 (!%p248_p3), %vm644_vm1, %v643_v8  ;;  %v572_v25 = vld [vmem:[%s736_s4] ss:$0 sm:$0xff] (!%p248_p3)  ;;  %vm427_vm2 = vcmask (!%p248_p3), 781312  }
   0x8   : > { %582 = vmatpush3.bf16.msra.mxu0 (!%p248_p3), %v615_v7  ;;  %v346_v14 = vshrl.u32 (!%p248_p3), %v345_v12, 7 }
   0x9   : > { %583 = vmatprep.subr.bf16.mxu0 (!%p248_p3), %v643_v8 }
   0xa   : > { %v347_v17 = vsub.s32 (!%p248_p3), 0, %v346_v14 }
   0xc   : > { %584 = vmatpush3.bf16.msra.mxu0 (!%p248_p3), %v616_v9 }
   0xe   : > { %s743_s18 = smov (!%p295_p4, %s633_s18), 1 }
   0xf   : > { %s569_s22 = sshll.u32 %s743_s18, 3  ;;  %s304_s7 = scalar_lea.vmem %s733_s1, %s743_s18 }
  0x10   : > { %s301_s25 = scalar_lea.vmem %s732_s0, %s569_s22  ;;  %v342_v15 = vld [vmem:[%s304_s7] sm:$0x1]  ;;  %s307_s10 = scalar_lea.vmem %s734_s2, %s743_s18 }
  0x11   : > { %v326_v0 = vld [vmem:[%s301_s25] sm:$0xff]  ;;  %v343_v16 = vadd.f32 1.0, %v342_v15  ;;  %s570_s13 = sshll.u32 %s743_s18, 2 }
  0x12   : > { %v328_v1 = vsel %vm327_vm0, %v326_v0, 0.0  ;;  %v571_v21 = vld [vmem:[%s307_s10] ss:$0 sm:$0xff]  ;;  %s324_s16 = scalar_lea.vmem %s737_s5, %s570_s13 }
  0x13   : > { %329 = vadd.xlane.f32.xlu0 %v328_v1  ;;  %v348_v18 = vrot.slane %v343_v16, %v347_v17 }
  0xa0   : > { %v330_v2 = vpop.xlane.xlu0 %329 }
  0xa1   : > { %v332_v3 = vmul.f32 0.03125, %v330_v2 }
  0xa3   : > { %v333_v4 = vsub.f32 %v326_v0, %v332_v3 }
  0xa5   : > { %v334_v5 = vmul.f32 %v333_v4, %v333_v4 }
  0xa7   : > { %v335_v6 = vsel %vm327_vm0, %v334_v5, 0.0 }
  0xa8   : > { %336 = vadd.xlane.f32.xlu0 %v335_v6 }
 0x135   : > { %v337_v10 = vpop.xlane.xlu0 %336 }
 0x136   : > { %v338_v11 = vmul.f32 0.03125, %v337_v10 }
 0x138   : > { %v339_v13 = vadd.f32 1e-06, %v338_v11 }
 0x13a   : > { %617 = vrsqrt.f32 %v339_v13 }
 0x144   : > { %v618_v19 = vpop.eup %617 }
 0x145   : > { %v341_v20 = vmul.f32 %v618_v19, %v333_v4 }
 0x147   : > { %v350_v22 = vmul.f32 %v348_v18, %v341_v20 }
 0x149   : > { %v358_v23 = vadd.f32 %v571_v21, %v350_v22 }
 0x14b   : > { %v359_v24 = vpack.c.bf16 %v358_v23, %v358_v23 }
 0x14d   : > { %586 = vmatmul.mubr.msk.bf16.vlgmr.msra.gmra.mrb[0].mxu0 %vm327_vm0, %v359_v24 }
 0x220   : > { %v420_v26 = vpop.f32.mrb[0].mxu0 }
 0x221   : > { %v421_v27 = vadd.f32 %v572_v25, %v420_v26  ;;  %v587_v28 = vpop.f32.mrb[1].mxu0 }
 0x222   : > { %v423_v29 = vpop.f32.mrb[2].mxu0 }
 0x223   : > { %v426_v30 = vpack.c.bf16 %v421_v27, %v421_v27  ;;  %v588_v31 = vpop.f32.mrb[3].mxu0 }
 0x225   : > { %428 = vst.msk [vmem:[%s324_s16] sm:$0xf] %vm427_vm2, %v426_v30 }
 0x226 PF: > { %s15_s20 = sadd.s32 1, %s641_s20   ;;  %s738_s18 = smov %s637_s19 }
 0x227   : > { %p12_p5 = scmp.ge.s32.totalorder %s15_s20, 4   ;;  %s739_s19 = smov %s741_s21 }
 0x229   :  { %14 = sbr.rel (!%p12_p5) target bundleno = 2 (0x2), region = 82 }

// kernel: dit_decoder_forward.22
= control target key start
LH: loop header
LB: loop body
LE: loop exit
PB: predicated region body
PF: predicated region fallthrough
CT: control target
= control target key end

     0   :  { %vm19_vm0 = vcmask 261120   ;;  %v119_v0 = vmov 0.0   ;;  %vm120_vm1 = vmmov 0   ;;  %vm35_vm2 = vcmask 130048   ;;  %s165_s1 = inlined_call_operand.vmem [shape: bf16[16,32], index: 1, kind: input, shape index: {}]   ;;  %s166_s0 = inlined_call_operand.vmem [shape: f32[16,16], index: 0, kind: input, shape index: {}]   ;;  %s167_s2 = inlined_call_operand.vmem [shape: f32[1,32], index: 2, kind: input, shape index: {}]   ;;  %s168_s3 = inlined_call_operand.vmem [shape: f32[16,32], index: 3, kind: output, shape index: {}]  }
   0x1   :  { %20 = vst.msk [vmem:[#allocation2] sm:$0xff] %vm19_vm0, %v119_v0  ;;  %21 = vst.msk [vmem:[#allocation2 + $0x8] sm:$0xff] %vm19_vm0, %v119_v0  ;;  %110 = vmatprep.subr.bf16.mxu0 %v119_v0  ;;  %v118_v1 = vld [vmem:[%s165_s1] sm:$0xff]   ;;  %112 = vmatprep.mubr.msk.bf16.mxu0 %vm120_vm1, %v119_v0  ;;  %v25_v3 = vld [vmem:[%s166_s0 + $0x8] sm:$0xff] }
   0x2   :  { %v24_v2 = vld [vmem:[%s166_s0] sm:$0xff]  ;;  %111 = vmatpush3.bf16.msra.mxu0 %v118_v1 }
   0x3   :  { %v26_v4 = vpack.c.bf16 %v25_v3, %v24_v2  ;;  %v107_v13 = vld [vmem:[%s167_s2] ss:$0 sm:$0xff] }
   0x5   :  { %113 = vmatmul.mubr.msk.bf16.vlgmr.msra.gmra.mrb[0].mxu0 %vm35_vm2, %v26_v4 }
   0x8   :  { %v22_v5 = vld [vmem:[#allocation2] sm:$0xff]  ;;  %v23_v7 = vld [vmem:[#allocation2 + $0x8] sm:$0xff] }
  0xd8   :  { %v73_v6 = vpop.f32.mrb[0].mxu0 }
  0xd9   :  { %v80_v8 = vadd.f32 %v73_v6, %v22_v5  ;;  %v114_v9 = vpop.f32.mrb[1].mxu0 }
  0xda   :  { %v76_v10 = vpop.f32.mrb[2].mxu0 }
  0xdb   :  { %83 = vst.msk [vmem:[#allocation2] sm:$0xff] %vm19_vm0, %v80_v8  ;;  %v81_v11 = vadd.f32 %v76_v10, %v23_v7  ;;  %v115_v12 = vpop.f32.mrb[3].mxu0 }
  0xdd   :  { %84 = vst.msk [vmem:[#allocation2 + $0x8] sm:$0xff] %vm19_vm0, %v81_v11 }
  0xe2   :  { %v88_v14 = vld [vmem:[#allocation2] sm:$0xff] }
  0xe3   :  { %v97_v15 = vadd.f32 %v107_v13, %v88_v14 }
  0xe4   :  { %v89_v16 = vld [vmem:[#allocation2 + $0x8] sm:$0xff] }
  0xe5   :  { %99 = vst.msk [vmem:[%s168_s3] sm:$0xff] %vm19_vm0, %v97_v15  ;;  %v98_v17 = vadd.f32 %v107_v13, %v89_v16 }
  0xe7   :  { %100 = vst.msk [vmem:[%s168_s3 + $0x8] sm:$0xff] %vm19_vm0, %v98_v17 }

// kernel: dit_decoder_forward.29
= control target key start
LH: loop header
LB: loop body
LE: loop exit
PB: predicated region body
PF: predicated region fallthrough
CT: control target
= control target key end

     0   :  { %s686_s18 = smov 0   ;;  %s688_s19 = smov 0   ;;  %s743_s0 = inlined_call_operand.vmem [shape: f32[2,8,32], index: 0, kind: input, shape index: {}]   ;;  %s744_s1 = inlined_call_operand.vmem [shape: f32[2,1,32], index: 1, kind: input, shape index: {}]   ;;  %s745_s2 = inlined_call_operand.vmem [shape: f32[2,1,32], index: 2, kind: input, shape index: {}]   ;;  %s746_s3 = inlined_call_operand.vmem [shape: bf16[32,64], index: 3, kind: input, shape index: {}]   ;;  %s747_s4 = inlined_call_operand.vmem [shape: f32[1,64], index: 4, kind: input, shape index: {}]   ;;  %s748_s5 = inlined_call_operand.vmem [shape: bf16[2,8,64], index: 5, kind: output, shape index: {}]  }
   0x1   :  { %s690_s20 = smov 0  }
   0x2 LB: > { %s34_s21 = sadd.s32 1, %s648_s19  ;;  %p577_p0 = scmp.ge.s32.totalorder %s652_s20, 1  ;;  %s652_s20 = sphi %s690_s20, %s15_s20   ;;  %s648_s19 = sphi %s688_s19, %s750_s19   ;;  %s644_s18 = sphi %s686_s18, %s749_s18  }
   0x3   : > { %p36_p1 = scmp.ge.s32.totalorder %s34_s21, 2  ;;  %p247_p2 = scmp.lt.s32.totalorder %s652_s20, 3 }
   0x5   : > { %s752_s21 = smov (%p36_p1, %s34_s21), 0  ;;  %p248_p3 = pnand %p577_p0, %p247_p2 }
   0x6   : > { %p295_p4 = scmp.lt.s32.totalorder (!%p248_p3), %s644_s18, 1  ;;  %vm327_vm0 = vcmask (!%p248_p3), 261120   ;;  %v624_v7 = vld [vmem:[%s746_s3] sm:$0xff] (!%p248_p3)   ;;  %v654_v8 = vmov (!%p248_p3), 0.0   ;;  %v625_v9 = vld [vmem:[%s746_s3 + $0x8] sm:$0xff] (!%p248_p3)   ;;  %vm655_vm1 = vmmov (!%p248_p3), 0   ;;  %v345_v12 = vlaneseq (!%p248_p3) }
   0x7   : > { %251 = sbr.rel (%p248_p3) target bundleno = 577 (0x241), region = 40  ;;  %590 = vmatprep.subr.bf16.mxu0 (!%p248_p3), %v654_v8  ;;  %594 = vmatprep.mubr.msk.bf16.mxu0 (!%p248_p3), %vm655_vm1, %v654_v8  ;;  %v581_v25 = vld [vmem:[%s747_s4] ss:$0 sm:$0xff] (!%p248_p3)  ;;  %vm436_vm2 = vcmask (!%p248_p3), 519168  }
   0x8   : > { %591 = vmatpush3.bf16.msra.mxu0 (!%p248_p3), %v624_v7  ;;  %v346_v14 = vshrl.u32 (!%p248_p3), %v345_v12, 7 }
   0x9   : > { %592 = vmatprep.subr.bf16.mxu0 (!%p248_p3), %v654_v8 }
   0xa   : > { %v347_v17 = vsub.s32 (!%p248_p3), 0, %v346_v14 }
   0xc   : > { %593 = vmatpush3.bf16.msra.mxu0 (!%p248_p3), %v625_v9 }
   0xe   : > { %s754_s18 = smov (!%p295_p4, %s644_s18), 1 }
   0xf   : > { %s578_s22 = sshll.u32 %s754_s18, 3  ;;  %s304_s7 = scalar_lea.vmem %s744_s1, %s754_s18 }
  0x10   : > { %s301_s25 = scalar_lea.vmem %s743_s0, %s578_s22  ;;  %v342_v15 = vld [vmem:[%s304_s7] sm:$0x1]  ;;  %s307_s10 = scalar_lea.vmem %s745_s2, %s754_s18 }
  0x11   : > { %v326_v0 = vld [vmem:[%s301_s25] sm:$0xff]  ;;  %v343_v16 = vadd.f32 1.0, %v342_v15  ;;  %s579_s13 = sshll.u32 %s754_s18, 2 }
  0x12   : > { %v328_v1 = vsel %vm327_vm0, %v326_v0, 0.0  ;;  %v580_v21 = vld [vmem:[%s307_s10] ss:$0 sm:$0xff]  ;;  %s324_s16 = scalar_lea.vmem %s748_s5, %s579_s13 }
  0x13   : > { %329 = vadd.xlane.f32.xlu0 %v328_v1  ;;  %v348_v18 = vrot.slane %v343_v16, %v347_v17 }
  0xa0   : > { %v330_v2 = vpop.xlane.xlu0 %329 }
  0xa1   : > { %v332_v3 = vmul.f32 0.03125, %v330_v2 }
  0xa3   : > { %v333_v4 = vsub.f32 %v326_v0, %v332_v3 }
  0xa5   : > { %v334_v5 = vmul.f32 %v333_v4, %v333_v4 }
  0xa7   : > { %v335_v6 = vsel %vm327_vm0, %v334_v5, 0.0 }
  0xa8   : > { %336 = vadd.xlane.f32.xlu0 %v335_v6 }
 0x135   : > { %v337_v10 = vpop.xlane.xlu0 %336 }
 0x136   : > { %v338_v11 = vmul.f32 0.03125, %v337_v10 }
 0x138   : > { %v339_v13 = vadd.f32 1e-06, %v338_v11 }
 0x13a   : > { %626 = vrsqrt.f32 %v339_v13 }
 0x144   : > { %v627_v19 = vpop.eup %626 }
 0x145   : > { %v341_v20 = vmul.f32 %v627_v19, %v333_v4 }
 0x147   : > { %v350_v22 = vmul.f32 %v348_v18, %v341_v20 }
 0x149   : > { %v358_v23 = vadd.f32 %v580_v21, %v350_v22 }
 0x14b   : > { %v359_v24 = vpack.c.bf16 %v358_v23, %v358_v23 }
 0x14d   : > { %595 = vmatmul.mubr.msk.bf16.vlgmr.msra.gmra.mrb[0].mxu0 %vm327_vm0, %v359_v24 }
 0x220   : > { %v420_v26 = vpop.f32.mrb[0].mxu0 }
 0x221   : > { %v421_v27 = vadd.f32 %v581_v25, %v420_v26  ;;  %v596_v28 = vpop.f32.mrb[1].mxu0 }
 0x222   : > { %v423_v29 = vpop.f32.mrb[2].mxu0 }
 0x223   : > { %v426_v30 = vmul.f32 %v421_v27, %v421_v27  ;;  %v597_v31 = vpop.f32.mrb[3].mxu0 }
 0x225   : > { %v427_v32 = vmul.f32 %v426_v30, %v421_v27 }
 0x227   : > { %v428_v33 = vmul.f32 0.044715, %v427_v32 }
 0x229   : > { %v429_v34 = vadd.f32 %v428_v33, %v421_v27 }
 0x22b   : > { %v430_v35 = vmul.f32 0.7978846, %v429_v34 }
 0x22d   : > { %628 = vtanh.f32 %v430_v35 }
 0x237   : > { %v629_v36 = vpop.eup %628 }
 0x238   : > { %v432_v37 = vadd.f32 1.0, %v629_v36 }
 0x23a   : > { %v433_v38 = vmul.f32 0.5, %v432_v37 }
 0x23c   : > { %v434_v39 = vmul.f32 %v433_v38, %v421_v27 }
 0x23e   : > { %v435_v40 = vpack.c.bf16 %v434_v39, %v434_v39 }
 0x240   : > { %437 = vst.msk [vmem:[%s324_s16] sm:$0xf] %vm436_vm2, %v435_v40 }
 0x241 PF: > { %s15_s20 = sadd.s32 1, %s652_s20   ;;  %s749_s18 = smov %s648_s19 }
 0x242   : > { %p12_p5 = scmp.ge.s32.totalorder %s15_s20, 4   ;;  %s750_s19 = smov %s752_s21 }
 0x244   :  { %14 = sbr.rel (!%p12_p5) target bundleno = 2 (0x2), region = 82 }

// kernel: dit_decoder_forward.28
= control target key start
LH: loop header
LB: loop body
LE: loop exit
PB: predicated region body
PF: predicated region fallthrough
CT: control target
= control target key end

     0   :  { %s755_s18 = smov 0   ;;  %s757_s19 = smov 0   ;;  %s807_s0 = inlined_call_operand.vmem [shape: bf16[2,8,32], index: 0, kind: input, shape index: {}]   ;;  %s808_s1 = inlined_call_operand.vmem [shape: bf16[32,32], index: 1, kind: input, shape index: {}]   ;;  %s809_s2 = inlined_call_operand.vmem [shape: f32[1,32], index: 2, kind: input, shape index: {}]   ;;  %s810_s3 = inlined_call_operand.vmem [shape: f32[2,1,32], index: 3, kind: input, shape index: {}]   ;;  %s811_s4 = inlined_call_operand.vmem [shape: f32[2,8,32], index: 4, kind: input, shape index: {}]   ;;  %s812_s5 = inlined_call_operand.vmem [shape: f32[2,8,32], index: 5, kind: output, shape index: {}]  }
   0x1   :  { %s759_s20 = smov 0  }
   0x2 LB: > { %s41_s21 = sadd.s32 1, %s717_s19  ;;  %p649_p0 = scmp.ge.s32.totalorder %s721_s20, 1  ;;  %s721_s20 = sphi %s759_s20, %s15_s20   ;;  %s717_s19 = sphi %s757_s19, %s814_s19   ;;  %s713_s18 = sphi %s755_s18, %s813_s18  }
   0x3   : > { %p43_p1 = scmp.ge.s32.totalorder %s41_s21, 2  ;;  %p282_p2 = scmp.lt.s32.totalorder %s721_s20, 3 }
   0x5   : > { %s816_s21 = smov (%p43_p1, %s41_s21), 0  ;;  %p283_p3 = pnand %p649_p0, %p282_p2 }
   0x6   : > { %v697_v0 = vld [vmem:[%s808_s1] sm:$0xff] (!%p283_p3)   ;;  %v723_v1 = vmov (!%p283_p3), 0.0   ;;  %v698_v2 = vld [vmem:[%s808_s1 + $0x8] sm:$0xff] (!%p283_p3)   ;;  %vm724_vm0 = vmmov (!%p283_p3), 0   ;;  %p347_p4 = scmp.lt.s32.totalorder (!%p283_p3), %s713_s18, 1  ;;  %vm400_vm1 = vcmask (!%p283_p3), 261120  }
   0x7   : > { %286 = sbr.rel (%p283_p3) target bundleno = 247 (0xf7), region = 40  ;;  %663 = vmatprep.subr.bf16.mxu0 (!%p283_p3), %v723_v1  ;;  %667 = vmatprep.mubr.msk.bf16.mxu0 (!%p283_p3), %vm724_vm0, %v723_v1  ;;  %401 = vst.msk [vmem:[#allocation2] sm:$0xff] (!%p283_p3), %vm400_vm1, %v723_v1  ;;  %v656_v10 = vld [vmem:[%s809_s2] ss:$0 sm:$0xff] (!%p283_p3) }
   0x8   : > { %664 = vmatpush3.bf16.msra.mxu0 (!%p283_p3), %v697_v0 }
   0x9   : > { %665 = vmatprep.subr.bf16.mxu0 (!%p283_p3), %v723_v1 }
   0xc   : > { %666 = vmatpush3.bf16.msra.mxu0 (!%p283_p3), %v698_v2 }
   0xe   : > { %s818_s18 = smov (!%p347_p4, %s713_s18), 1  ;;  %v402_v4 = vld [vmem:[#allocation2] sm:$0xff] }
   0xf   : > { %s650_s26 = sshll.u32 %s818_s18, 2  ;;  %s651_s30 = sshll.u32 %s818_s18, 3 }
  0x10   : > { %s356_s29 = scalar_lea.vmem %s807_s0, %s650_s26  ;;  %s374_s8 = scalar_lea.vmem %s810_s3, %s818_s18 }
  0x11   : > { %v403_v3 = vld [vmem:[%s356_s29] sm:$0xf]  ;;  %s384_s13 = scalar_lea.vmem %s811_s4, %s651_s30  ;;  %s394_s16 = scalar_lea.vmem %s812_s5, %s651_s30 }
  0x12   : > { %668 = vmatmul.mubr.msk.bf16.vlgmr.msra.gmra.mrb[0].mxu0 %vm400_vm1, %v403_v3  ;;  %v657_v11 = vld [vmem:[%s374_s8] ss:$0 sm:$0xff] }
  0x13   : > { %v478_v14 = vld [vmem:[%s384_s13] sm:$0xff] }
  0xe5   : > { %v458_v5 = vpop.f32.mrb[0].mxu0 }
  0xe6   : > { %v464_v6 = vadd.f32 %v458_v5, %v402_v4  ;;  %v669_v7 = vpop.f32.mrb[1].mxu0 }
  0xe7   : > { %v461_v8 = vpop.f32.mrb[2].mxu0 }
  0xe8   : > { %465 = vst.msk [vmem:[#allocation2] sm:$0xff] %vm400_vm1, %v464_v6  ;;  %v670_v9 = vpop.f32.mrb[3].mxu0 }
  0xef   : > { %v469_v12 = vld [vmem:[#allocation2] sm:$0xff] }
  0xf0   : > { %v477_v13 = vadd.f32 %v656_v10, %v469_v12 }
  0xf2   : > { %v486_v15 = vmul.f32 %v657_v11, %v477_v13 }
  0xf4   : > { %v487_v16 = vadd.f32 %v486_v15, %v478_v14 }
  0xf6   : > { %488 = vst.msk [vmem:[%s394_s16] sm:$0xff] %vm400_vm1, %v487_v16 }
  0xf7 PF: > { %s15_s20 = sadd.s32 1, %s721_s20   ;;  %s813_s18 = smov %s717_s19 }
  0xf8   : > { %p12_p5 = scmp.ge.s32.totalorder %s15_s20, 4   ;;  %s814_s19 = smov %s816_s21 }
  0xfa   :  { %14 = sbr.rel (!%p12_p5) target bundleno = 2 (0x2), region = 90 }

// kernel: dit_decoder_forward.30
= control target key start
LH: loop header
LB: loop body
LE: loop exit
PB: predicated region body
PF: predicated region fallthrough
CT: control target
= control target key end

     0   :  { %s782_s18 = smov 0   ;;  %s784_s19 = smov 0   ;;  %s844_s0 = inlined_call_operand.vmem [shape: bf16[2,8,64], index: 0, kind: input, shape index: {}]   ;;  %s845_s1 = inlined_call_operand.vmem [shape: bf16[64,32], index: 1, kind: input, shape index: {}]   ;;  %s846_s2 = inlined_call_operand.vmem [shape: f32[1,32], index: 2, kind: input, shape index: {}]   ;;  %s847_s3 = inlined_call_operand.vmem [shape: f32[2,1,32], index: 3, kind: input, shape index: {}]   ;;  %s848_s4 = inlined_call_operand.vmem [shape: f32[2,8,32], index: 4, kind: input, shape index: {}]   ;;  %s849_s5 = inlined_call_operand.vmem [shape: f32[2,8,32], index: 5, kind: output, shape index: {}]  }
   0x1   :  { %s786_s20 = smov 0  }
   0x2 LB: > { %s41_s21 = sadd.s32 1, %s744_s19  ;;  %p666_p0 = scmp.ge.s32.totalorder %s748_s20, 1  ;;  %s748_s20 = sphi %s786_s20, %s15_s20   ;;  %s744_s19 = sphi %s784_s19, %s851_s19   ;;  %s740_s18 = sphi %s782_s18, %s850_s18  }
   0x3   : > { %p43_p1 = scmp.ge.s32.totalorder %s41_s21, 2  ;;  %p282_p2 = scmp.lt.s32.totalorder %s748_s20, 3 }
   0x5   : > { %s853_s21 = smov (%p43_p1, %s41_s21), 0  ;;  %p283_p3 = pnand %p666_p0, %p282_p2 }
   0x6   : > { %v722_v0 = vld [vmem:[%s845_s1] sm:$0xff] (!%p283_p3)   ;;  %v750_v1 = vmov (!%p283_p3), 0.0   ;;  %v723_v2 = vld [vmem:[%s845_s1 + $0x8] sm:$0xff] (!%p283_p3)   ;;  %vm751_vm0 = vmmov (!%p283_p3), 0   ;;  %p347_p4 = scmp.lt.s32.totalorder (!%p283_p3), %s740_s18, 1  ;;  %vm400_vm1 = vcmask (!%p283_p3), 261120  }
   0x7   : > { %286 = sbr.rel (%p283_p3) target bundleno = 252 (0xfc), region = 40  ;;  %684 = vmatprep.subr.bf16.mxu0 (!%p283_p3), %v750_v1  ;;  %692 = vmatprep.mubr.msk.bf16.mxu0 (!%p283_p3), %vm751_vm0, %v750_v1  ;;  %401 = vst.msk [vmem:[#allocation2] sm:$0xff] (!%p283_p3), %vm400_vm1, %v750_v1  ;;  %v724_v3 = vld [vmem:[%s845_s1 + $0x10] sm:$0xff] (!%p283_p3)   ;;  %v725_v4 = vld [vmem:[%s845_s1 + $0x18] sm:$0xff] (!%p283_p3)   ;;  %vm436_vm2 = vcmask (!%p283_p3), 523264  }
   0x8   : > { %685 = vmatpush3.bf16.msra.mxu0 (!%p283_p3), %v722_v0  ;;  %v675_v12 = vld [vmem:[%s846_s2] ss:$0 sm:$0xff] (!%p283_p3) }
   0x9   : > { %686 = vmatprep.subr.bf16.mxu0 (!%p283_p3), %v750_v1 }
   0xc   : > { %687 = vmatpush3.bf16.msra.mxu0 (!%p283_p3), %v723_v2 }
   0xd   : > { %688 = vmatprep.subr.bf16.mxu0 (!%p283_p3), %v750_v1 }
   0xe   : > { %s855_s18 = smov (!%p347_p4, %s740_s18), 1  ;;  %v402_v6 = vld [vmem:[#allocation2] sm:$0xff] }
   0xf   : > { %s667_s28 = sshll.u32 %s855_s18, 2  ;;  %s668_s9 = sshll.u32 %s855_s18, 3 }
  0x10   : > { %689 = vmatpush3.bf16.msra.mxu0 %v724_v3  ;;  %s356_s8 = scalar_lea.vmem %s844_s0, %s667_s28  ;;  %s374_s12 = scalar_lea.vmem %s847_s3, %s855_s18 }
  0x11   : > { %690 = vmatprep.subr.bf16.mxu0 %v750_v1  ;;  %v403_v5 = vld [vmem:[%s356_s8] sm:$0xf]  ;;  %s384_s17 = scalar_lea.vmem %s848_s4, %s668_s9  ;;  %s394_s24 = scalar_lea.vmem %s849_s5, %s668_s9 }
  0x12   : > { %v676_v13 = vld [vmem:[%s374_s12] ss:$0 sm:$0xff] }
  0x13   : > { %v495_v16 = vld [vmem:[%s384_s17] sm:$0xff] }
  0x14   : > { %691 = vmatpush3.bf16.msra.mxu0 %v725_v4 }
  0x17   : > { %693 = vmatmul.mubr.msk.bf16.vlgmr.msra.gmra.mrb[0].mxu0 %vm436_vm2, %v403_v5 }
  0xea   : > { %v474_v7 = vpop.f32.mrb[0].mxu0 }
  0xeb   : > { %v480_v8 = vadd.f32 %v474_v7, %v402_v6  ;;  %v694_v9 = vpop.f32.mrb[1].mxu0 }
  0xec   : > { %v477_v10 = vpop.f32.mrb[2].mxu0 }
  0xed   : > { %482 = vst.msk [vmem:[#allocation2] sm:$0xff] %vm400_vm1, %v480_v8  ;;  %v695_v11 = vpop.f32.mrb[3].mxu0 }
  0xf4   : > { %v486_v14 = vld [vmem:[#allocation2] sm:$0xff] }
  0xf5   : > { %v494_v15 = vadd.f32 %v675_v12, %v486_v14 }
  0xf7   : > { %v503_v17 = vmul.f32 %v676_v13, %v494_v15 }
  0xf9   : > { %v504_v18 = vadd.f32 %v503_v17, %v495_v16 }
  0xfb   : > { %505 = vst.msk [vmem:[%s394_s24] sm:$0xff] %vm400_vm1, %v504_v18 }
  0xfc PF: > { %s15_s20 = sadd.s32 1, %s748_s20   ;;  %s850_s18 = smov %s744_s19 }
  0xfd   : > { %p12_p5 = scmp.ge.s32.totalorder %s15_s20, 4   ;;  %s851_s19 = smov %s853_s21 }
  0xff   :  { %14 = sbr.rel (!%p12_p5) target bundleno = 2 (0x2), region = 90 }

// kernel: dit_decoder_forward.27
= control target key start
LH: loop header
LB: loop body
LE: loop exit
PB: predicated region body
PF: predicated region fallthrough
CT: control target
= control target key end

     0   :  { %s1321_s30 = smov 0   ;;  %s1323_s10 = smov 0   ;;  %s1423_s0 = inlined_call_operand.vmem [shape: bf16[2,4,8,8], index: 0, kind: input, shape index: {}]   ;;  %s1424_s1 = inlined_call_operand.vmem [shape: bf16[2,4,8,8], index: 1, kind: input, shape index: {}]   ;;  %s1425_s2 = inlined_call_operand.vmem [shape: bf16[2,4,8,8], index: 2, kind: input, shape index: {}]   ;;  %s1426_s3 = inlined_call_operand.vmem [shape: f32[2,1,8], index: 3, kind: input, shape index: {}]   ;;  %s1427_s4 = inlined_call_operand.vmem [shape: f32[8,8], index: 4, kind: input, shape index: {}, may-alias: {4,6}]   ;;  %s1428_s5 = inlined_call_operand.vmem [shape: f32[8,8], index: 5, kind: input, shape index: {}, may-alias: {5,7}]   ;;  %s1429_s6 = inlined_call_operand.vmem [shape: f32[8,8], index: 6, kind: input, shape index: {}, may-alias: {4,6}]   ;;  %s1430_s7 = inlined_call_operand.vmem [shape: f32[8,8], index: 7, kind: input, shape index: {}, may-alias: {5,7}]   ;;  %s1431_s8 = inlined_call_operand.vmem [shape: f32[8,8], index: 8, kind: input, shape index: {}]   ;;  %s1432_s9 = inlined_call_operand.vmem [shape: bf16[2,4,8,8], index: 9, kind: output, shape index: {}]  }
   0x1   :  { %s1325_s11 = smov 0   ;;  %s1327_s12 = smov 0  }
   0x2   :  { %s1329_s13 = smov 0  }
   0x3 LB: > { %s41_s14 = sadd.s32 1, %s1257_s11  ;;  %s45_s15 = sadd.s32 1, %s1261_s12  ;;  %s1265_s13 = sphi %s1329_s13, %s19_s13   ;;  %s1261_s12 = sphi %s1327_s12, %s1436_s12   ;;  %s1257_s11 = sphi %s1325_s11, %s1435_s11   ;;  %s1253_s10 = sphi %s1323_s10, %s1434_s10   ;;  %s1249_s30 = sphi %s1321_s30, %s1433_s30  }
   0x4   : > { %p43_p0 = scmp.ge.s32.totalorder %s41_s14, 4  ;;  %p1129_p1 = scmp.ge.s32.totalorder %s1265_s13, 1 }
   0x5   : > { %p416_p2 = scmp.lt.s32.totalorder %s1265_s13, 9 }
   0x6   : > { %s1438_s14 = smov (%p43_p0, %s41_s14), 0  ;;  %s1440_s15 = smov (!%p43_p0, %s45_s15), %s1261_s12 }
   0x7   : > { %p417_p3 = pnand %p1129_p1, %p416_p2  ;;  %p47_p4 = scmp.ge.s32.totalorder %s1440_s15, 2 }
   0x8   : > { %v584_v0 = vld [vmem:[%s1431_s8] sm:$0xff] (!%p417_p3)  ;;  %p508_p5 = scmp.lt.s32.totalorder (!%p417_p3), %s1253_s10, 1  ;;  %p510_p6 = scmp.lt.s32.totalorder (!%p417_p3), %s1249_s30, 3  ;;  %vm582_vm0 = vcmask (!%p417_p3), 64512   ;;  %v1267_v1 = vmov (!%p417_p3), 0.0   ;;  %vm1268_vm1 = vmmov (!%p417_p3), 0  }
   0x9   : > { %s1442_s15 = smov (%p47_p4, %s1440_s15), 0  ;;  %420 = sbr.rel (%p417_p3) target bundleno = 1051 (0x41b), region = 56 }
   0xa   : > { %1158 = vmatprep.subr.mxu1 (!%p417_p3), %v1267_v1  ;;  %1160 = vmatprep.mubr.msk.f32.mxu1 (!%p417_p3), %vm1268_vm1, %v1267_v1  ;;  %583 = vst.msk [vmem:[#allocation4] sm:$0xff] (!%p417_p3), %vm582_vm0, %v1267_v1  ;;  %v668_v6 = vld [vmem:[%s1429_s6] sm:$0xff] (!%p417_p3)  ;;  %vm579_vm2 = vcmask (!%p417_p3), 7168   ;;  %v1269_v23 = vmov (!%p417_p3), -1e+30   ;;  %v1270_v32 = vmov (!%p417_p3), 0  }
   0xb   : > { %1159 = vmatpush3.msra.mxu1 (!%p417_p3), %v584_v0  ;;  %1153 = vmatprep.subr.mxu0 (!%p417_p3), %v1267_v1  ;;  %v743_v7 = vld [vmem:[%s1430_s7] sm:$0xff] (!%p417_p3)  ;;  %580 = vst.msk [vmem:[#allocation2] sm:$0xff] (!%p417_p3), %vm579_vm2, %v1269_v23  ;;  %581 = vst.msk [vmem:[#allocation3] sm:$0xff] (!%p417_p3), %vm579_vm2, %v1267_v1  ;;  %vm839_vm3 = vcmask (!%p417_p3), 1043456   ;;  %vm899_vm4 = vcmask (!%p417_p3), 60416  }
   0xc   : > { %1154 = vmatpush3.msra.mxu0 (!%p417_p3), %v584_v0  ;;  %1155 = vmatprep.mubr.msk.f32.mxu0 (!%p417_p3), %vm1268_vm1, %v1267_v1  ;;  %v589_v10 = vld [vmem:[%s1427_s4] sm:$0xff] (!%p417_p3) }
   0xd   : > { %1163 = vmatprep.subr.bf16.mxu0 (!%p417_p3), %v1267_v1  ;;  %1169 = vmatprep.subr.bf16.mxu1 (!%p417_p3), %v1267_v1  ;;  %v665_v12 = vld [vmem:[%s1428_s5] sm:$0xff] (!%p417_p3) }
   0xe   : > { %1219 = vset.pattern.permute.xlu0 (!%p417_p3), %v1270_v32  ;;  %1220 = vset.pattern.permute.xlu1 (!%p417_p3), %v1270_v32 }
  0x10   : > { %s1444_s10 = smov (!%p508_p5, %s1253_s10), 1  ;;  %s1446_s30 = smov (!%p510_p6, %s1249_s30), 3 }
  0x11   : > { %s1130_s18 = sshll.u32 %s1444_s10, 2  ;;  %v827_v53 = vld [vmem:[#allocation4] sm:$0xff] }
  0x12   : > { %s516_s19 = sadd.s32 %s1130_s18, %s1446_s30  ;;  %v803_v33 = vld [vmem:[#allocation2] sm:$0xff]  ;;  %v819_v47 = vld [vmem:[#allocation3] sm:$0xff] }
  0x13   : > { %s1360_s20 = sshll.u32 %s516_s19, 2 }
  0x14   : > { %s529_s23 = scalar_lea.vmem %s1424_s1, %s1360_s20  ;;  %s518_s26 = scalar_lea.vmem %s1423_s0, %s1360_s20 }
  0x15   : > { %v587_v2 = vld [vmem:[%s529_s23] sm:$0xf]  ;;  %s546_s23 = scalar_lea.vmem %s1426_s3, %s1444_s10  ;;  %s540_s25 = scalar_lea.vmem %s1425_s2, %s1360_s20 }
  0x16   : > { %v585_v3 = vld [vmem:[%s518_s26] sm:$0xf]  ;;  %v588_v4 = vunpack.c.l.bf16 %v587_v2  ;;  %s573_s28 = scalar_lea.vmem %s1432_s9, %s1360_s20 }
  0x17   : > { %v586_v5 = vunpack.c.l.bf16 %v585_v3  ;;  %v1141_v25 = vld [vmem:[%s546_s23] ss:$0 sm:$0xff] }
  0x18   : > { %1161 = vmatmul.mubr.msk.f32.vlgmr.msra.gmra.mrb[0].mxu1 %vm582_vm0, %v588_v4  ;;  %v669_v8 = vmul.f32 %v668_v6, %v588_v4  ;;  %v835_v37 = vld [vmem:[%s540_s25] sm:$0xf] }
  0x19   : > { %1156 = vmatmul.mubr.msk.f32.vlgmr.msra.gmra.mrb[0].mxu0 %vm582_vm0, %v586_v5  ;;  %1171 = vmatprep.mubr.msk.bf16.mxu1 %vm1268_vm1, %v1267_v1  ;;  %v590_v17 = vmul.f32 %v589_v10, %v586_v5  ;;  %v841_v38 = vsel %vm839_vm3, %v835_v37, 0 }
  0x1a   : > { %1165 = vmatprep.mubr.msk.bf16.mxu0 %vm1268_vm1, %v1267_v1  ;;  %1170 = vmatpush3.bf16.msra.mxu1 %v841_v38 }
  0xeb   : > { %v739_v9 = vpop.f32.mrb[0].mxu1 }
  0xec   : > { %v661_v11 = vpop.f32.mrb[0].mxu0  ;;  %v744_v13 = vmul.f32 %v743_v7, %v739_v9  ;;  %v1162_v14 = vpop.f32.mrb[1].mxu1 }
  0xed   : > { %v1157_v15 = vpop.f32.mrb[1].mxu0  ;;  %v666_v18 = vmul.f32 %v665_v12, %v661_v11 }
  0xee   : > { %v745_v16 = vadd.f32 %v744_v13, %v669_v8 }
  0xef   : > { %v667_v20 = vadd.f32 %v666_v18, %v590_v17 }
  0xf0   : > { %v747_v19 = vpack.c.bf16 %v745_v16, %v745_v16 }
  0xf1   : > { %v746_v22 = vpack.c.bf16 %v667_v20, %v667_v20 }
  0xf2   : > { %v752_v21 = vsel %vm582_vm0, %v747_v19, 0 }
  0xf3   : > { %1164 = vmatpush3.bf16.xpose.msra.mxu0 %v752_v21 }
  0xfa   : > { %1166 = vmatmul.mubr.msk.bf16.vlgmr.msra.gmra.mrb[4].mxu0 %vm582_vm0, %v746_v22 }
 0x1cd   : > { %v788_v24 = vpop.f32.mrb[4].mxu0 }
 0x1ce   : > { %v794_v26 = vmul.f32 0.35355338, %v788_v24  ;;  %v1167_v27 = vpop.f32.mrb[5].mxu0 }
 0x1cf   : > { %v791_v28 = vpop.f32.mrb[6].mxu0 }
 0x1d0   : > { %v1168_v29 = vpop.f32.mrb[7].mxu0  ;;  %v802_v30 = vadd.f32 %v1141_v25, %v794_v26 }
 0x1d2   : > { %v804_v31 = vsel %vm582_vm0, %v802_v30, -inf }
 0x1d3   : > { %805 = vmax.xlane.f32.xlu0 %v804_v31 }
 0x260   : > { %v806_v34 = vpop.xlane.xlu0 %805 }
 0x261   : > { %v807_v35 = vmax.f32 %v803_v33, %v806_v34 }
 0x263   : > { %v808_v36 = vsub.f32 %v803_v33, %v807_v35  ;;  %885 = vst.msk [vmem:[#allocation2] sm:$0xff] %vm579_vm2, %v807_v35  ;;  %813 = vperm.xlu0 %1219, %v807_v35  }
 0x265   : > { %v809_v45 = vmul.f32 1.442695, %v808_v36 }
 0x2e2   : > { %v814_v39 = vpop.permute.xlu0 %813 }
 0x2e3   : > { %v816_v40 = vsub.f32 %v802_v30, %v814_v39 }
 0x2e5   : > { %v817_v41 = vmul.f32 1.442695, %v816_v40 }
 0x2e7   : > { %1221 = vpow2.f32 %v817_v41 }
 0x2e8   : > { %1223 = vpow2.f32 %v809_v45 }
 0x2f1   : > { %v1222_v42 = vpop.eup %1221 }
 0x2f2   : > { %v821_v43 = vsel %vm582_vm0, %v1222_v42, 0.0  ;;  %v834_v44 = vpack.c.bf16 %v1222_v42, %v1222_v42  ;;  %v1224_v46 = vpop.eup %1223 }
 0x2f3   : > { %822 = vadd.xlane.f32.xlu1 %v821_v43  ;;  %v820_v48 = vmul.f32 %v1224_v46, %v819_v47 }
 0x2f4   : > { %1172 = vmatmul.mubr.msk.bf16.vlgmr.msra.gmra.mrb[4].mxu1 %vm582_vm0, %v834_v44 }
 0x304   : > { %830 = vperm.xlu1 %1220, %v1224_v46  }
 0x380   : > { %v823_v49 = vpop.xlane.xlu1 %822 }
 0x381   : > { %v824_v50 = vadd.f32 %v823_v49, %v820_v48 }
 0x383   : > { %826 = vst.msk [vmem:[#allocation3] sm:$0xff] %vm579_vm2, %v824_v50 }
 0x384   : > { %v831_v54 = vpop.permute.xlu1 %830 }
 0x385   : > { %v833_v55 = vmul.f32 %v831_v54, %v827_v53 }
 0x38a   : > { %v890_v51 = vld [vmem:[#allocation3] sm:$0xff] }
 0x38b   : > { %1225 = vrcp.f32 %v890_v51 }
 0x395   : > { %v1226_v52 = vpop.eup %1225 }
 0x396   : > { %894 = vperm.xlu1 %1220, %v1226_v52  }
 0x3c7   : > { %v877_v56 = vpop.f32.mrb[4].mxu1 }
 0x3c8   : > { %v883_v57 = vadd.f32 %v877_v56, %v833_v55  ;;  %v1173_v58 = vpop.f32.mrb[5].mxu1 }
 0x3c9   : > { %v880_v59 = vpop.f32.mrb[6].mxu1 }
 0x3ca   : > { %884 = vst.msk [vmem:[#allocation4] sm:$0xff] %vm582_vm0, %v883_v57  ;;  %v1174_v60 = vpop.f32.mrb[7].mxu1 }
 0x3d1   : > { %v889_v61 = vld [vmem:[#allocation4] sm:$0xff] }
 0x415   : > { %v895_v62 = vpop.permute.xlu1 %894 }
 0x416   : > { %v897_v63 = vmul.f32 %v895_v62, %v889_v61 }
 0x418   : > { %v898_v0 = vpack.c.bf16 %v897_v63, %v897_v63 }
 0x41a   : > { %900 = vst.msk [vmem:[%s573_s28] sm:$0xf] %vm899_vm4, %v898_v0 }
 0x41b PF: > { %s19_s13 = sadd.s32 1, %s1265_s13   ;;  %s1433_s30 = smov %s1257_s11 }
 0x41c   : > { %p16_p7 = scmp.ge.s32.totalorder %s19_s13, 10   ;;  %s1434_s10 = smov %s1261_s12 }
 0x41d   : > { %s1435_s11 = smov %s1438_s14  ;;  %s1436_s12 = smov %s1442_s15 }
 0x41e   :  { %18 = sbr.rel (!%p16_p7) target bundleno = 3 (0x3), region = 115 }

// kernel: dit_decoder_forward.36
= control target key start
LH: loop header
LB: loop body
LE: loop exit
PB: predicated region body
PF: predicated region fallthrough
CT: control target
= control target key end

     0   :  { %s673_s18 = smov 0   ;;  %s675_s19 = smov 0   ;;  %s734_s0 = inlined_call_operand.vmem [shape: f32[2,8,32], index: 0, kind: input, shape index: {}]   ;;  %s735_s1 = inlined_call_operand.vmem [shape: f32[2,1,32], index: 1, kind: input, shape index: {}, may-alias: {1,2}]   ;;  %s736_s2 = inlined_call_operand.vmem [shape: f32[2,1,32], index: 2, kind: input, shape index: {}, may-alias: {1,2}]   ;;  %s737_s3 = inlined_call_operand.vmem [shape: bf16[32,32], index: 3, kind: input, shape index: {}]   ;;  %s738_s4 = inlined_call_operand.vmem [shape: f32[1,32], index: 4, kind: input, shape index: {}]   ;;  %s739_s5 = inlined_call_operand.vmem [shape: f32[2,8,32], index: 5, kind: output, shape index: {}]  }
   0x1   :  { %s677_s20 = smov 0  }
   0x2 LB: > { %s34_s21 = sadd.s32 1, %s635_s19  ;;  %p566_p0 = scmp.ge.s32.totalorder %s639_s20, 1  ;;  %s639_s20 = sphi %s677_s20, %s15_s20   ;;  %s635_s19 = sphi %s675_s19, %s741_s19   ;;  %s631_s18 = sphi %s673_s18, %s740_s18  }
   0x3   : > { %p36_p1 = scmp.ge.s32.totalorder %s34_s21, 2  ;;  %p247_p2 = scmp.lt.s32.totalorder %s639_s20, 3 }
   0x5   : > { %s743_s21 = smov (%p36_p1, %s34_s21), 0  ;;  %p248_p3 = pnand %p566_p0, %p247_p2 }
   0x6   : > { %p295_p4 = scmp.lt.s32.totalorder (!%p248_p3), %s631_s18, 1  ;;  %vm327_vm0 = vcmask (!%p248_p3), 261120   ;;  %v613_v7 = vld [vmem:[%s737_s3] sm:$0xff] (!%p248_p3)   ;;  %v641_v8 = vmov (!%p248_p3), 0.0   ;;  %v614_v9 = vld [vmem:[%s737_s3 + $0x8] sm:$0xff] (!%p248_p3)   ;;  %vm642_vm1 = vmmov (!%p248_p3), 0   ;;  %v345_v12 = vlaneseq (!%p248_p3) }
   0x7   : > { %251 = sbr.rel (%p248_p3) target bundleno = 548 (0x224), region = 40  ;;  %579 = vmatprep.subr.bf16.mxu0 (!%p248_p3), %v641_v8  ;;  %583 = vmatprep.mubr.msk.bf16.mxu0 (!%p248_p3), %vm642_vm1, %v641_v8  ;;  %v570_v25 = vld [vmem:[%s738_s4] ss:$0 sm:$0xff] (!%p248_p3) }
   0x8   : > { %580 = vmatpush3.bf16.msra.mxu0 (!%p248_p3), %v613_v7  ;;  %v346_v14 = vshrl.u32 (!%p248_p3), %v345_v12, 7 }
   0x9   : > { %581 = vmatprep.subr.bf16.mxu0 (!%p248_p3), %v641_v8 }
   0xa   : > { %v347_v17 = vsub.s32 (!%p248_p3), 0, %v346_v14 }
   0xc   : > { %582 = vmatpush3.bf16.msra.mxu0 (!%p248_p3), %v614_v9 }
   0xe   : > { %s745_s18 = smov (!%p295_p4, %s631_s18), 1 }
   0xf   : > { %s567_s22 = sshll.u32 %s745_s18, 3  ;;  %s304_s7 = scalar_lea.vmem %s735_s1, %s745_s18 }
  0x10   : > { %s301_s25 = scalar_lea.vmem %s734_s0, %s567_s22  ;;  %v342_v15 = vld [vmem:[%s304_s7] sm:$0x1]  ;;  %s307_s10 = scalar_lea.vmem %s736_s2, %s745_s18 }
  0x11   : > { %v326_v0 = vld [vmem:[%s301_s25] sm:$0xff]  ;;  %v343_v16 = vadd.f32 1.0, %v342_v15  ;;  %s324_s15 = scalar_lea.vmem %s739_s5, %s567_s22 }
  0x12   : > { %v328_v1 = vsel %vm327_vm0, %v326_v0, 0.0  ;;  %v569_v21 = vld [vmem:[%s307_s10] ss:$0 sm:$0xff] }
  0x13   : > { %329 = vadd.xlane.f32.xlu0 %v328_v1  ;;  %v348_v18 = vrot.slane %v343_v16, %v347_v17 }
  0xa0   : > { %v330_v2 = vpop.xlane.xlu0 %329 }
  0xa1   : > { %v332_v3 = vmul.f32 0.03125, %v330_v2 }
  0xa3   : > { %v333_v4 = vsub.f32 %v326_v0, %v332_v3 }
  0xa5   : > { %v334_v5 = vmul.f32 %v333_v4, %v333_v4 }
  0xa7   : > { %v335_v6 = vsel %vm327_vm0, %v334_v5, 0.0 }
  0xa8   : > { %336 = vadd.xlane.f32.xlu0 %v335_v6 }
 0x135   : > { %v337_v10 = vpop.xlane.xlu0 %336 }
 0x136   : > { %v338_v11 = vmul.f32 0.03125, %v337_v10 }
 0x138   : > { %v339_v13 = vadd.f32 1e-06, %v338_v11 }
 0x13a   : > { %615 = vrsqrt.f32 %v339_v13 }
 0x144   : > { %v616_v19 = vpop.eup %615 }
 0x145   : > { %v341_v20 = vmul.f32 %v616_v19, %v333_v4 }
 0x147   : > { %v350_v22 = vmul.f32 %v348_v18, %v341_v20 }
 0x149   : > { %v358_v23 = vadd.f32 %v569_v21, %v350_v22 }
 0x14b   : > { %v359_v24 = vpack.c.bf16 %v358_v23, %v358_v23 }
 0x14d   : > { %584 = vmatmul.mubr.msk.bf16.vlgmr.msra.gmra.mrb[0].mxu0 %vm327_vm0, %v359_v24 }
 0x220   : > { %v420_v26 = vpop.f32.mrb[0].mxu0 }
 0x221   : > { %v421_v27 = vadd.f32 %v570_v25, %v420_v26  ;;  %v585_v28 = vpop.f32.mrb[1].mxu0 }
 0x222   : > { %v423_v29 = vpop.f32.mrb[2].mxu0 }
 0x223   : > { %426 = vst.msk [vmem:[%s324_s15] sm:$0xff] %vm327_vm0, %v421_v27  ;;  %v586_v30 = vpop.f32.mrb[3].mxu0 }
 0x224 PF: > { %s15_s20 = sadd.s32 1, %s639_s20   ;;  %s740_s18 = smov %s635_s19 }
 0x225   : > { %p12_p5 = scmp.ge.s32.totalorder %s15_s20, 4   ;;  %s741_s19 = smov %s743_s21 }
 0x227   :  { %14 = sbr.rel (!%p12_p5) target bundleno = 2 (0x2), region = 82 }

// kernel: dit_decoder_forward.38
= control target key start
LH: loop header
LB: loop body
LE: loop exit
PB: predicated region body
PF: predicated region fallthrough
CT: control target
= control target key end

     0   :  { %s551_s12 = smov 0   ;;  %s605_s0 = inlined_call_operand.vmem [shape: f32[2,8,48], index: 0, kind: input, shape index: {}]   ;;  %s606_s1 = inlined_call_operand.vmem [shape: bf16[144,64], index: 1, kind: input, shape index: {}]   ;;  %s607_s2 = inlined_call_operand.vmem [shape: f32[1,64], index: 2, kind: input, shape index: {}]   ;;  %s608_s3 = inlined_call_operand.vmem [shape: bf16[2,8,64], index: 3, kind: output, shape index: {}]  }
   0x1 LB: > { %s438_s13 = sadd.s32 4294967295, %s527_s12   ;;  %p442_p0 = scmp.ge.s32.totalorder %s527_s12, 1  ;;  %s527_s12 = sphi %s551_s12, %s13_s12  }
   0x2   : > { %p136_p1 = scmp.lt.s32.totalorder %s527_s12, 3 }
   0x4   : > { %p137_p2 = pnand %p442_p0, %p136_p1 }
   0x5   : > { %v512_v0 = vld [vmem:[%s606_s1] sm:$0xff] (!%p137_p2)   ;;  %v529_v1 = vmov (!%p137_p2), 0.0   ;;  %v513_v2 = vld [vmem:[%s606_s1 + $0x8] sm:$0xff] (!%p137_p2)   ;;  %vm530_vm0 = vmmov (!%p137_p2), 0   ;;  %p158_p3 = scmp.lt.s32.totalorder (!%p137_p2), %s438_s13, 1  ;;  %v515_v3 = vld [vmem:[%s606_s1 + $0x30] sm:$0xff] (!%p137_p2)   ;;  %v307_v14 = vlaneseq (!%p137_p2) }
   0x6   : > { %140 = sbr.rel (%p137_p2) target bundleno = 252 (0xfc), region = 32  ;;  %472 = vmatprep.subr.bf16.mxu0 (!%p137_p2), %v529_v1  ;;  %482 = vmatprep.subr.bf16.mxu1 (!%p137_p2), %v529_v1  ;;  %v516_v4 = vld [vmem:[%s606_s1 + $0x38] sm:$0xff] (!%p137_p2)   ;;  %v514_v5 = vld [vmem:[%s606_s1 + $0x10] sm:$0xff] (!%p137_p2)   ;;  %v518_v8 = vld [vmem:[%s606_s1 + $0x40] sm:$0xff] (!%p137_p2)   ;;  %vm193_vm1 = vcmask (!%p137_p2), 392192   ;;  %vm383_vm4 = vcmask (!%p137_p2), 519168  }
   0x7   : > { %473 = vmatpush3.bf16.msra.mxu0 (!%p137_p2), %v512_v0  ;;  %478 = vmatprep.mubr.msk.bf16.mxu0 (!%p137_p2), %vm530_vm0, %v529_v1  ;;  %v517_v9 = vld [vmem:[%s606_s1 + $0x18] sm:$0xff] (!%p137_p2)   ;;  %v519_v10 = vld [vmem:[%s606_s1 + $0x20] sm:$0xff] (!%p137_p2)   ;;  %v520_v11 = vld [vmem:[%s606_s1 + $0x28] sm:$0xff] (!%p137_p2)   ;;  %v308_v19 = vshrl.u32 (!%p137_p2), %v307_v14, 7 }
   0x8   : > { %474 = vmatprep.subr.bf16.mxu0 (!%p137_p2), %v529_v1  ;;  %488 = vmatprep.mubr.msk.bf16.mxu1 (!%p137_p2), %vm530_vm0, %v529_v1  ;;  %v457_v29 = vld [vmem:[%s607_s2] ss:$0 sm:$0xff] (!%p137_p2) }
   0x9   : > { %483 = vmatpush3.bf16.msra.mxu1 (!%p137_p2), %v515_v3  ;;  %vm312_vm2 = vcmp.lt.s32.totalorder (!%p137_p2), %v308_v19, 7  ;;  %vm309_vm3 = vcmp.ge.s32.totalorder (!%p137_p2), %v308_v19, 1 }
   0xa   : > { %484 = vmatprep.subr.bf16.mxu1 (!%p137_p2), %v529_v1 }
   0xb   : > { %475 = vmatpush3.bf16.msra.mxu0 (!%p137_p2), %v513_v2 }
   0xc   : > { %476 = vmatprep.subr.bf16.mxu0 (!%p137_p2), %v529_v1 }
   0xd   : > { %s610_s13 = smov (!%p158_p3, %s438_s13), 1  ;;  %485 = vmatpush3.bf16.msra.mxu1 %v516_v4 }
   0xe   : > { %s443_s24 = sshll.u32 %s610_s13, 3  ;;  %486 = vmatprep.subr.bf16.mxu1 %v529_v1  ;;  %s444_s11 = sshll.u32 %s610_s13, 2 }
   0xf   : > { %s161_s27 = scalar_lea.vmem %s605_s0, %s443_s24  ;;  %477 = vmatpush3.bf16.msra.mxu0 %v514_v5  ;;  %s165_s16 = scalar_lea.vmem %s608_s3, %s444_s11 }
  0x10   : > { %v167_v6 = vld [vmem:[%s161_s27] sm:$0xff]  ;;  %492 = vmatprep.subr.bf16.mxu0 %v529_v1 }
  0x11   : > { %v168_v7 = vpack.c.bf16 %v167_v6, %v167_v6  ;;  %487 = vmatpush3.bf16.msra.mxu1 %v518_v8 }
  0x13   : > { %479 = vmatmul.mubr.msk.bf16.vlgmr.msra.gmra.mrb[0].mxu0 %vm193_vm1, %v168_v7 }
  0x14   : > { %493 = vmatpush3.bf16.msra.mxu0 %v517_v9  ;;  %498 = vmatprep.mubr.msk.bf16.mxu0 %vm530_vm0, %v529_v1 }
  0x15   : > { %494 = vmatprep.subr.bf16.mxu0 %v529_v1  ;;  %489 = vmatmul.mubr.msk.bf16.vlgmr.msra.gmra.mrb[0].mxu1 %vm193_vm1, %v168_v7 }
  0x18   : > { %495 = vmatpush3.bf16.msra.mxu0 %v519_v10 }
  0x19   : > { %496 = vmatprep.subr.bf16.mxu0 %v529_v1 }
  0x1c   : > { %497 = vmatpush3.bf16.msra.mxu0 %v520_v11 }
  0x1f   : > { %499 = vmatmul.mubr.msk.bf16.vlgmr.msra.gmra.mrb[4].mxu0 %vm193_vm1, %v168_v7 }
  0xe6   : > { %v231_v12 = vpop.f32.mrb[0].mxu0 }
  0xe7   : > { %v480_v13 = vpop.f32.mrb[1].mxu0  ;;  %v310_v22 = vrot.slane %v231_v12, 7 }
  0xe8   : > { %v234_v15 = vpop.f32.mrb[2].mxu0  ;;  %v301_v17 = vpop.f32.mrb[0].mxu1 }
  0xe9   : > { %v481_v16 = vpop.f32.mrb[3].mxu0  ;;  %v490_v18 = vpop.f32.mrb[1].mxu1  ;;  %v313_v23 = vrot.slane %v301_v17, 1  ;;  %v311_v25 = vsel %vm309_vm3, %v310_v22, 0.0 }
  0xea   : > { %v304_v20 = vpop.f32.mrb[2].mxu1 }
  0xeb   : > { %v491_v21 = vpop.f32.mrb[3].mxu1  ;;  %v314_v24 = vsel %vm312_vm2, %v313_v23, 0.0 }
  0xf2   : > { %v367_v26 = vpop.f32.mrb[4].mxu0 }
  0xf3   : > { %v368_v27 = vadd.f32 %v367_v26, %v311_v25  ;;  %v500_v28 = vpop.f32.mrb[5].mxu0 }
  0xf4   : > { %v370_v30 = vpop.f32.mrb[6].mxu0 }
  0xf5   : > { %v373_v31 = vadd.f32 %v368_v27, %v314_v24  ;;  %v501_v32 = vpop.f32.mrb[7].mxu0 }
  0xf7   : > { %v381_v33 = vadd.f32 %v457_v29, %v373_v31 }
  0xf9   : > { %v382_v34 = vpack.c.bf16 %v381_v33, %v381_v33 }
  0xfb   : > { %384 = vst.msk [vmem:[%s165_s16] sm:$0xf] %vm383_vm4, %v382_v34 }
  0xfc PF: > { %s13_s12 = sadd.s32 1, %s527_s12  }
  0xfd   : > { %p10_p4 = scmp.ge.s32.totalorder %s13_s12, 4  }
  0xff   :  { %12 = sbr.rel (!%p10_p4) target bundleno = 1 (0x1), region = 62 }

// kernel: dit_decoder_forward.39
= control target key start
LH: loop header
LB: loop body
LE: loop exit
PB: predicated region body
PF: predicated region fallthrough
CT: control target
= control target key end

     0   :  { %s594_s12 = smov 0   ;;  %s663_s0 = inlined_call_operand.vmem [shape: bf16[2,8,64], index: 0, kind: input, shape index: {}]   ;;  %s664_s1 = inlined_call_operand.vmem [shape: bf16[192,64], index: 1, kind: input, shape index: {}]   ;;  %s665_s2 = inlined_call_operand.vmem [shape: f32[1,64], index: 2, kind: input, shape index: {}]   ;;  %s666_s3 = inlined_call_operand.vmem [shape: bf16[2,8,64], index: 3, kind: output, shape index: {}]  }
   0x1 LB: > { %s466_s13 = sadd.s32 4294967295, %s570_s12   ;;  %p470_p0 = scmp.ge.s32.totalorder %s570_s12, 1  ;;  %s570_s12 = sphi %s594_s12, %s13_s12  }
   0x2   : > { %p136_p1 = scmp.lt.s32.totalorder %s570_s12, 3 }
   0x4   : > { %p137_p2 = pnand %p470_p0, %p136_p1 }
   0x5   : > { %v552_v0 = vld [vmem:[%s664_s1] sm:$0xff] (!%p137_p2)   ;;  %v572_v1 = vmov (!%p137_p2), 0.0   ;;  %v553_v2 = vld [vmem:[%s664_s1 + $0x8] sm:$0xff] (!%p137_p2)   ;;  %vm573_vm0 = vmmov (!%p137_p2), 0   ;;  %p158_p3 = scmp.lt.s32.totalorder (!%p137_p2), %s466_s13, 1  ;;  %v554_v4 = vld [vmem:[%s664_s1 + $0x10] sm:$0xff] (!%p137_p2)   ;;  %v329_v23 = vlaneseq (!%p137_p2) }
   0x6   : > { %140 = sbr.rel (%p137_p2) target bundleno = 261 (0x105), region = 32  ;;  %506 = vmatprep.subr.bf16.mxu0 (!%p137_p2), %v572_v1  ;;  %518 = vmatprep.subr.bf16.mxu1 (!%p137_p2), %v572_v1  ;;  %v556_v3 = vld [vmem:[%s664_s1 + $0x40] sm:$0xff] (!%p137_p2)   ;;  %v557_v5 = vld [vmem:[%s664_s1 + $0x48] sm:$0xff] (!%p137_p2)   ;;  %v555_v7 = vld [vmem:[%s664_s1 + $0x18] sm:$0xff] (!%p137_p2)   ;;  %vm205_vm2 = vcmask (!%p137_p2), 523264   ;;  %vm411_vm5 = vcmask (!%p137_p2), 519168  }
   0x7   : > { %507 = vmatpush3.bf16.msra.mxu0 (!%p137_p2), %v552_v0  ;;  %514 = vmatprep.mubr.msk.bf16.mxu0 (!%p137_p2), %vm573_vm0, %v572_v1  ;;  %v559_v9 = vld [vmem:[%s664_s1 + $0x50] sm:$0xff] (!%p137_p2)   ;;  %v558_v13 = vld [vmem:[%s664_s1 + $0x20] sm:$0xff] (!%p137_p2)   ;;  %v561_v14 = vld [vmem:[%s664_s1 + $0x58] sm:$0xff] (!%p137_p2)   ;;  %v330_v27 = vshrl.u32 (!%p137_p2), %v329_v23, 7 }
   0x8   : > { %508 = vmatprep.subr.bf16.mxu0 (!%p137_p2), %v572_v1  ;;  %526 = vmatprep.mubr.msk.bf16.mxu1 (!%p137_p2), %vm573_vm0, %v572_v1  ;;  %v560_v15 = vld [vmem:[%s664_s1 + $0x28] sm:$0xff] (!%p137_p2)   ;;  %v562_v16 = vld [vmem:[%s664_s1 + $0x30] sm:$0xff] (!%p137_p2)   ;;  %v563_v17 = vld [vmem:[%s664_s1 + $0x38] sm:$0xff] (!%p137_p2)  }
   0x9   : > { %519 = vmatpush3.bf16.msra.mxu1 (!%p137_p2), %v556_v3  ;;  %vm334_vm3 = vcmp.lt.s32.totalorder (!%p137_p2), %v330_v27, 7  ;;  %vm331_vm4 = vcmp.ge.s32.totalorder (!%p137_p2), %v330_v27, 1  ;;  %v488_v35 = vld [vmem:[%s665_s2] ss:$0 sm:$0xff] (!%p137_p2) }
   0xa   : > { %520 = vmatprep.subr.bf16.mxu1 (!%p137_p2), %v572_v1 }
   0xb   : > { %509 = vmatpush3.bf16.msra.mxu0 (!%p137_p2), %v553_v2 }
   0xc   : > { %510 = vmatprep.subr.bf16.mxu0 (!%p137_p2), %v572_v1 }
   0xd   : > { %s668_s13 = smov (!%p158_p3, %s466_s13), 1  ;;  %521 = vmatpush3.bf16.msra.mxu1 %v557_v5 }
   0xe   : > { %s471_s22 = sshll.u32 %s668_s13, 2  ;;  %522 = vmatprep.subr.bf16.mxu1 %v572_v1 }
   0xf   : > { %s161_s27 = scalar_lea.vmem %s663_s0, %s471_s22  ;;  %511 = vmatpush3.bf16.msra.mxu0 %v554_v4  ;;  %s165_s21 = scalar_lea.vmem %s666_s3, %s471_s22 }
  0x10   : > { %v167_v6 = vld [vmem:[%s161_s27] sm:$0xf]  ;;  %512 = vmatprep.subr.bf16.mxu0 %v572_v1 }
  0x11   : > { %v168_v8 = vunpack.c.l.bf16 %v167_v6  ;;  %523 = vmatpush3.bf16.msra.mxu1 %v559_v9 }
  0x12   : > { %524 = vmatprep.subr.bf16.mxu1 %v572_v1 }
  0x13   : > { %vm169_vm1 = vcmp.ge.f32.partialorder %v168_v8, 0.0  ;;  %v170_v10 = vmul.f32 0.1, %v168_v8  ;;  %513 = vmatpush3.bf16.msra.mxu0 %v555_v7 }
  0x14   : > { %530 = vmatprep.subr.bf16.mxu0 %v572_v1 }
  0x15   : > { %v171_v11 = vsel %vm169_vm1, %v168_v8, %v170_v10  ;;  %525 = vmatpush3.bf16.msra.mxu1 %v561_v14 }
  0x16   : > { %v172_v12 = vpack.c.bf16 %v171_v11, %v171_v11 }
  0x18   : > { %515 = vmatmul.mubr.msk.bf16.vlgmr.msra.gmra.mrb[0].mxu0 %vm205_vm2, %v172_v12  ;;  %527 = vmatmul.mubr.msk.bf16.vlgmr.msra.gmra.mrb[0].mxu1 %vm205_vm2, %v172_v12 }
  0x19   : > { %531 = vmatpush3.bf16.msra.mxu0 %v558_v13  ;;  %538 = vmatprep.mubr.msk.bf16.mxu0 %vm573_vm0, %v572_v1 }
  0x1a   : > { %532 = vmatprep.subr.bf16.mxu0 %v572_v1 }
  0x1d   : > { %533 = vmatpush3.bf16.msra.mxu0 %v560_v15 }
  0x1e   : > { %534 = vmatprep.subr.bf16.mxu0 %v572_v1 }
  0x21   : > { %535 = vmatpush3.bf16.msra.mxu0 %v562_v16 }
  0x22   : > { %536 = vmatprep.subr.bf16.mxu0 %v572_v1 }
  0x25   : > { %537 = vmatpush3.bf16.msra.mxu0 %v563_v17 }
  0x28   : > { %539 = vmatmul.mubr.msk.bf16.vlgmr.msra.gmra.mrb[4].mxu0 %vm205_vm2, %v172_v12 }
  0xeb   : > { %v243_v18 = vpop.f32.mrb[0].mxu0  ;;  %v323_v22 = vpop.f32.mrb[0].mxu1 }
  0xec   : > { %v516_v19 = vpop.f32.mrb[1].mxu0  ;;  %v528_v24 = vpop.f32.mrb[1].mxu1  ;;  %v332_v28 = vrot.slane %v243_v18, 7  ;;  %v335_v29 = vrot.slane %v323_v22, 1 }
  0xed   : > { %v246_v20 = vpop.f32.mrb[2].mxu0  ;;  %v326_v25 = vpop.f32.mrb[2].mxu1 }
  0xee   : > { %v517_v21 = vpop.f32.mrb[3].mxu0  ;;  %v529_v26 = vpop.f32.mrb[3].mxu1  ;;  %v336_v30 = vsel %vm334_vm3, %v335_v29, 0.0  ;;  %v333_v31 = vsel %vm331_vm4, %v332_v28, 0.0 }
  0xfb   : > { %v395_v32 = vpop.f32.mrb[4].mxu0 }
  0xfc   : > { %v396_v33 = vadd.f32 %v395_v32, %v333_v31  ;;  %v540_v34 = vpop.f32.mrb[5].mxu0 }
  0xfd   : > { %v398_v36 = vpop.f32.mrb[6].mxu0 }
  0xfe   : > { %v401_v37 = vadd.f32 %v396_v33, %v336_v30  ;;  %v541_v38 = vpop.f32.mrb[7].mxu0 }
 0x100   : > { %v409_v39 = vadd.f32 %v488_v35, %v401_v37 }
 0x102   : > { %v410_v40 = vpack.c.bf16 %v409_v39, %v409_v39 }
 0x104   : > { %412 = vst.msk [vmem:[%s165_s21] sm:$0xf] %vm411_vm5, %v410_v40 }
 0x105 PF: > { %s13_s12 = sadd.s32 1, %s570_s12  }
 0x106   : > { %p10_p4 = scmp.ge.s32.totalorder %s13_s12, 4  }
 0x108   :  { %12 = sbr.rel (!%p10_p4) target bundleno = 1 (0x1), region = 62 }

// kernel: dit_decoder_forward.40
= control target key start
LH: loop header
LB: loop body
LE: loop exit
PB: predicated region body
PF: predicated region fallthrough
CT: control target
= control target key end

     0   :  { %s659_s15 = smov 0   ;;  %s729_s0 = inlined_call_operand.vmem [shape: bf16[2,8,64], index: 0, kind: input, shape index: {}]   ;;  %s730_s1 = inlined_call_operand.vmem [shape: bf16[192,64], index: 1, kind: input, shape index: {}]   ;;  %s731_s2 = inlined_call_operand.vmem [shape: f32[1,64], index: 2, kind: input, shape index: {}]   ;;  %s732_s3 = inlined_call_operand.vmem [shape: bf16[2,8,64], index: 3, kind: input, shape index: {}]   ;;  %s733_s4 = inlined_call_operand.vmem [shape: bf16[2,8,64], index: 4, kind: output, shape index: {}]  }
   0x1 LB: > { %s525_s16 = sadd.s32 4294967295, %s630_s15   ;;  %p529_p0 = scmp.ge.s32.totalorder %s630_s15, 1  ;;  %s630_s15 = sphi %s659_s15, %s14_s15  }
   0x2   : > { %p170_p1 = scmp.lt.s32.totalorder %s630_s15, 3 }
   0x4   : > { %p171_p2 = pnand %p529_p0, %p170_p1 }
   0x5   : > { %v612_v0 = vld [vmem:[%s730_s1] sm:$0xff] (!%p171_p2)   ;;  %v632_v1 = vmov (!%p171_p2), 0.0   ;;  %v613_v2 = vld [vmem:[%s730_s1 + $0x8] sm:$0xff] (!%p171_p2)   ;;  %vm633_vm0 = vmmov (!%p171_p2), 0   ;;  %p198_p3 = scmp.lt.s32.totalorder (!%p171_p2), %s525_s16, 1  ;;  %v614_v4 = vld [vmem:[%s730_s1 + $0x10] sm:$0xff] (!%p171_p2)   ;;  %v373_v23 = vlaneseq (!%p171_p2) }
   0x6   : > { %174 = sbr.rel (%p171_p2) target bundleno = 263 (0x107), region = 36  ;;  %566 = vmatprep.subr.bf16.mxu0 (!%p171_p2), %v632_v1  ;;  %578 = vmatprep.subr.bf16.mxu1 (!%p171_p2), %v632_v1  ;;  %v616_v3 = vld [vmem:[%s730_s1 + $0x40] sm:$0xff] (!%p171_p2)   ;;  %v617_v5 = vld [vmem:[%s730_s1 + $0x48] sm:$0xff] (!%p171_p2)   ;;  %v615_v7 = vld [vmem:[%s730_s1 + $0x18] sm:$0xff] (!%p171_p2)   ;;  %vm249_vm2 = vcmask (!%p171_p2), 523264   ;;  %vm458_vm5 = vcmask (!%p171_p2), 519168  }
   0x7   : > { %567 = vmatpush3.bf16.msra.mxu0 (!%p171_p2), %v612_v0  ;;  %574 = vmatprep.mubr.msk.bf16.mxu0 (!%p171_p2), %vm633_vm0, %v632_v1  ;;  %v619_v9 = vld [vmem:[%s730_s1 + $0x50] sm:$0xff] (!%p171_p2)   ;;  %v618_v13 = vld [vmem:[%s730_s1 + $0x20] sm:$0xff] (!%p171_p2)   ;;  %v621_v14 = vld [vmem:[%s730_s1 + $0x58] sm:$0xff] (!%p171_p2)   ;;  %v374_v27 = vshrl.u32 (!%p171_p2), %v373_v23, 7 }
   0x8   : > { %568 = vmatprep.subr.bf16.mxu0 (!%p171_p2), %v632_v1  ;;  %586 = vmatprep.mubr.msk.bf16.mxu1 (!%p171_p2), %vm633_vm0, %v632_v1  ;;  %v620_v15 = vld [vmem:[%s730_s1 + $0x28] sm:$0xff] (!%p171_p2)   ;;  %v622_v16 = vld [vmem:[%s730_s1 + $0x30] sm:$0xff] (!%p171_p2)   ;;  %v623_v17 = vld [vmem:[%s730_s1 + $0x38] sm:$0xff] (!%p171_p2)  }
   0x9   : > { %579 = vmatpush3.bf16.msra.mxu1 (!%p171_p2), %v616_v3  ;;  %vm378_vm3 = vcmp.lt.s32.totalorder (!%p171_p2), %v374_v27, 7  ;;  %vm375_vm4 = vcmp.ge.s32.totalorder (!%p171_p2), %v374_v27, 1  ;;  %v548_v36 = vld [vmem:[%s731_s2] ss:$0 sm:$0xff] (!%p171_p2) }
   0xa   : > { %580 = vmatprep.subr.bf16.mxu1 (!%p171_p2), %v632_v1 }
   0xb   : > { %569 = vmatpush3.bf16.msra.mxu0 (!%p171_p2), %v613_v2 }
   0xc   : > { %570 = vmatprep.subr.bf16.mxu0 (!%p171_p2), %v632_v1 }
   0xd   : > { %s735_s16 = smov (!%p198_p3, %s525_s16), 1  ;;  %581 = vmatpush3.bf16.msra.mxu1 %v617_v5 }
   0xe   : > { %s681_s25 = sshll.u32 %s735_s16, 2  ;;  %582 = vmatprep.subr.bf16.mxu1 %v632_v1 }
   0xf   : > { %s201_s30 = scalar_lea.vmem %s729_s0, %s681_s25  ;;  %571 = vmatpush3.bf16.msra.mxu0 %v614_v4  ;;  %s205_s22 = scalar_lea.vmem %s732_s3, %s681_s25 }
  0x10   : > { %v211_v6 = vld [vmem:[%s201_s30] sm:$0xf]  ;;  %572 = vmatprep.subr.bf16.mxu0 %v632_v1  ;;  %s209_s28 = scalar_lea.vmem %s733_s4, %s681_s25 }
  0x11   : > { %v212_v8 = vunpack.c.l.bf16 %v211_v6  ;;  %583 = vmatpush3.bf16.msra.mxu1 %v619_v9  ;;  %v454_v33 = vld [vmem:[%s205_s22] sm:$0xf] }
  0x12   : > { %584 = vmatprep.subr.bf16.mxu1 %v632_v1  ;;  %v455_v39 = vunpack.c.l.bf16 %v454_v33 }
  0x13   : > { %vm213_vm1 = vcmp.ge.f32.partialorder %v212_v8, 0.0  ;;  %v214_v10 = vmul.f32 0.1, %v212_v8  ;;  %573 = vmatpush3.bf16.msra.mxu0 %v615_v7 }
  0x14   : > { %590 = vmatprep.subr.bf16.mxu0 %v632_v1 }
  0x15   : > { %v215_v11 = vsel %vm213_vm1, %v212_v8, %v214_v10  ;;  %585 = vmatpush3.bf16.msra.mxu1 %v621_v14 }
  0x16   : > { %v216_v12 = vpack.c.bf16 %v215_v11, %v215_v11 }
  0x18   : > { %575 = vmatmul.mubr.msk.bf16.vlgmr.msra.gmra.mrb[0].mxu0 %vm249_vm2, %v216_v12  ;;  %587 = vmatmul.mubr.msk.bf16.vlgmr.msra.gmra.mrb[0].mxu1 %vm249_vm2, %v216_v12 }
  0x19   : > { %591 = vmatpush3.bf16.msra.mxu0 %v618_v13  ;;  %598 = vmatprep.mubr.msk.bf16.mxu0 %vm633_vm0, %v632_v1 }
  0x1a   : > { %592 = vmatprep.subr.bf16.mxu0 %v632_v1 }
  0x1d   : > { %593 = vmatpush3.bf16.msra.mxu0 %v620_v15 }
  0x1e   : > { %594 = vmatprep.subr.bf16.mxu0 %v632_v1 }
  0x21   : > { %595 = vmatpush3.bf16.msra.mxu0 %v622_v16 }
  0x22   : > { %596 = vmatprep.subr.bf16.mxu0 %v632_v1 }
  0x25   : > { %597 = vmatpush3.bf16.msra.mxu0 %v623_v17 }
  0x28   : > { %599 = vmatmul.mubr.msk.bf16.vlgmr.msra.gmra.mrb[4].mxu0 %vm249_vm2, %v216_v12 }
  0xeb   : > { %v287_v18 = vpop.f32.mrb[0].mxu0  ;;  %v367_v22 = vpop.f32.mrb[0].mxu1 }
  0xec   : > { %v576_v19 = vpop.f32.mrb[1].mxu0  ;;  %v588_v24 = vpop.f32.mrb[1].mxu1  ;;  %v376_v28 = vrot.slane %v287_v18, 7  ;;  %v379_v29 = vrot.slane %v367_v22, 1 }
  0xed   : > { %v290_v20 = vpop.f32.mrb[2].mxu0  ;;  %v370_v25 = vpop.f32.mrb[2].mxu1 }
  0xee   : > { %v577_v21 = vpop.f32.mrb[3].mxu0  ;;  %v589_v26 = vpop.f32.mrb[3].mxu1  ;;  %v380_v30 = vsel %vm378_vm3, %v379_v29, 0.0  ;;  %v377_v31 = vsel %vm375_vm4, %v376_v28, 0.0 }
  0xfb   : > { %v439_v32 = vpop.f32.mrb[4].mxu0 }
  0xfc   : > { %v440_v34 = vadd.f32 %v439_v32, %v377_v31  ;;  %v600_v35 = vpop.f32.mrb[5].mxu0 }
  0xfd   : > { %v442_v37 = vpop.f32.mrb[6].mxu0 }
  0xfe   : > { %v445_v38 = vadd.f32 %v440_v34, %v380_v30  ;;  %v601_v40 = vpop.f32.mrb[7].mxu0 }
 0x100   : > { %v453_v41 = vadd.f32 %v548_v36, %v445_v38 }
 0x102   : > { %v456_v42 = vadd.f32 %v455_v39, %v453_v41 }
 0x104   : > { %v457_v43 = vpack.c.bf16 %v456_v42, %v456_v42 }
 0x106   : > { %459 = vst.msk [vmem:[%s209_s28] sm:$0xf] %vm458_vm5, %v457_v43 }
 0x107 PF: > { %s14_s15 = sadd.s32 1, %s630_s15  }
 0x108   : > { %p11_p4 = scmp.ge.s32.totalorder %s14_s15, 4  }
 0x10a   :  { %13 = sbr.rel (!%p11_p4) target bundleno = 1 (0x1), region = 69 }

// kernel: dit_decoder_forward.43
= control target key start
LH: loop header
LB: loop body
LE: loop exit
PB: predicated region body
PF: predicated region fallthrough
CT: control target
= control target key end

     0   :  { %8 = vsyncpa [#allocation3], 0  ;;  %s847_s0 = inlined_call_operand.vmem [shape: bf16[2,8,64], index: 0, kind: input, shape index: {}]   ;;  %s848_s1 = inlined_call_operand.vmem [shape: bf16[192,8], index: 1, kind: input, shape index: {}]   ;;  %s849_s2 = inlined_call_operand.vmem [shape: f32[1,8], index: 2, kind: input, shape index: {}]   ;;  %s850_s3 = inlined_call_operand.hbm [shape: f32[2,8,8], index: 3, kind: output, shape index: {}]  }
   0x1   :  { %10 = vsyncpa [#allocation3 + $0x1], 0  ;;  %s702_s12 = smov 0   ;;  %s704_s13 = smov 0  }
   0x2   :  { %s706_s14 = smov 0   ;;  %s708_s15 = smov 0  }
   0x3 LB: > { %s723_s16 = sadd.s32 4294967295, %s677_s15   ;;  %s485_s17 = sadd.s32 4294967294, %s677_s15   ;;  %s677_s15 = sphi %s708_s15, %s856_s15   ;;  %s673_s14 = sphi %s706_s14, %s855_s14   ;;  %s669_s13 = sphi %s704_s13, %s854_s13   ;;  %s665_s12 = sphi %s702_s12, %s853_s12  }
   0x4   : > { %s727_s18 = sadd.s32 1, %s677_s15   ;;  %s91_s19 = sadd.s32 1, %s673_s14 }
   0x5   : > { %s88_s20 = ssub.s32 %s677_s15, %s727_s18  ;;  %p101_p0 = scmp.ne.s32.totalorder %s673_s14, %s669_s13 }
   0x6   : > { %p89_p1 = scmp.eq.s32.totalorder %s88_s20, 0  ;;  %p102_p2 = scmp.eq.s32.totalorder %s723_s16, 1 }
   0x7   : > { %p107_p3 = scmp.ne.s32.totalorder %s669_s13, %s665_s12  ;;  %p108_p4 = scmp.eq.s32.totalorder %s485_s17, 1 }
   0x8   : > { %s738_s21 = scalar_select %p89_p1, %s673_s14, %s91_s19  }
   0x9   : > { %p740_p5 = por %p102_p2, %p101_p0  ;;  %p744_p6 = por %p108_p4, %p107_p3 }
   0xa   : > { %p488_p7 = scmp.ge.s32.totalorder %s677_s15, 1  ;;  %p139_p8 = scmp.lt.s32.totalorder %s677_s15, 3 }
   0xc   : > { %p140_p9 = pnand %p488_p7, %p139_p8 }
   0xd   : > { %v603_v0 = vld [vmem:[%s848_s1] sm:$0xff] (!%p140_p9)   ;;  %v679_v1 = vmov (!%p140_p9), 0.0   ;;  %v604_v2 = vld [vmem:[%s848_s1 + $0x8] sm:$0xff] (!%p140_p9)   ;;  %vm680_vm0 = vmmov (!%p140_p9), 0   ;;  %p162_p10 = scmp.lt.s32.totalorder (!%p140_p9), %s723_s16, 1  ;;  %v605_v4 = vld [vmem:[%s848_s1 + $0x10] sm:$0xff] (!%p140_p9)   ;;  %v329_v23 = vlaneseq (!%p140_p9) }
   0xe   : > { %143 = sbr.rel (%p140_p9) target bundleno = 281 (0x119), region = 32  ;;  %526 = vmatprep.subr.bf16.mxu0 (!%p140_p9), %v679_v1  ;;  %538 = vmatprep.subr.bf16.mxu1 (!%p140_p9), %v679_v1  ;;  %v607_v3 = vld [vmem:[%s848_s1 + $0x40] sm:$0xff] (!%p140_p9)   ;;  %v608_v5 = vld [vmem:[%s848_s1 + $0x48] sm:$0xff] (!%p140_p9)   ;;  %v606_v7 = vld [vmem:[%s848_s1 + $0x18] sm:$0xff] (!%p140_p9)   ;;  %vm205_vm2 = vcmask (!%p140_p9), 523264   ;;  %s159_s8 = sand.u32 (!%p140_p9), 1, %s669_s13  }
   0xf   : > { %527 = vmatpush3.bf16.msra.mxu0 (!%p140_p9), %v603_v0  ;;  %534 = vmatprep.mubr.msk.bf16.mxu0 (!%p140_p9), %vm680_vm0, %v679_v1  ;;  %v610_v9 = vld [vmem:[%s848_s1 + $0x50] sm:$0xff] (!%p140_p9)   ;;  %v609_v13 = vld [vmem:[%s848_s1 + $0x20] sm:$0xff] (!%p140_p9)   ;;  %v612_v14 = vld [vmem:[%s848_s1 + $0x58] sm:$0xff] (!%p140_p9)   ;;  %v330_v27 = vshrl.u32 (!%p140_p9), %v329_v23, 7  ;;  %s489_s9 = sshll.u32 (!%p140_p9), %s159_s8, 3  ;;  %s508_s17 = sshll.u32 (!%p140_p9), %s723_s16, 7 }
  0x10   : > { %528 = vmatprep.subr.bf16.mxu0 (!%p140_p9), %v679_v1  ;;  %546 = vmatprep.mubr.msk.bf16.mxu1 (!%p140_p9), %vm680_vm0, %v679_v1  ;;  %v611_v15 = vld [vmem:[%s848_s1 + $0x28] sm:$0xff] (!%p140_p9)   ;;  %v613_v16 = vld [vmem:[%s848_s1 + $0x30] sm:$0xff] (!%p140_p9)   ;;  %v614_v17 = vld [vmem:[%s848_s1 + $0x38] sm:$0xff] (!%p140_p9)   ;;  %s161_s19 = scalar_lea.vmem (!%p140_p9), [#allocation2], %s489_s9  ;;  %vm410_vm5 = vcmask (!%p140_p9), 64512   ;;  %s805_s26 = scalar_lea.hbm (!%p140_p9), %s850_s3, %s508_s17 }
  0x11   : > { %539 = vmatpush3.bf16.msra.mxu1 (!%p140_p9), %v607_v3  ;;  %vm334_vm3 = vcmp.lt.s32.totalorder (!%p140_p9), %v330_v27, 7  ;;  %vm331_vm4 = vcmp.ge.s32.totalorder (!%p140_p9), %v330_v27, 1  ;;  %v506_v35 = vld [vmem:[%s849_s2] ss:$0 sm:$0xff] (!%p140_p9)  ;;  %s426_s20 = sshll.u32 (!%p140_p9), %s161_s19, 4  ;;  %s413_s27 = scalar_lea.sflag (!%p140_p9), [#allocation3], %s159_s8  ;;  %s807_s20 = int_to_ptr.vmem [resolvable:$true] %s426_s20 }
  0x12   : > { %540 = vmatprep.subr.bf16.mxu1 (!%p140_p9), %v679_v1  ;;  %s615_s28 = scalar_lea.vmem (!%p140_p9), %s807_s20, 128 }
  0x13   : > { %529 = vmatpush3.bf16.msra.mxu0 (!%p140_p9), %v604_v2  ;;  %p616_p11 = scmp.ne.s32.totalorder (!%p140_p9), %s807_s20, %s615_s28 }
  0x14   : > { %530 = vmatprep.subr.bf16.mxu0 (!%p140_p9), %v679_v1 }
  0x15   : > { %s163_s30 = scalar_select %p162_p10, %s723_s16, 1  ;;  %541 = vmatpush3.bf16.msra.mxu1 %v608_v5 }
  0x16   : > { %542 = vmatprep.subr.bf16.mxu1 %v679_v1  ;;  %p617_p12 = pnand %p616_p11, %p740_p5  ;;  %s681_s16 = smov [#allocation2]  }
  0x17   : > { %s490_s6 = sshll.u32 %s163_s30, 2  ;;  %531 = vmatpush3.bf16.msra.mxu0 %v605_v4  ;;  %s619_s29 = sshll.u32 %s681_s16, 4  ;;  %s620_s29 = int_to_ptr.vmem [resolvable:$false] %s619_s29 }
  0x18   : > { %s165_s11 = scalar_lea.vmem %s847_s0, %s490_s6  ;;  %532 = vmatprep.subr.bf16.mxu0 %v679_v1  ;;  %p618_p13 = pneg %p617_p12 }
  0x19   : > { %v167_v6 = vld [vmem:[%s165_s11] sm:$0xf]  ;;  %543 = vmatpush3.bf16.msra.mxu1 %v610_v9  ;;  %s621_s30 = scalar_lea.vmem %s620_s29, 256  ;;  %p622_p0 = scmp.lt.s32.totalorder %s807_s20, %s620_s29 }
  0x1a   : > { %v168_v8 = vunpack.c.l.bf16 %v167_v6  ;;  %544 = vmatprep.subr.bf16.mxu1 %v679_v1  ;;  %p623_p1 = scmp.lt.s32.totalorder %s621_s30, %s615_s28 }
  0x1b   : > { %533 = vmatpush3.bf16.msra.mxu0 %v606_v7 }
  0x1c   : > { %vm169_vm1 = vcmp.ge.f32.partialorder %v168_v8, 0.0  ;;  %v170_v10 = vmul.f32 0.1, %v168_v8  ;;  %550 = vmatprep.subr.bf16.mxu0 %v679_v1  ;;  %p624_p2 = por %p623_p1, %p622_p0 }
  0x1d   : > { %545 = vmatpush3.bf16.msra.mxu1 %v612_v14 }
  0x1e   : > { %v171_v11 = vsel %vm169_vm1, %v168_v8, %v170_v10  ;;  %p625_p3 = pnand %p624_p2, %p618_p13 }
  0x1f   : > { %v172_v12 = vpack.c.bf16 %v171_v11, %v171_v11 }
  0x21   : > { %535 = vmatmul.mubr.msk.bf16.vlgmr.msra.gmra.mrb[0].mxu0 %vm205_vm2, %v172_v12  ;;  %547 = vmatmul.mubr.msk.bf16.vlgmr.msra.gmra.mrb[0].mxu1 %vm205_vm2, %v172_v12 }
  0x22   : > { %551 = vmatpush3.bf16.msra.mxu0 %v609_v13  ;;  %558 = vmatprep.mubr.msk.bf16.mxu0 %vm680_vm0, %v679_v1 }
  0x23   : > { %552 = vmatprep.subr.bf16.mxu0 %v679_v1 }
  0x26   : > { %553 = vmatpush3.bf16.msra.mxu0 %v611_v15 }
  0x27   : > { %554 = vmatprep.subr.bf16.mxu0 %v679_v1 }
  0x2a   : > { %555 = vmatpush3.bf16.msra.mxu0 %v613_v16 }
  0x2b   : > { %556 = vmatprep.subr.bf16.mxu0 %v679_v1 }
  0x2e   : > { %557 = vmatpush3.bf16.msra.mxu0 %v614_v17 }
  0x31   : > { %559 = vmatmul.mubr.msk.bf16.vlgmr.msra.gmra.mrb[4].mxu0 %vm205_vm2, %v172_v12 }
  0xf4   : > { %v243_v18 = vpop.f32.mrb[0].mxu0  ;;  %v323_v22 = vpop.f32.mrb[0].mxu1 }
  0xf5   : > { %v536_v19 = vpop.f32.mrb[1].mxu0  ;;  %v548_v24 = vpop.f32.mrb[1].mxu1  ;;  %v332_v28 = vrot.slane %v243_v18, 7  ;;  %v335_v29 = vrot.slane %v323_v22, 1 }
  0xf6   : > { %v246_v20 = vpop.f32.mrb[2].mxu0  ;;  %v326_v25 = vpop.f32.mrb[2].mxu1 }
  0xf7   : > { %v537_v21 = vpop.f32.mrb[3].mxu0  ;;  %v549_v26 = vpop.f32.mrb[3].mxu1  ;;  %v336_v30 = vsel %vm334_vm3, %v335_v29, 0.0  ;;  %v333_v31 = vsel %vm331_vm4, %v332_v28, 0.0 }
 0x104   : > { %v395_v32 = vpop.f32.mrb[4].mxu0 }
 0x105   : > { %v396_v33 = vadd.f32 %v395_v32, %v333_v31  ;;  %v560_v34 = vpop.f32.mrb[5].mxu0 }
 0x106   : > { %v398_v36 = vpop.f32.mrb[6].mxu0 }
 0x107   : > { %v401_v37 = vadd.f32 %v396_v33, %v336_v30  ;;  %v561_v38 = vpop.f32.mrb[7].mxu0 }
 0x109   : > { %v409_v39 = vadd.f32 %v506_v35, %v401_v37 }
 0x10b   : > { %411 = vst.msk [vmem:[%s161_s19] sm:$0xff] %vm410_vm5, %v409_v39 }
 0x10c   : > { %628 = shalt.err (!%p625_p3)
}
 0x10d   : > { %s629_s4 = scalar_lea.hbm %s805_s26, 128  ;;  %s633_s7 = scalar_lea.hbm %s850_s3, 256 }
 0x10e   : > { %p630_p4 = scmp.ne.s32.totalorder %s805_s26, %s629_s4  ;;  %p634_p9 = scmp.lt.u32.totalorder %s805_s26, %s850_s3 }
 0x10f   : > { %p635_p10 = scmp.lt.u32.totalorder %s633_s7, %s629_s4  ;;  %p637_p12 = scmp.lt.u32.totalorder %s629_s4, %s805_s26 }
 0x110   : > { %p631_p7 = pnand %p630_p4, %p740_p5 }
 0x111   : > { %p636_p11 = por %p635_p10, %p634_p9 }
 0x112   : > { %p632_p8 = pneg %p631_p7 }
 0x113   : > { %p638_p13 = por %p637_p12, %p636_p11 }
 0x115   : > { %p639_p0 = pnand %p638_p13, %p632_p8 }
 0x117   : > { %642 = shalt.err (!%p639_p0)
}
 0x118   : > { %562 = dma.vmem_to_hbm [thread:$0]  (%p740_p5), %s807_s20, 128, %s805_s26, %s413_s27  }
 0x119 PF: > { %p568_p1 = scmp.ge.s32.totalorder %s677_s15, 2  ;;  %s438_s10 = sand.u32 1, %s665_s12  }
 0x11a   : > { %s439_s11 = scalar_lea.sflag [#allocation3], %s438_s10 }
 0x11b   : > { %p565_p2 = pnand %p568_p1, %p744_p6 }
 0x11d   : > { %660 = dma.done.wait (!%p565_p2), %s439_s11, 128  }
 0x11e   : > { %662 = vsyncadd (!%p565_p2), %s439_s11, 4294967168  ;;  %p13_p3 = scmp.ge.s32.totalorder %s727_s18, 4   ;;  %s853_s12 = smov %s669_s13 }
 0x11f   : > { %s854_s13 = smov %s673_s14  ;;  %s855_s14 = smov %s738_s21 }
 0x120   : > { %s856_s15 = smov %s727_s18  ;;  %15 = sbr.rel (!%p13_p3) target bundleno = 3 (0x3), region = 67 }
 0x127   :  { %444 = vsyncpa [#allocation3], 1 }
 0x128   :  { %446 = vsyncpa [#allocation3 + $0x1], 1 }

</bundles_post_ra>
